<compile_context>
chip_gen: v7x
topology: tpu7x:2x2x1
jax: 0.10.0
libtpu: 0.0.40
codegen_flags: <defaults>
</compile_context>

<pallas_src>
import jax
import jax.numpy as jnp
import numpy as np
from jax import lax
from jax.experimental import pallas as pl
from jax.experimental.pallas import tpu as pltpu

_EPS = 1e-5
_TAPS = tuple((dy, dx) for dy in range(3) for dx in range(3))


# --------------------------------------------------------------------------- #
# In-kernel conv block (blocks 2..4): padded VMEM scratch + 9 accumulated matmuls
# --------------------------------------------------------------------------- #
def _conv_block_scratch(pad_ref, x, w_ref, scale, shift):
    """conv3x3(pad=1) + folded-BN + ReLU + maxpool2x2 for one image, in VMEM.

    pad_ref: VMEM scratch of shape (h+2, w+2, c) -- persistent padded buffer.
    x:       (h, w, c)    feature map (channels on the lane axis)
    w_ref:   (9*c, cout)  ref; rows ordered tap-major (dy,dx), channel-fastest
    scale:   (1, cout)    gamma / sqrt(var + eps)
    shift:   (1, cout)    (conv_bias - mean) * scale + beta
    returns  (h//2, w//2, cout)
    """
    h, w, c = x.shape
    cout = w_ref.shape[1]
    m = h * w

    # Refresh the padded scratch: zero (keeps the 1-px border at 0), store interior.
    # Replaces two whole-feature-map value concats per block with one ref store.
    pad_ref[...] = jnp.zeros_like(pad_ref)
    pad_ref[1:h + 1, 1:w + 1, :] = x

    # 9 accumulated MXU matmuls, one per tap (K = c each).  Each window is a
    # shifted static-slice load from the padded scratch -- no 9*c lane concat.
    acc = jnp.zeros((m, cout), jnp.float32)
    for t, (dy, dx) in enumerate(_TAPS):
        win = pad_ref[dy:dy + h, dx:dx + w, :].reshape(m, c)
        acc = acc + jnp.dot(win, w_ref[t * c:(t + 1) * c, :],
                            preferred_element_type=jnp.float32)

    # Folded BN + ReLU.
    y = jnp.maximum(acc * scale + shift, 0.0)

    # 2x2 maxpool with last-dim-preserving reshapes + static slices only.
    y = y.reshape(h, w // 2, 2, cout)
    y = jnp.maximum(y[:, :, 0, :], y[:, :, 1, :])           # pool over W
    y = y.reshape(h // 2, 2, w // 2, cout)
    y = jnp.maximum(y[:, 0, :, :], y[:, 1, :, :])           # pool over H
    return y                                                # (h//2, w//2, cout)


# --------------------------------------------------------------------------- #
# Fused whole-network kernel (one image per grid step)
# --------------------------------------------------------------------------- #
def _make_kernel(ph, pw):
    """ph, pw: spatial size after block 1's maxpool (H//2, W//2)."""
    m1 = ph * pw

    def kernel(cols1_ref, w1_ref, w2_ref, w3_ref, w4_ref,
               scale_ref, shift_ref, wh_ref, bh_ref, o_ref,
               p2_ref, p3_ref, p4_ref):
        hid = w1_ref.shape[1]

        # ---- block 1: pool-grouped, lane-dense im2col (prepared in wrapper) ----
        c1 = cols1_ref[0]                                   # (4, m1, K1)  K1 = 32
        k1 = c1.shape[-1]
        y = jnp.dot(c1.reshape(4 * m1, k1), w1_ref[...],
                    preferred_element_type=jnp.float32)     # (4*m1, hid)
        y = jnp.maximum(y * scale_ref[0:1, :] + shift_ref[0:1, :], 0.0)
        y = jnp.max(y.reshape(4, m1, hid), axis=0)          # 2x2 maxpool (m1, hid)
        x = y.reshape(ph, pw, hid)

        # ---- blocks 2..4: everything stays in VMEM ----
        for l, (w_ref, p_ref) in enumerate(
                ((w2_ref, p2_ref), (w3_ref, p3_ref), (w4_ref, p4_ref)), start=1):
            x = _conv_block_scratch(p_ref, x, w_ref,
                                    scale_ref[l:l + 1, :], shift_ref[l:l + 1, :])

        # ---- head: AdaptiveAvgPool2d((1,1)) + Linear (lane-padded output) ----
        feat = jnp.mean(x.reshape(-1, hid), axis=0, keepdims=True)     # (1, hid)
        o_ref[0] = (jnp.dot(feat, wh_ref[...],
                            preferred_element_type=jnp.float32) + bh_ref[...])

    return kernel


# --------------------------------------------------------------------------- #
# XLA-side prep: pool-grouped lane-dense im2col for block 1 only (Cin=3)
# --------------------------------------------------------------------------- #
def _im2col_pool_grouped(x_nhwc, k_pad):
    """(N,H,W,C) -> (N, 4, (H//2)*(W//2), k_pad); leading 4 = 2x2 pool offset."""
    n, h, w, c = x_nhwc.shape
    xp = jnp.pad(x_nhwc, ((0, 0), (1, 1), (1, 1), (0, 0)))
    cols = jnp.concatenate(
        [xp[:, dy:dy + h, dx:dx + w, :] for dy in range(3) for dx in range(3)],
        axis=-1)                                            # (n, h, w, 9c)
    cols = cols.reshape(n, h // 2, 2, w // 2, 2, 9 * c)
    cols = jnp.transpose(cols, (0, 2, 4, 1, 3, 5))          # (n, 2, 2, h/2, w/2, 9c)
    cols = cols.reshape(n, 4, (h // 2) * (w // 2), 9 * c)
    if k_pad > 9 * c:                                       # 27 -> 32 (aligned K)
        cols = jnp.pad(cols, ((0, 0), (0, 0), (0, 0), (0, k_pad - 9 * c)))
    return cols


def cnn4_forward(x_nchw, params, out_size):
    x = jnp.transpose(x_nchw, (0, 2, 3, 1)).astype(jnp.float32)   # NCHW -> NHWC
    n, h, w, c = x.shape
    hid = params["w1"].shape[1]
    k1 = params["w1"].shape[0]                              # padded K for block 1
    out_pad = params["w_head"].shape[1]                     # lane-padded classes
    ph, pw = h // 2, w // 2
    m1 = ph * pw

    cols1 = _im2col_pool_grouped(x, k1)                     # (n, 4, m1, k1)

    out = pl.pallas_call(
        _make_kernel(ph, pw),
        out_shape=jax.ShapeDtypeStruct((n, 1, out_pad), jnp.float32),
        grid=(n,),
        in_specs=[
            pl.BlockSpec((1, 4, m1, k1), lambda i: (i, 0, 0, 0)),
            pl.BlockSpec((k1, hid), lambda i: (0, 0)),
            pl.BlockSpec((9 * hid, hid), lambda i: (0, 0)),
            pl.BlockSpec((9 * hid, hid), lambda i: (0, 0)),
            pl.BlockSpec((9 * hid, hid), lambda i: (0, 0)),
            pl.BlockSpec((4, hid), lambda i: (0, 0)),
            pl.BlockSpec((4, hid), lambda i: (0, 0)),
            pl.BlockSpec((hid, out_pad), lambda i: (0, 0)),
            pl.BlockSpec((1, out_pad), lambda i: (0, 0)),
        ],
        out_specs=pl.BlockSpec((1, 1, out_pad), lambda i: (i, 0, 0)),
        scratch_shapes=[
            pltpu.VMEM((ph + 2, pw + 2, hid), jnp.float32),          # block 2 pad
            pltpu.VMEM((ph // 2 + 2, pw // 2 + 2, hid), jnp.float32),  # block 3 pad
            pltpu.VMEM((ph // 4 + 2, pw // 4 + 2, hid), jnp.float32),  # block 4 pad
        ],
        compiler_params=pltpu.CompilerParams(
            dimension_semantics=("parallel",)),
    )(cols1, params["w1"], params["w2"], params["w3"], params["w4"],
      params["scale"], params["shift"], params["w_head"], params["b_head"])
    return out.reshape(n, out_pad)[:, :out_size]


# --------------------------------------------------------------------------- #
# Deterministic parameter initialization (shapes per CNN4.__init__)
# --------------------------------------------------------------------------- #
def init_params(key, output_size, hidden_size, channels):
    keys = iter(jax.random.split(key, 4 * 6 + 2))
    raw_blocks, wmats, scales, shifts = [], [], [], []
    cin = channels
    for _ in range(4):
        wt = jax.random.normal(next(keys), (hidden_size, cin, 3, 3),
                               jnp.float32) * (1.0 / np.sqrt(cin * 9))
        b_conv = 0.1 * jax.random.normal(next(keys), (hidden_size,), jnp.float32)
        gamma = 1.0 + 0.1 * jax.random.normal(next(keys), (hidden_size,), jnp.float32)
        beta = 0.1 * jax.random.normal(next(keys), (hidden_size,), jnp.float32)
        mean = 0.1 * jax.random.normal(next(keys), (hidden_size,), jnp.float32)
        var = jax.random.uniform(next(keys), (hidden_size,), jnp.float32, 0.5, 1.5)
        scale = gamma / jnp.sqrt(var + _EPS)
        shift = (b_conv - mean) * scale + beta
        # (Cout, Cin, 3, 3) -> (dy, dx, Cin, Cout) -> (9*Cin, Cout); matches the
        # (tap-major, channel-fastest) ordering used by both im2col paths.
        wmats.append(jnp.transpose(wt, (2, 3, 1, 0)).reshape(9 * cin, hidden_size))
        scales.append(scale)
        shifts.append(shift)
        raw_blocks.append(dict(wt=wt, b=b_conv, gamma=gamma, beta=beta,
                               mean=mean, var=var))
        cin = hidden_size
    wc = jax.random.normal(next(keys), (output_size, hidden_size),
                           jnp.float32) * (1.0 / np.sqrt(hidden_size))
    bc = 0.1 * jax.random.normal(next(keys), (output_size,), jnp.float32)

    # Block-1 contraction dim padded to a multiple of 8 (27 -> 32).
    k1 = 9 * channels
    k1_pad = -(-k1 // 8) * 8
    w1 = jnp.pad(wmats[0], ((0, k1_pad - k1), (0, 0)))
    # Classifier lane-padded to >= 128 so the per-step output store is unmasked.
    out_pad = max(128, -(-output_size // 128) * 128)
    w_head = jnp.pad(wc.T, ((0, 0), (0, out_pad - output_size)))
    b_head = jnp.pad(bc.reshape(1, -1), ((0, 0), (0, out_pad - output_size)))

    params = dict(w1=w1, w2=wmats[1], w3=wmats[2], w4=wmats[3],
                  scale=jnp.stack(scales), shift=jnp.stack(shifts),
                  w_head=w_head, b_head=b_head)
    raw = dict(blocks=raw_blocks, wc=wc, bc=bc)
    return params, raw


# --------------------------------------------------------------------------- #
# Pure-JAX reference (same math via XLA ops) for a correctness check
# --------------------------------------------------------------------------- #
def ref_forward(x_nchw, raw):
    x = x_nchw.astype(jnp.float32)
    for blk in raw["blocks"]:
        z = lax.conv_general_dilated(x, blk["wt"], (1, 1), ((1, 1), (1, 1)),
                                     dimension_numbers=("NCHW", "OIHW", "NCHW"))
        z = z + blk["b"][None, :, None, None]
        sc = (blk["gamma"] / jnp.sqrt(blk["var"] + _EPS))[None, :, None, None]
        z = (z - blk["mean"][None, :, None, None]) * sc + blk["beta"][None, :, None, None]
        z = jnp.maximum(z, 0.0)
        x = lax.reduce_window(z, -jnp.inf, lax.max, (1, 1, 2, 2), (1, 1, 2, 2), "VALID")
    feat = jnp.mean(x, axis=(2, 3))
    return feat @ raw["wc"].T + raw["bc"][None, :]


if __name__ == "__main__":
    key = jax.random.PRNGKey(0)
    k_params, k_x = jax.random.split(key)

    # Small, module-consistent shapes: batch=2, channels=3, image_size=32,
    # hidden_size=32, output_size=5.
    N, C, S = 2, 3, 32
    HIDDEN, OUT = 32, 5

    params, raw = init_params(k_params, OUT, HIDDEN, C)
    x = jax.random.normal(k_x, (N, C, S, S), jnp.float32)

    fwd = jax.jit(cnn4_forward, static_argnums=2)
    logits = fwd(x, params, OUT)
    jax.block_until_ready(logits)

    ref = ref_forward(x, raw)
    np.testing.assert_allclose(np.asarray(logits), np.asarray(ref),
                               rtol=2e-3, atol=2e-3)
    print("KERNEL_OK")
</pallas_src>

<mosaic_0001>
module attributes {stable_mosaic.version = 11 : i64} {
  func.func @kernel(%arg0: i32, %arg1: memref<1x4x256x32xf32, #tpu.memory_space<vmem>>, %arg2: memref<32x32xf32, #tpu.memory_space<vmem>>, %arg3: memref<288x32xf32, #tpu.memory_space<vmem>>, %arg4: memref<288x32xf32, #tpu.memory_space<vmem>>, %arg5: memref<288x32xf32, #tpu.memory_space<vmem>>, %arg6: memref<4x32xf32, #tpu.memory_space<vmem>>, %arg7: memref<4x32xf32, #tpu.memory_space<vmem>>, %arg8: memref<32x128xf32, #tpu.memory_space<vmem>>, %arg9: memref<1x128xf32, #tpu.memory_space<vmem>>, %arg10: memref<1x1x128xf32, #tpu.memory_space<vmem>>, %arg11: memref<18x18x32xf32, #tpu.memory_space<vmem>>, %arg12: memref<10x10x32xf32, #tpu.memory_space<vmem>>, %arg13: memref<6x6x32xf32, #tpu.memory_space<vmem>>) attributes {dimension_semantics = [#tpu.dimension_semantics<parallel>], iteration_bounds = array<i64: 2>, scalar_prefetch = 0 : i64, scratch_operands = 3 : i64, tpu.core_type = #tpu.core_type<tc>, window_params = [{transform_indices = @transform_0, window_bounds = array<i64: 1, 4, 256, 32>}, {pipeline_mode = #tpu.pipeline_mode<synchronous>, transform_indices = @transform_1, window_bounds = array<i64: 32, 32>}, {pipeline_mode = #tpu.pipeline_mode<synchronous>, transform_indices = @transform_2, window_bounds = array<i64: 288, 32>}, {pipeline_mode = #tpu.pipeline_mode<synchronous>, transform_indices = @transform_3, window_bounds = array<i64: 288, 32>}, {pipeline_mode = #tpu.pipeline_mode<synchronous>, transform_indices = @transform_4, window_bounds = array<i64: 288, 32>}, {pipeline_mode = #tpu.pipeline_mode<synchronous>, transform_indices = @transform_5, window_bounds = array<i64: 4, 32>}, {pipeline_mode = #tpu.pipeline_mode<synchronous>, transform_indices = @transform_6, window_bounds = array<i64: 4, 32>}, {pipeline_mode = #tpu.pipeline_mode<synchronous>, transform_indices = @transform_7, window_bounds = array<i64: 32, 128>}, {pipeline_mode = #tpu.pipeline_mode<synchronous>, transform_indices = @transform_8, window_bounds = array<i64: 1, 128>}, {transform_indices = @transform_9, window_bounds = array<i64: 1, 1, 128>}]} {
    %c0 = arith.constant 0 : index
    %c0_0 = arith.constant 0 : index
    %c0_1 = arith.constant 0 : index
    %c0_2 = arith.constant 0 : index
    %0 = vector.load %arg1[%c0, %c0_0, %c0_1, %c0_2] : memref<1x4x256x32xf32, #tpu.memory_space<vmem>>, vector<1x4x256x32xf32>
    %1 = vector.shape_cast %0 : vector<1x4x256x32xf32> to vector<4x256x32xf32>
    %2 = vector.shape_cast %1 : vector<4x256x32xf32> to vector<1024x32xf32>
    %c0_3 = arith.constant 0 : index
    %c0_4 = arith.constant 0 : index
    %3 = vector.load %arg2[%c0_3, %c0_4] : memref<32x32xf32, #tpu.memory_space<vmem>>, vector<32x32xf32>
    %cst = arith.constant dense<0.000000e+00> : vector<1024x32xf32>
    %4 = tpu.matmul %2, %3, %cst {dimension_numbers = #tpu.dot_dimension_numbers<[1], [0], [0], [1], [0, 0, 1, 1], [], []>} : vector<1024x32xf32>, vector<32x32xf32>, vector<1024x32xf32> -> vector<1024x32xf32>
    %c0_5 = arith.constant 0 : index
    %c0_6 = arith.constant 0 : index
    %5 = vector.load %arg6[%c0_5, %c0_6] : memref<4x32xf32, #tpu.memory_space<vmem>>, vector<1x32xf32>
    %6 = vector.broadcast %5 : vector<1x32xf32> to vector<1024x32xf32>
    %7 = arith.mulf %4, %6 : vector<1024x32xf32>
    %c0_7 = arith.constant 0 : index
    %c0_8 = arith.constant 0 : index
    %8 = vector.load %arg7[%c0_7, %c0_8] : memref<4x32xf32, #tpu.memory_space<vmem>>, vector<1x32xf32>
    %9 = vector.broadcast %8 : vector<1x32xf32> to vector<1024x32xf32>
    %10 = arith.addf %7, %9 : vector<1024x32xf32>
    %cst_9 = arith.constant 0.000000e+00 : f32
    %11 = vector.broadcast %cst_9 : f32 to vector<1024x32xf32>
    %12 = arith.maximumf %10, %11 : vector<1024x32xf32>
    %13 = vector.shape_cast %12 : vector<1024x32xf32> to vector<4x256x32xf32>
    %cst_10 = arith.constant dense<0xFF800000> : vector<256x32xf32>
    %14 = vector.multi_reduction <maximumf>, %13, %cst_10 [0] : vector<4x256x32xf32> to vector<256x32xf32>
    %15 = vector.shape_cast %14 : vector<256x32xf32> to vector<16x16x32xf32>
    %c1 = arith.constant 1 : index
    %c0_11 = arith.constant 0 : index
    %16 = vector.load %arg6[%c1, %c0_11] : memref<4x32xf32, #tpu.memory_space<vmem>>, vector<1x32xf32>
    %c1_12 = arith.constant 1 : index
    %c0_13 = arith.constant 0 : index
    %17 = vector.load %arg7[%c1_12, %c0_13] : memref<4x32xf32, #tpu.memory_space<vmem>>, vector<1x32xf32>
    %cst_14 = arith.constant 0.000000e+00 : f32
    %18 = vector.broadcast %cst_14 : f32 to vector<18x18x32xf32>
    %c0_15 = arith.constant 0 : index
    %c0_16 = arith.constant 0 : index
    %c0_17 = arith.constant 0 : index
    %19 = vector.load %arg11[%c0_15, %c0_16, %c0_17] : memref<18x18x32xf32, #tpu.memory_space<vmem>>, vector<18x18x32xf32>
    tpu.vector_store %arg11[%c0_15, %c0_16, %c0_17], %18 {strides = array<i32>} : memref<18x18x32xf32, #tpu.memory_space<vmem>>, vector<18x18x32xf32>,
    %c1_18 = arith.constant 1 : index
    %c1_19 = arith.constant 1 : index
    %c0_20 = arith.constant 0 : index
    %20 = vector.load %arg11[%c1_18, %c1_19, %c0_20] : memref<18x18x32xf32, #tpu.memory_space<vmem>>, vector<16x16x32xf32>
    tpu.vector_store %arg11[%c1_18, %c1_19, %c0_20], %15 {strides = array<i32>} : memref<18x18x32xf32, #tpu.memory_space<vmem>>, vector<16x16x32xf32>,
    %cst_21 = arith.constant 0.000000e+00 : f32
    %21 = vector.broadcast %cst_21 : f32 to vector<256x32xf32>
    %c0_22 = arith.constant 0 : index
    %c0_23 = arith.constant 0 : index
    %c0_24 = arith.constant 0 : index
    %22 = vector.load %arg11[%c0_22, %c0_23, %c0_24] : memref<18x18x32xf32, #tpu.memory_space<vmem>>, vector<16x16x32xf32>
    %23 = vector.shape_cast %22 : vector<16x16x32xf32> to vector<256x32xf32>
    %c0_25 = arith.constant 0 : index
    %c0_26 = arith.constant 0 : index
    %24 = vector.load %arg3[%c0_25, %c0_26] : memref<288x32xf32, #tpu.memory_space<vmem>>, vector<32x32xf32>
    %cst_27 = arith.constant dense<0.000000e+00> : vector<256x32xf32>
    %25 = tpu.matmul %23, %24, %cst_27 {dimension_numbers = #tpu.dot_dimension_numbers<[1], [0], [0], [1], [0, 0, 1, 1], [], []>} : vector<256x32xf32>, vector<32x32xf32>, vector<256x32xf32> -> vector<256x32xf32>
    %26 = arith.addf %21, %25 : vector<256x32xf32>
    %c0_28 = arith.constant 0 : index
    %c1_29 = arith.constant 1 : index
    %c0_30 = arith.constant 0 : index
    %27 = vector.load %arg11[%c0_28, %c1_29, %c0_30] : memref<18x18x32xf32, #tpu.memory_space<vmem>>, vector<16x16x32xf32>
    %28 = vector.shape_cast %27 : vector<16x16x32xf32> to vector<256x32xf32>
    %c32 = arith.constant 32 : index
    %c0_31 = arith.constant 0 : index
    %29 = vector.load %arg3[%c32, %c0_31] : memref<288x32xf32, #tpu.memory_space<vmem>>, vector<32x32xf32>
    %cst_32 = arith.constant dense<0.000000e+00> : vector<256x32xf32>
    %30 = tpu.matmul %28, %29, %cst_32 {dimension_numbers = #tpu.dot_dimension_numbers<[1], [0], [0], [1], [0, 0, 1, 1], [], []>} : vector<256x32xf32>, vector<32x32xf32>, vector<256x32xf32> -> vector<256x32xf32>
    %31 = arith.addf %26, %30 : vector<256x32xf32>
    %c0_33 = arith.constant 0 : index
    %c2 = arith.constant 2 : index
    %c0_34 = arith.constant 0 : index
    %32 = vector.load %arg11[%c0_33, %c2, %c0_34] : memref<18x18x32xf32, #tpu.memory_space<vmem>>, vector<16x16x32xf32>
    %33 = vector.shape_cast %32 : vector<16x16x32xf32> to vector<256x32xf32>
    %c64 = arith.constant 64 : index
    %c0_35 = arith.constant 0 : index
    %34 = vector.load %arg3[%c64, %c0_35] : memref<288x32xf32, #tpu.memory_space<vmem>>, vector<32x32xf32>
    %cst_36 = arith.constant dense<0.000000e+00> : vector<256x32xf32>
    %35 = tpu.matmul %33, %34, %cst_36 {dimension_numbers = #tpu.dot_dimension_numbers<[1], [0], [0], [1], [0, 0, 1, 1], [], []>} : vector<256x32xf32>, vector<32x32xf32>, vector<256x32xf32> -> vector<256x32xf32>
    %36 = arith.addf %31, %35 : vector<256x32xf32>
    %c1_37 = arith.constant 1 : index
    %c0_38 = arith.constant 0 : index
    %c0_39 = arith.constant 0 : index
    %37 = vector.load %arg11[%c1_37, %c0_38, %c0_39] : memref<18x18x32xf32, #tpu.memory_space<vmem>>, vector<16x16x32xf32>
    %38 = vector.shape_cast %37 : vector<16x16x32xf32> to vector<256x32xf32>
    %c96 = arith.constant 96 : index
    %c0_40 = arith.constant 0 : index
    %39 = vector.load %arg3[%c96, %c0_40] : memref<288x32xf32, #tpu.memory_space<vmem>>, vector<32x32xf32>
    %cst_41 = arith.constant dense<0.000000e+00> : vector<256x32xf32>
    %40 = tpu.matmul %38, %39, %cst_41 {dimension_numbers = #tpu.dot_dimension_numbers<[1], [0], [0], [1], [0, 0, 1, 1], [], []>} : vector<256x32xf32>, vector<32x32xf32>, vector<256x32xf32> -> vector<256x32xf32>
    %41 = arith.addf %36, %40 : vector<256x32xf32>
    %c1_42 = arith.constant 1 : index
    %c1_43 = arith.constant 1 : index
    %c0_44 = arith.constant 0 : index
    %42 = vector.load %arg11[%c1_42, %c1_43, %c0_44] : memref<18x18x32xf32, #tpu.memory_space<vmem>>, vector<16x16x32xf32>
    %43 = vector.shape_cast %42 : vector<16x16x32xf32> to vector<256x32xf32>
    %c128 = arith.constant 128 : index
    %c0_45 = arith.constant 0 : index
    %44 = vector.load %arg3[%c128, %c0_45] : memref<288x32xf32, #tpu.memory_space<vmem>>, vector<32x32xf32>
    %cst_46 = arith.constant dense<0.000000e+00> : vector<256x32xf32>
    %45 = tpu.matmul %43, %44, %cst_46 {dimension_numbers = #tpu.dot_dimension_numbers<[1], [0], [0], [1], [0, 0, 1, 1], [], []>} : vector<256x32xf32>, vector<32x32xf32>, vector<256x32xf32> -> vector<256x32xf32>
    %46 = arith.addf %41, %45 : vector<256x32xf32>
    %c1_47 = arith.constant 1 : index
    %c2_48 = arith.constant 2 : index
    %c0_49 = arith.constant 0 : index
    %47 = vector.load %arg11[%c1_47, %c2_48, %c0_49] : memref<18x18x32xf32, #tpu.memory_space<vmem>>, vector<16x16x32xf32>
    %48 = vector.shape_cast %47 : vector<16x16x32xf32> to vector<256x32xf32>
    %c160 = arith.constant 160 : index
    %c0_50 = arith.constant 0 : index
    %49 = vector.load %arg3[%c160, %c0_50] : memref<288x32xf32, #tpu.memory_space<vmem>>, vector<32x32xf32>
    %cst_51 = arith.constant dense<0.000000e+00> : vector<256x32xf32>
    %50 = tpu.matmul %48, %49, %cst_51 {dimension_numbers = #tpu.dot_dimension_numbers<[1], [0], [0], [1], [0, 0, 1, 1], [], []>} : vector<256x32xf32>, vector<32x32xf32>, vector<256x32xf32> -> vector<256x32xf32>
    %51 = arith.addf %46, %50 : vector<256x32xf32>
    %c2_52 = arith.constant 2 : index
    %c0_53 = arith.constant 0 : index
    %c0_54 = arith.constant 0 : index
    %52 = vector.load %arg11[%c2_52, %c0_53, %c0_54] : memref<18x18x32xf32, #tpu.memory_space<vmem>>, vector<16x16x32xf32>
    %53 = vector.shape_cast %52 : vector<16x16x32xf32> to vector<256x32xf32>
    %c192 = arith.constant 192 : index
    %c0_55 = arith.constant 0 : index
    %54 = vector.load %arg3[%c192, %c0_55] : memref<288x32xf32, #tpu.memory_space<vmem>>, vector<32x32xf32>
    %cst_56 = arith.constant dense<0.000000e+00> : vector<256x32xf32>
    %55 = tpu.matmul %53, %54, %cst_56 {dimension_numbers = #tpu.dot_dimension_numbers<[1], [0], [0], [1], [0, 0, 1, 1], [], []>} : vector<256x32xf32>, vector<32x32xf32>, vector<256x32xf32> -> vector<256x32xf32>
    %56 = arith.addf %51, %55 : vector<256x32xf32>
    %c2_57 = arith.constant 2 : index
    %c1_58 = arith.constant 1 : index
    %c0_59 = arith.constant 0 : index
    %57 = vector.load %arg11[%c2_57, %c1_58, %c0_59] : memref<18x18x32xf32, #tpu.memory_space<vmem>>, vector<16x16x32xf32>
    %58 = vector.shape_cast %57 : vector<16x16x32xf32> to vector<256x32xf32>
    %c224 = arith.constant 224 : index
    %c0_60 = arith.constant 0 : index
    %59 = vector.load %arg3[%c224, %c0_60] : memref<288x32xf32, #tpu.memory_space<vmem>>, vector<32x32xf32>
    %cst_61 = arith.constant dense<0.000000e+00> : vector<256x32xf32>
    %60 = tpu.matmul %58, %59, %cst_61 {dimension_numbers = #tpu.dot_dimension_numbers<[1], [0], [0], [1], [0, 0, 1, 1], [], []>} : vector<256x32xf32>, vector<32x32xf32>, vector<256x32xf32> -> vector<256x32xf32>
    %61 = arith.addf %56, %60 : vector<256x32xf32>
    %c2_62 = arith.constant 2 : index
    %c2_63 = arith.constant 2 : index
    %c0_64 = arith.constant 0 : index
    %62 = vector.load %arg11[%c2_62, %c2_63, %c0_64] : memref<18x18x32xf32, #tpu.memory_space<vmem>>, vector<16x16x32xf32>
    %63 = vector.shape_cast %62 : vector<16x16x32xf32> to vector<256x32xf32>
    %c256 = arith.constant 256 : index
    %c0_65 = arith.constant 0 : index
    %64 = vector.load %arg3[%c256, %c0_65] : memref<288x32xf32, #tpu.memory_space<vmem>>, vector<32x32xf32>
    %cst_66 = arith.constant dense<0.000000e+00> : vector<256x32xf32>
    %65 = tpu.matmul %63, %64, %cst_66 {dimension_numbers = #tpu.dot_dimension_numbers<[1], [0], [0], [1], [0, 0, 1, 1], [], []>} : vector<256x32xf32>, vector<32x32xf32>, vector<256x32xf32> -> vector<256x32xf32>
    %66 = arith.addf %61, %65 : vector<256x32xf32>
    %67 = vector.broadcast %16 : vector<1x32xf32> to vector<256x32xf32>
    %68 = arith.mulf %66, %67 : vector<256x32xf32>
    %69 = vector.broadcast %17 : vector<1x32xf32> to vector<256x32xf32>
    %70 = arith.addf %68, %69 : vector<256x32xf32>
    %cst_67 = arith.constant 0.000000e+00 : f32
    %71 = vector.broadcast %cst_67 : f32 to vector<256x32xf32>
    %72 = arith.maximumf %70, %71 : vector<256x32xf32>
    %73 = vector.shape_cast %72 : vector<256x32xf32> to vector<16x8x2x32xf32>
    %74 = vector.extract_strided_slice %73 {offsets = [0, 0, 0, 0], sizes = [16, 8, 1, 32], strides = [1, 1, 1, 1]} : vector<16x8x2x32xf32> to vector<16x8x1x32xf32>
    %75 = vector.shape_cast %74 : vector<16x8x1x32xf32> to vector<16x8x32xf32>
    %76 = vector.extract_strided_slice %73 {offsets = [0, 0, 1, 0], sizes = [16, 8, 1, 32], strides = [1, 1, 1, 1]} : vector<16x8x2x32xf32> to vector<16x8x1x32xf32>
    %77 = vector.shape_cast %76 : vector<16x8x1x32xf32> to vector<16x8x32xf32>
    %78 = arith.maximumf %75, %77 : vector<16x8x32xf32>
    %79 = vector.shape_cast %78 : vector<16x8x32xf32> to vector<8x2x8x32xf32>
    %80 = vector.extract_strided_slice %79 {offsets = [0, 0, 0, 0], sizes = [8, 1, 8, 32], strides = [1, 1, 1, 1]} : vector<8x2x8x32xf32> to vector<8x1x8x32xf32>
    %81 = vector.shape_cast %80 : vector<8x1x8x32xf32> to vector<8x8x32xf32>
    %82 = vector.extract_strided_slice %79 {offsets = [0, 1, 0, 0], sizes = [8, 1, 8, 32], strides = [1, 1, 1, 1]} : vector<8x2x8x32xf32> to vector<8x1x8x32xf32>
    %83 = vector.shape_cast %82 : vector<8x1x8x32xf32> to vector<8x8x32xf32>
    %84 = arith.maximumf %81, %83 : vector<8x8x32xf32>
    %c2_68 = arith.constant 2 : index
    %c0_69 = arith.constant 0 : index
    %85 = vector.load %arg6[%c2_68, %c0_69] : memref<4x32xf32, #tpu.memory_space<vmem>>, vector<1x32xf32>
    %c2_70 = arith.constant 2 : index
    %c0_71 = arith.constant 0 : index
    %86 = vector.load %arg7[%c2_70, %c0_71] : memref<4x32xf32, #tpu.memory_space<vmem>>, vector<1x32xf32>
    %cst_72 = arith.constant 0.000000e+00 : f32
    %87 = vector.broadcast %cst_72 : f32 to vector<10x10x32xf32>
    %c0_73 = arith.constant 0 : index
    %c0_74 = arith.constant 0 : index
    %c0_75 = arith.constant 0 : index
    %88 = vector.load %arg12[%c0_73, %c0_74, %c0_75] : memref<10x10x32xf32, #tpu.memory_space<vmem>>, vector<10x10x32xf32>
    tpu.vector_store %arg12[%c0_73, %c0_74, %c0_75], %87 {strides = array<i32>} : memref<10x10x32xf32, #tpu.memory_space<vmem>>, vector<10x10x32xf32>,
    %c1_76 = arith.constant 1 : index
    %c1_77 = arith.constant 1 : index
    %c0_78 = arith.constant 0 : index
    %89 = vector.load %arg12[%c1_76, %c1_77, %c0_78] : memref<10x10x32xf32, #tpu.memory_space<vmem>>, vector<8x8x32xf32>
    tpu.vector_store %arg12[%c1_76, %c1_77, %c0_78], %84 {strides = array<i32>} : memref<10x10x32xf32, #tpu.memory_space<vmem>>, vector<8x8x32xf32>,
    %cst_79 = arith.constant 0.000000e+00 : f32
    %90 = vector.broadcast %cst_79 : f32 to vector<64x32xf32>
    %c0_80 = arith.constant 0 : index
    %c0_81 = arith.constant 0 : index
    %c0_82 = arith.constant 0 : index
    %91 = vector.load %arg12[%c0_80, %c0_81, %c0_82] : memref<10x10x32xf32, #tpu.memory_space<vmem>>, vector<8x8x32xf32>
    %92 = vector.shape_cast %91 : vector<8x8x32xf32> to vector<64x32xf32>
    %c0_83 = arith.constant 0 : index
    %c0_84 = arith.constant 0 : index
    %93 = vector.load %arg4[%c0_83, %c0_84] : memref<288x32xf32, #tpu.memory_space<vmem>>, vector<32x32xf32>
    %cst_85 = arith.constant dense<0.000000e+00> : vector<64x32xf32>
    %94 = tpu.matmul %92, %93, %cst_85 {dimension_numbers = #tpu.dot_dimension_numbers<[1], [0], [0], [1], [0, 0, 1, 1], [], []>} : vector<64x32xf32>, vector<32x32xf32>, vector<64x32xf32> -> vector<64x32xf32>
    %95 = arith.addf %90, %94 : vector<64x32xf32>
    %c0_86 = arith.constant 0 : index
    %c1_87 = arith.constant 1 : index
    %c0_88 = arith.constant 0 : index
    %96 = vector.load %arg12[%c0_86, %c1_87, %c0_88] : memref<10x10x32xf32, #tpu.memory_space<vmem>>, vector<8x8x32xf32>
    %97 = vector.shape_cast %96 : vector<8x8x32xf32> to vector<64x32xf32>
    %c32_89 = arith.constant 32 : index
    %c0_90 = arith.constant 0 : index
    %98 = vector.load %arg4[%c32_89, %c0_90] : memref<288x32xf32, #tpu.memory_space<vmem>>, vector<32x32xf32>
    %cst_91 = arith.constant dense<0.000000e+00> : vector<64x32xf32>
    %99 = tpu.matmul %97, %98, %cst_91 {dimension_numbers = #tpu.dot_dimension_numbers<[1], [0], [0], [1], [0, 0, 1, 1], [], []>} : vector<64x32xf32>, vector<32x32xf32>, vector<64x32xf32> -> vector<64x32xf32>
    %100 = arith.addf %95, %99 : vector<64x32xf32>
    %c0_92 = arith.constant 0 : index
    %c2_93 = arith.constant 2 : index
    %c0_94 = arith.constant 0 : index
    %101 = vector.load %arg12[%c0_92, %c2_93, %c0_94] : memref<10x10x32xf32, #tpu.memory_space<vmem>>, vector<8x8x32xf32>
    %102 = vector.shape_cast %101 : vector<8x8x32xf32> to vector<64x32xf32>
    %c64_95 = arith.constant 64 : index
    %c0_96 = arith.constant 0 : index
    %103 = vector.load %arg4[%c64_95, %c0_96] : memref<288x32xf32, #tpu.memory_space<vmem>>, vector<32x32xf32>
    %cst_97 = arith.constant dense<0.000000e+00> : vector<64x32xf32>
    %104 = tpu.matmul %102, %103, %cst_97 {dimension_numbers = #tpu.dot_dimension_numbers<[1], [0], [0], [1], [0, 0, 1, 1], [], []>} : vector<64x32xf32>, vector<32x32xf32>, vector<64x32xf32> -> vector<64x32xf32>
    %105 = arith.addf %100, %104 : vector<64x32xf32>
    %c1_98 = arith.constant 1 : index
    %c0_99 = arith.constant 0 : index
    %c0_100 = arith.constant 0 : index
    %106 = vector.load %arg12[%c1_98, %c0_99, %c0_100] : memref<10x10x32xf32, #tpu.memory_space<vmem>>, vector<8x8x32xf32>
    %107 = vector.shape_cast %106 : vector<8x8x32xf32> to vector<64x32xf32>
    %c96_101 = arith.constant 96 : index
    %c0_102 = arith.constant 0 : index
    %108 = vector.load %arg4[%c96_101, %c0_102] : memref<288x32xf32, #tpu.memory_space<vmem>>, vector<32x32xf32>
    %cst_103 = arith.constant dense<0.000000e+00> : vector<64x32xf32>
    %109 = tpu.matmul %107, %108, %cst_103 {dimension_numbers = #tpu.dot_dimension_numbers<[1], [0], [0], [1], [0, 0, 1, 1], [], []>} : vector<64x32xf32>, vector<32x32xf32>, vector<64x32xf32> -> vector<64x32xf32>
    %110 = arith.addf %105, %109 : vector<64x32xf32>
    %c1_104 = arith.constant 1 : index
    %c1_105 = arith.constant 1 : index
    %c0_106 = arith.constant 0 : index
    %111 = vector.load %arg12[%c1_104, %c1_105, %c0_106] : memref<10x10x32xf32, #tpu.memory_space<vmem>>, vector<8x8x32xf32>
    %112 = vector.shape_cast %111 : vector<8x8x32xf32> to vector<64x32xf32>
    %c128_107 = arith.constant 128 : index
    %c0_108 = arith.constant 0 : index
    %113 = vector.load %arg4[%c128_107, %c0_108] : memref<288x32xf32, #tpu.memory_space<vmem>>, vector<32x32xf32>
    %cst_109 = arith.constant dense<0.000000e+00> : vector<64x32xf32>
    %114 = tpu.matmul %112, %113, %cst_109 {dimension_numbers = #tpu.dot_dimension_numbers<[1], [0], [0], [1], [0, 0, 1, 1], [], []>} : vector<64x32xf32>, vector<32x32xf32>, vector<64x32xf32> -> vector<64x32xf32>
    %115 = arith.addf %110, %114 : vector<64x32xf32>
    %c1_110 = arith.constant 1 : index
    %c2_111 = arith.constant 2 : index
    %c0_112 = arith.constant 0 : index
    %116 = vector.load %arg12[%c1_110, %c2_111, %c0_112] : memref<10x10x32xf32, #tpu.memory_space<vmem>>, vector<8x8x32xf32>
    %117 = vector.shape_cast %116 : vector<8x8x32xf32> to vector<64x32xf32>
    %c160_113 = arith.constant 160 : index
    %c0_114 = arith.constant 0 : index
    %118 = vector.load %arg4[%c160_113, %c0_114] : memref<288x32xf32, #tpu.memory_space<vmem>>, vector<32x32xf32>
    %cst_115 = arith.constant dense<0.000000e+00> : vector<64x32xf32>
    %119 = tpu.matmul %117, %118, %cst_115 {dimension_numbers = #tpu.dot_dimension_numbers<[1], [0], [0], [1], [0, 0, 1, 1], [], []>} : vector<64x32xf32>, vector<32x32xf32>, vector<64x32xf32> -> vector<64x32xf32>
    %120 = arith.addf %115, %119 : vector<64x32xf32>
    %c2_116 = arith.constant 2 : index
    %c0_117 = arith.constant 0 : index
    %c0_118 = arith.constant 0 : index
    %121 = vector.load %arg12[%c2_116, %c0_117, %c0_118] : memref<10x10x32xf32, #tpu.memory_space<vmem>>, vector<8x8x32xf32>
    %122 = vector.shape_cast %121 : vector<8x8x32xf32> to vector<64x32xf32>
    %c192_119 = arith.constant 192 : index
    %c0_120 = arith.constant 0 : index
    %123 = vector.load %arg4[%c192_119, %c0_120] : memref<288x32xf32, #tpu.memory_space<vmem>>, vector<32x32xf32>
    %cst_121 = arith.constant dense<0.000000e+00> : vector<64x32xf32>
    %124 = tpu.matmul %122, %123, %cst_121 {dimension_numbers = #tpu.dot_dimension_numbers<[1], [0], [0], [1], [0, 0, 1, 1], [], []>} : vector<64x32xf32>, vector<32x32xf32>, vector<64x32xf32> -> vector<64x32xf32>
    %125 = arith.addf %120, %124 : vector<64x32xf32>
    %c2_122 = arith.constant 2 : index
    %c1_123 = arith.constant 1 : index
    %c0_124 = arith.constant 0 : index
    %126 = vector.load %arg12[%c2_122, %c1_123, %c0_124] : memref<10x10x32xf32, #tpu.memory_space<vmem>>, vector<8x8x32xf32>
    %127 = vector.shape_cast %126 : vector<8x8x32xf32> to vector<64x32xf32>
    %c224_125 = arith.constant 224 : index
    %c0_126 = arith.constant 0 : index
    %128 = vector.load %arg4[%c224_125, %c0_126] : memref<288x32xf32, #tpu.memory_space<vmem>>, vector<32x32xf32>
    %cst_127 = arith.constant dense<0.000000e+00> : vector<64x32xf32>
    %129 = tpu.matmul %127, %128, %cst_127 {dimension_numbers = #tpu.dot_dimension_numbers<[1], [0], [0], [1], [0, 0, 1, 1], [], []>} : vector<64x32xf32>, vector<32x32xf32>, vector<64x32xf32> -> vector<64x32xf32>
    %130 = arith.addf %125, %129 : vector<64x32xf32>
    %c2_128 = arith.constant 2 : index
    %c2_129 = arith.constant 2 : index
    %c0_130 = arith.constant 0 : index
    %131 = vector.load %arg12[%c2_128, %c2_129, %c0_130] : memref<10x10x32xf32, #tpu.memory_space<vmem>>, vector<8x8x32xf32>
    %132 = vector.shape_cast %131 : vector<8x8x32xf32> to vector<64x32xf32>
    %c256_131 = arith.constant 256 : index
    %c0_132 = arith.constant 0 : index
    %133 = vector.load %arg4[%c256_131, %c0_132] : memref<288x32xf32, #tpu.memory_space<vmem>>, vector<32x32xf32>
    %cst_133 = arith.constant dense<0.000000e+00> : vector<64x32xf32>
    %134 = tpu.matmul %132, %133, %cst_133 {dimension_numbers = #tpu.dot_dimension_numbers<[1], [0], [0], [1], [0, 0, 1, 1], [], []>} : vector<64x32xf32>, vector<32x32xf32>, vector<64x32xf32> -> vector<64x32xf32>
    %135 = arith.addf %130, %134 : vector<64x32xf32>
    %136 = vector.broadcast %85 : vector<1x32xf32> to vector<64x32xf32>
    %137 = arith.mulf %135, %136 : vector<64x32xf32>
    %138 = vector.broadcast %86 : vector<1x32xf32> to vector<64x32xf32>
    %139 = arith.addf %137, %138 : vector<64x32xf32>
    %cst_134 = arith.constant 0.000000e+00 : f32
    %140 = vector.broadcast %cst_134 : f32 to vector<64x32xf32>
    %141 = arith.maximumf %139, %140 : vector<64x32xf32>
    %142 = vector.shape_cast %141 : vector<64x32xf32> to vector<8x4x2x32xf32>
    %143 = vector.extract_strided_slice %142 {offsets = [0, 0, 0, 0], sizes = [8, 4, 1, 32], strides = [1, 1, 1, 1]} : vector<8x4x2x32xf32> to vector<8x4x1x32xf32>
    %144 = vector.shape_cast %143 : vector<8x4x1x32xf32> to vector<8x4x32xf32>
    %145 = vector.extract_strided_slice %142 {offsets = [0, 0, 1, 0], sizes = [8, 4, 1, 32], strides = [1, 1, 1, 1]} : vector<8x4x2x32xf32> to vector<8x4x1x32xf32>
    %146 = vector.shape_cast %145 : vector<8x4x1x32xf32> to vector<8x4x32xf32>
    %147 = arith.maximumf %144, %146 : vector<8x4x32xf32>
    %148 = vector.shape_cast %147 : vector<8x4x32xf32> to vector<4x2x4x32xf32>
    %149 = vector.extract_strided_slice %148 {offsets = [0, 0, 0, 0], sizes = [4, 1, 4, 32], strides = [1, 1, 1, 1]} : vector<4x2x4x32xf32> to vector<4x1x4x32xf32>
    %150 = vector.shape_cast %149 : vector<4x1x4x32xf32> to vector<4x4x32xf32>
    %151 = vector.extract_strided_slice %148 {offsets = [0, 1, 0, 0], sizes = [4, 1, 4, 32], strides = [1, 1, 1, 1]} : vector<4x2x4x32xf32> to vector<4x1x4x32xf32>
    %152 = vector.shape_cast %151 : vector<4x1x4x32xf32> to vector<4x4x32xf32>
    %153 = arith.maximumf %150, %152 : vector<4x4x32xf32>
    %c3 = arith.constant 3 : index
    %c0_135 = arith.constant 0 : index
    %154 = vector.load %arg6[%c3, %c0_135] : memref<4x32xf32, #tpu.memory_space<vmem>>, vector<1x32xf32>
    %c3_136 = arith.constant 3 : index
    %c0_137 = arith.constant 0 : index
    %155 = vector.load %arg7[%c3_136, %c0_137] : memref<4x32xf32, #tpu.memory_space<vmem>>, vector<1x32xf32>
    %cst_138 = arith.constant 0.000000e+00 : f32
    %156 = vector.broadcast %cst_138 : f32 to vector<6x6x32xf32>
    %c0_139 = arith.constant 0 : index
    %c0_140 = arith.constant 0 : index
    %c0_141 = arith.constant 0 : index
    %157 = vector.load %arg13[%c0_139, %c0_140, %c0_141] : memref<6x6x32xf32, #tpu.memory_space<vmem>>, vector<6x6x32xf32>
    tpu.vector_store %arg13[%c0_139, %c0_140, %c0_141], %156 {strides = array<i32>} : memref<6x6x32xf32, #tpu.memory_space<vmem>>, vector<6x6x32xf32>,
    %c1_142 = arith.constant 1 : index
    %c1_143 = arith.constant 1 : index
    %c0_144 = arith.constant 0 : index
    %158 = vector.load %arg13[%c1_142, %c1_143, %c0_144] : memref<6x6x32xf32, #tpu.memory_space<vmem>>, vector<4x4x32xf32>
    tpu.vector_store %arg13[%c1_142, %c1_143, %c0_144], %153 {strides = array<i32>} : memref<6x6x32xf32, #tpu.memory_space<vmem>>, vector<4x4x32xf32>,
    %cst_145 = arith.constant 0.000000e+00 : f32
    %159 = vector.broadcast %cst_145 : f32 to vector<16x32xf32>
    %c0_146 = arith.constant 0 : index
    %c0_147 = arith.constant 0 : index
    %c0_148 = arith.constant 0 : index
    %160 = vector.load %arg13[%c0_146, %c0_147, %c0_148] : memref<6x6x32xf32, #tpu.memory_space<vmem>>, vector<4x4x32xf32>
    %161 = vector.shape_cast %160 : vector<4x4x32xf32> to vector<16x32xf32>
    %c0_149 = arith.constant 0 : index
    %c0_150 = arith.constant 0 : index
    %162 = vector.load %arg5[%c0_149, %c0_150] : memref<288x32xf32, #tpu.memory_space<vmem>>, vector<32x32xf32>
    %cst_151 = arith.constant dense<0.000000e+00> : vector<16x32xf32>
    %163 = tpu.matmul %161, %162, %cst_151 {dimension_numbers = #tpu.dot_dimension_numbers<[1], [0], [0], [1], [0, 0, 1, 1], [], []>} : vector<16x32xf32>, vector<32x32xf32>, vector<16x32xf32> -> vector<16x32xf32>
    %164 = arith.addf %159, %163 : vector<16x32xf32>
    %c0_152 = arith.constant 0 : index
    %c1_153 = arith.constant 1 : index
    %c0_154 = arith.constant 0 : index
    %165 = vector.load %arg13[%c0_152, %c1_153, %c0_154] : memref<6x6x32xf32, #tpu.memory_space<vmem>>, vector<4x4x32xf32>
    %166 = vector.shape_cast %165 : vector<4x4x32xf32> to vector<16x32xf32>
    %c32_155 = arith.constant 32 : index
    %c0_156 = arith.constant 0 : index
    %167 = vector.load %arg5[%c32_155, %c0_156] : memref<288x32xf32, #tpu.memory_space<vmem>>, vector<32x32xf32>
    %cst_157 = arith.constant dense<0.000000e+00> : vector<16x32xf32>
    %168 = tpu.matmul %166, %167, %cst_157 {dimension_numbers = #tpu.dot_dimension_numbers<[1], [0], [0], [1], [0, 0, 1, 1], [], []>} : vector<16x32xf32>, vector<32x32xf32>, vector<16x32xf32> -> vector<16x32xf32>
    %169 = arith.addf %164, %168 : vector<16x32xf32>
    %c0_158 = arith.constant 0 : index
    %c2_159 = arith.constant 2 : index
    %c0_160 = arith.constant 0 : index
    %170 = vector.load %arg13[%c0_158, %c2_159, %c0_160] : memref<6x6x32xf32, #tpu.memory_space<vmem>>, vector<4x4x32xf32>
    %171 = vector.shape_cast %170 : vector<4x4x32xf32> to vector<16x32xf32>
    %c64_161 = arith.constant 64 : index
    %c0_162 = arith.constant 0 : index
    %172 = vector.load %arg5[%c64_161, %c0_162] : memref<288x32xf32, #tpu.memory_space<vmem>>, vector<32x32xf32>
    %cst_163 = arith.constant dense<0.000000e+00> : vector<16x32xf32>
    %173 = tpu.matmul %171, %172, %cst_163 {dimension_numbers = #tpu.dot_dimension_numbers<[1], [0], [0], [1], [0, 0, 1, 1], [], []>} : vector<16x32xf32>, vector<32x32xf32>, vector<16x32xf32> -> vector<16x32xf32>
    %174 = arith.addf %169, %173 : vector<16x32xf32>
    %c1_164 = arith.constant 1 : index
    %c0_165 = arith.constant 0 : index
    %c0_166 = arith.constant 0 : index
    %175 = vector.load %arg13[%c1_164, %c0_165, %c0_166] : memref<6x6x32xf32, #tpu.memory_space<vmem>>, vector<4x4x32xf32>
    %176 = vector.shape_cast %175 : vector<4x4x32xf32> to vector<16x32xf32>
    %c96_167 = arith.constant 96 : index
    %c0_168 = arith.constant 0 : index
    %177 = vector.load %arg5[%c96_167, %c0_168] : memref<288x32xf32, #tpu.memory_space<vmem>>, vector<32x32xf32>
    %cst_169 = arith.constant dense<0.000000e+00> : vector<16x32xf32>
    %178 = tpu.matmul %176, %177, %cst_169 {dimension_numbers = #tpu.dot_dimension_numbers<[1], [0], [0], [1], [0, 0, 1, 1], [], []>} : vector<16x32xf32>, vector<32x32xf32>, vector<16x32xf32> -> vector<16x32xf32>
    %179 = arith.addf %174, %178 : vector<16x32xf32>
    %c1_170 = arith.constant 1 : index
    %c1_171 = arith.constant 1 : index
    %c0_172 = arith.constant 0 : index
    %180 = vector.load %arg13[%c1_170, %c1_171, %c0_172] : memref<6x6x32xf32, #tpu.memory_space<vmem>>, vector<4x4x32xf32>
    %181 = vector.shape_cast %180 : vector<4x4x32xf32> to vector<16x32xf32>
    %c128_173 = arith.constant 128 : index
    %c0_174 = arith.constant 0 : index
    %182 = vector.load %arg5[%c128_173, %c0_174] : memref<288x32xf32, #tpu.memory_space<vmem>>, vector<32x32xf32>
    %cst_175 = arith.constant dense<0.000000e+00> : vector<16x32xf32>
    %183 = tpu.matmul %181, %182, %cst_175 {dimension_numbers = #tpu.dot_dimension_numbers<[1], [0], [0], [1], [0, 0, 1, 1], [], []>} : vector<16x32xf32>, vector<32x32xf32>, vector<16x32xf32> -> vector<16x32xf32>
    %184 = arith.addf %179, %183 : vector<16x32xf32>
    %c1_176 = arith.constant 1 : index
    %c2_177 = arith.constant 2 : index
    %c0_178 = arith.constant 0 : index
    %185 = vector.load %arg13[%c1_176, %c2_177, %c0_178] : memref<6x6x32xf32, #tpu.memory_space<vmem>>, vector<4x4x32xf32>
    %186 = vector.shape_cast %185 : vector<4x4x32xf32> to vector<16x32xf32>
    %c160_179 = arith.constant 160 : index
    %c0_180 = arith.constant 0 : index
    %187 = vector.load %arg5[%c160_179, %c0_180] : memref<288x32xf32, #tpu.memory_space<vmem>>, vector<32x32xf32>
    %cst_181 = arith.constant dense<0.000000e+00> : vector<16x32xf32>
    %188 = tpu.matmul %186, %187, %cst_181 {dimension_numbers = #tpu.dot_dimension_numbers<[1], [0], [0], [1], [0, 0, 1, 1], [], []>} : vector<16x32xf32>, vector<32x32xf32>, vector<16x32xf32> -> vector<16x32xf32>
    %189 = arith.addf %184, %188 : vector<16x32xf32>
    %c2_182 = arith.constant 2 : index
    %c0_183 = arith.constant 0 : index
    %c0_184 = arith.constant 0 : index
    %190 = vector.load %arg13[%c2_182, %c0_183, %c0_184] : memref<6x6x32xf32, #tpu.memory_space<vmem>>, vector<4x4x32xf32>
    %191 = vector.shape_cast %190 : vector<4x4x32xf32> to vector<16x32xf32>
    %c192_185 = arith.constant 192 : index
    %c0_186 = arith.constant 0 : index
    %192 = vector.load %arg5[%c192_185, %c0_186] : memref<288x32xf32, #tpu.memory_space<vmem>>, vector<32x32xf32>
    %cst_187 = arith.constant dense<0.000000e+00> : vector<16x32xf32>
    %193 = tpu.matmul %191, %192, %cst_187 {dimension_numbers = #tpu.dot_dimension_numbers<[1], [0], [0], [1], [0, 0, 1, 1], [], []>} : vector<16x32xf32>, vector<32x32xf32>, vector<16x32xf32> -> vector<16x32xf32>
    %194 = arith.addf %189, %193 : vector<16x32xf32>
    %c2_188 = arith.constant 2 : index
    %c1_189 = arith.constant 1 : index
    %c0_190 = arith.constant 0 : index
    %195 = vector.load %arg13[%c2_188, %c1_189, %c0_190] : memref<6x6x32xf32, #tpu.memory_space<vmem>>, vector<4x4x32xf32>
    %196 = vector.shape_cast %195 : vector<4x4x32xf32> to vector<16x32xf32>
    %c224_191 = arith.constant 224 : index
    %c0_192 = arith.constant 0 : index
    %197 = vector.load %arg5[%c224_191, %c0_192] : memref<288x32xf32, #tpu.memory_space<vmem>>, vector<32x32xf32>
    %cst_193 = arith.constant dense<0.000000e+00> : vector<16x32xf32>
    %198 = tpu.matmul %196, %197, %cst_193 {dimension_numbers = #tpu.dot_dimension_numbers<[1], [0], [0], [1], [0, 0, 1, 1], [], []>} : vector<16x32xf32>, vector<32x32xf32>, vector<16x32xf32> -> vector<16x32xf32>
    %199 = arith.addf %194, %198 : vector<16x32xf32>
    %c2_194 = arith.constant 2 : index
    %c2_195 = arith.constant 2 : index
    %c0_196 = arith.constant 0 : index
    %200 = vector.load %arg13[%c2_194, %c2_195, %c0_196] : memref<6x6x32xf32, #tpu.memory_space<vmem>>, vector<4x4x32xf32>
    %201 = vector.shape_cast %200 : vector<4x4x32xf32> to vector<16x32xf32>
    %c256_197 = arith.constant 256 : index
    %c0_198 = arith.constant 0 : index
    %202 = vector.load %arg5[%c256_197, %c0_198] : memref<288x32xf32, #tpu.memory_space<vmem>>, vector<32x32xf32>
    %cst_199 = arith.constant dense<0.000000e+00> : vector<16x32xf32>
    %203 = tpu.matmul %201, %202, %cst_199 {dimension_numbers = #tpu.dot_dimension_numbers<[1], [0], [0], [1], [0, 0, 1, 1], [], []>} : vector<16x32xf32>, vector<32x32xf32>, vector<16x32xf32> -> vector<16x32xf32>
    %204 = arith.addf %199, %203 : vector<16x32xf32>
    %205 = vector.broadcast %154 : vector<1x32xf32> to vector<16x32xf32>
    %206 = arith.mulf %204, %205 : vector<16x32xf32>
    %207 = vector.broadcast %155 : vector<1x32xf32> to vector<16x32xf32>
    %208 = arith.addf %206, %207 : vector<16x32xf32>
    %cst_200 = arith.constant 0.000000e+00 : f32
    %209 = vector.broadcast %cst_200 : f32 to vector<16x32xf32>
    %210 = arith.maximumf %208, %209 : vector<16x32xf32>
    %211 = vector.shape_cast %210 : vector<16x32xf32> to vector<4x2x2x32xf32>
    %212 = vector.extract_strided_slice %211 {offsets = [0, 0, 0, 0], sizes = [4, 2, 1, 32], strides = [1, 1, 1, 1]} : vector<4x2x2x32xf32> to vector<4x2x1x32xf32>
    %213 = vector.shape_cast %212 : vector<4x2x1x32xf32> to vector<4x2x32xf32>
    %214 = vector.extract_strided_slice %211 {offsets = [0, 0, 1, 0], sizes = [4, 2, 1, 32], strides = [1, 1, 1, 1]} : vector<4x2x2x32xf32> to vector<4x2x1x32xf32>
    %215 = vector.shape_cast %214 : vector<4x2x1x32xf32> to vector<4x2x32xf32>
    %216 = arith.maximumf %213, %215 : vector<4x2x32xf32>
    %217 = vector.shape_cast %216 : vector<4x2x32xf32> to vector<2x2x2x32xf32>
    %218 = vector.extract_strided_slice %217 {offsets = [0, 0, 0, 0], sizes = [2, 1, 2, 32], strides = [1, 1, 1, 1]} : vector<2x2x2x32xf32> to vector<2x1x2x32xf32>
    %219 = vector.shape_cast %218 : vector<2x1x2x32xf32> to vector<2x2x32xf32>
    %220 = vector.extract_strided_slice %217 {offsets = [0, 1, 0, 0], sizes = [2, 1, 2, 32], strides = [1, 1, 1, 1]} : vector<2x2x2x32xf32> to vector<2x1x2x32xf32>
    %221 = vector.shape_cast %220 : vector<2x1x2x32xf32> to vector<2x2x32xf32>
    %222 = arith.maximumf %219, %221 : vector<2x2x32xf32>
    %223 = vector.shape_cast %222 : vector<2x2x32xf32> to vector<4x32xf32>
    %cst_201 = arith.constant dense<0.000000e+00> : vector<32xf32>
    %224 = vector.multi_reduction <add>, %223, %cst_201 [0] : vector<4x32xf32> to vector<32xf32>
    %225 = vector.shape_cast %224 : vector<32xf32> to vector<1x32xf32>
    %cst_202 = arith.constant 4.000000e+00 : f32
    %226 = vector.broadcast %cst_202 : f32 to vector<1x32xf32>
    %227 = arith.divf %225, %226 : vector<1x32xf32>
    %c0_203 = arith.constant 0 : index
    %c0_204 = arith.constant 0 : index
    %228 = vector.load %arg8[%c0_203, %c0_204] : memref<32x128xf32, #tpu.memory_space<vmem>>, vector<32x128xf32>
    %cst_205 = arith.constant dense<0.000000e+00> : vector<1x128xf32>
    %229 = tpu.matmul %227, %228, %cst_205 {dimension_numbers = #tpu.dot_dimension_numbers<[1], [0], [0], [1], [0, 0, 1, 1], [], []>} : vector<1x32xf32>, vector<32x128xf32>, vector<1x128xf32> -> vector<1x128xf32>
    %c0_206 = arith.constant 0 : index
    %c0_207 = arith.constant 0 : index
    %230 = vector.load %arg9[%c0_206, %c0_207] : memref<1x128xf32, #tpu.memory_space<vmem>>, vector<1x128xf32>
    %231 = arith.addf %229, %230 : vector<1x128xf32>
    %c0_208 = arith.constant 0 : index
    %c0_209 = arith.constant 0 : index
    %c0_210 = arith.constant 0 : index
    %232 = vector.load %arg10[%c0_208, %c0_209, %c0_210] : memref<1x1x128xf32, #tpu.memory_space<vmem>>, vector<1x1x128xf32>
    %233 = vector.shape_cast %232 : vector<1x1x128xf32> to vector<1x128xf32>
    %234 = vector.shape_cast %231 : vector<1x128xf32> to vector<1x1x128xf32>
    tpu.vector_store %arg10[%c0_208, %c0_209, %c0_210], %234 {strides = array<i32>} : memref<1x1x128xf32, #tpu.memory_space<vmem>>, vector<1x1x128xf32>,
    return
  }
  func.func @transform_0(%arg0: i32) -> (i32, i32, i32, i32) {
    %c0_i32 = arith.constant 0 : i32
    %c0_i32_0 = arith.constant 0 : i32
    %c0_i32_1 = arith.constant 0 : i32
    %c0_i32_2 = arith.constant 0 : i32
    return %arg0, %c0_i32, %c0_i32_0, %c0_i32_1 : i32, i32, i32, i32
  }
  func.func @transform_1(%arg0: i32) -> (i32, i32) {
    %c0_i32 = arith.constant 0 : i32
    %c0_i32_0 = arith.constant 0 : i32
    %c0_i32_1 = arith.constant 0 : i32
    return %c0_i32, %c0_i32_0 : i32, i32
  }
  func.func @transform_2(%arg0: i32) -> (i32, i32) {
    %c0_i32 = arith.constant 0 : i32
    %c0_i32_0 = arith.constant 0 : i32
    %c0_i32_1 = arith.constant 0 : i32
    return %c0_i32, %c0_i32_0 : i32, i32
  }
  func.func @transform_3(%arg0: i32) -> (i32, i32) {
    %c0_i32 = arith.constant 0 : i32
    %c0_i32_0 = arith.constant 0 : i32
    %c0_i32_1 = arith.constant 0 : i32
    return %c0_i32, %c0_i32_0 : i32, i32
  }
  func.func @transform_4(%arg0: i32) -> (i32, i32) {
    %c0_i32 = arith.constant 0 : i32
    %c0_i32_0 = arith.constant 0 : i32
    %c0_i32_1 = arith.constant 0 : i32
    return %c0_i32, %c0_i32_0 : i32, i32
  }
  func.func @transform_5(%arg0: i32) -> (i32, i32) {
    %c0_i32 = arith.constant 0 : i32
    %c0_i32_0 = arith.constant 0 : i32
    %c0_i32_1 = arith.constant 0 : i32
    return %c0_i32, %c0_i32_0 : i32, i32
  }
  func.func @transform_6(%arg0: i32) -> (i32, i32) {
    %c0_i32 = arith.constant 0 : i32
    %c0_i32_0 = arith.constant 0 : i32
    %c0_i32_1 = arith.constant 0 : i32
    return %c0_i32, %c0_i32_0 : i32, i32
  }
  func.func @transform_7(%arg0: i32) -> (i32, i32) {
    %c0_i32 = arith.constant 0 : i32
    %c0_i32_0 = arith.constant 0 : i32
    %c0_i32_1 = arith.constant 0 : i32
    return %c0_i32, %c0_i32_0 : i32, i32
  }
  func.func @transform_8(%arg0: i32) -> (i32, i32) {
    %c0_i32 = arith.constant 0 : i32
    %c0_i32_0 = arith.constant 0 : i32
    %c0_i32_1 = arith.constant 0 : i32
    return %c0_i32, %c0_i32_0 : i32, i32
  }
  func.func @transform_9(%arg0: i32) -> (i32, i32, i32) {
    %c0_i32 = arith.constant 0 : i32
    %c0_i32_0 = arith.constant 0 : i32
    %c0_i32_1 = arith.constant 0 : i32
    return %arg0, %c0_i32, %c0_i32_0 : i32, i32, i32
  }
}

</mosaic_0001>

<bundles_post_ra>
// kernel: cnn4_forward.1
= control target key start
LH: loop header
LB: loop body
LE: loop exit
PB: predicated region body
PF: predicated region fallthrough
CT: control target
= control target key end

     0   :  { %14 = vsyncpa [#allocation6], 0  ;;  %s16814_s0 = inlined_call_operand.vmem [shape: f32[2,4,256,32], index: 0, kind: input, shape index: {}]   ;;  %s16815_s1 = inlined_call_operand.vmem [shape: f32[32,32], index: 1, kind: input, shape index: {}]   ;;  %s16816_s2 = inlined_call_operand.vmem [shape: f32[288,32], index: 2, kind: input, shape index: {}]   ;;  %s16817_s3 = inlined_call_operand.vmem [shape: f32[288,32], index: 3, kind: input, shape index: {}]   ;;  %s16818_s4 = inlined_call_operand.vmem [shape: f32[288,32], index: 4, kind: input, shape index: {}]   ;;  %s16819_s5 = inlined_call_operand.vmem [shape: f32[4,32], index: 5, kind: input, shape index: {}]   ;;  %s16820_s6 = inlined_call_operand.vmem [shape: f32[4,32], index: 6, kind: input, shape index: {}]   ;;  %s16821_s7 = inlined_call_operand.vmem [shape: f32[32,128], index: 7, kind: input, shape index: {}]   ;;  %s16822_s8 = inlined_call_operand.vmem [shape: f32[1,128], index: 8, kind: input, shape index: {}]   ;;  %s16823_s9 = inlined_call_operand.hbm [shape: f32[2,1,128], index: 9, kind: output, shape index: {}]  }
   0x1   :  { %16 = vsyncpa [#allocation6 + $0x1], 0  ;;  %s13486_s30 = smov 0   ;;  %s13488_s10 = smov 0  }
   0x2   :  { %s13490_s11 = smov 0   ;;  %s13492_s12 = smov 0  }
   0x3 LB: > { %s13507_s13 = sadd.s32 4294967295, %s13429_s12   ;;  %s10419_s14 = sadd.s32 4294967294, %s13429_s12   ;;  %s13429_s12 = sphi %s13492_s12, %s17106_s12   ;;  %s13425_s11 = sphi %s13490_s11, %s17105_s11   ;;  %s13421_s10 = sphi %s13488_s10, %s17104_s10   ;;  %s13417_s30 = sphi %s13486_s30, %s17103_s30  }
   0x4   : > { %s13511_s15 = sadd.s32 1, %s13429_s12   ;;  %s223_s16 = sadd.s32 1, %s13425_s11 }
   0x5   : > { %s220_s17 = ssub.s32 %s13429_s12, %s13511_s15  ;;  %p233_p0 = scmp.ne.s32.totalorder %s13425_s11, %s13421_s10 }
   0x6   : > { %p221_p1 = scmp.eq.s32.totalorder %s220_s17, 0  ;;  %p234_p2 = scmp.eq.s32.totalorder %s13507_s13, 1 }
   0x7   : > { %p239_p3 = scmp.ne.s32.totalorder %s13421_s10, %s13417_s30  ;;  %p240_p4 = scmp.eq.s32.totalorder %s10419_s14, 1 }
   0x8   : > { %s13522_s18 = scalar_select %p221_p1, %s13425_s11, %s223_s16  }
   0x9   : > { %p13524_p5 = por %p234_p2, %p233_p0  ;;  %p13528_p6 = por %p240_p4, %p239_p3 }
   0xa   : > { %p10422_p7 = scmp.ge.s32.totalorder %s13429_s12, 1  ;;  %p290_p8 = scmp.lt.s32.totalorder %s13429_s12, 3 }
   0xc   : > { %p291_p9 = pnand %p10422_p7, %p290_p8 }
   0xe   : > { %294 = sbr.rel (%p291_p9) target bundleno = 2278 (0x8e6), region = 56 }
  0x15   : > { %v458_v0 = vld [vmem:[%s16815_s1] sm:$0xff]  ;;  %v459_v1 = vld [vmem:[%s16815_s1 + $0x8] sm:$0xff]  ;;  %v460_v2 = vld [vmem:[%s16815_s1 + $0x10] sm:$0xff]  ;;  %p325_p10 = scmp.lt.s32.totalorder %s13507_s13, 1  ;;  %vm462_vm0 = vcmask 261120   ;;  %vm2174_vm1 = vcmask 254976  }
  0x16   : > { %v12729_v3 = vpack.c.bf16 %v459_v1, %v458_v0  ;;  %v461_v4 = vld [vmem:[%s16815_s1 + $0x18] sm:$0xff]  ;;  %vm7424_vm2 = vcmask 1041409   ;;  %vm7426_vm3 = vcmask 1042434   ;;  %vm7428_vm4 = vcmask 1043459  }
  0x17   : > { %v12733_v5 = vpack.c.bf16 %v461_v4, %v460_v2  ;;  %s326_s29 = scalar_select %p325_p10, %s13507_s13, 1  ;;  %vm7430_vm5 = vcmask 1044484   ;;  %vm7432_vm6 = vcmask 1045509   ;;  %vm7434_vm7 = vcmask 1046534  }
  0x18   : > { %12730 = vmatprep.subr.bf16.mxu0 %v12729_v3  ;;  %vm7436_vm8 = vcmask 1047559   ;;  %vm9184_vm9 = vcmask 259072   ;;  %vm9288_vm10 = vcmask 257024   ;;  %vm13434_vm11 = vmmov 0  }
  0x19   : > { %12732 = vmatpush3.bf16.msra.mxu0 %v12729_v3  ;;  %s11111_s14 = sshll.u32 %s326_s29, 10 }
  0x1a   : > { %12734 = vmatprep.subr.bf16.mxu0 %v12733_v5  ;;  %s13551_s21 = scalar_lea.vmem %s16814_s0, %s11111_s14  ;;  %s323_s14 = sand.u32 1, %s13421_s10  }
  0x1b   : > { %v330_v6 = vld [vmem:[%s13551_s21] sm:$0xff]  ;;  %v331_v7 = vld [vmem:[%s13551_s21 + $0x8] sm:$0xff]  ;;  %v332_v8 = vld [vmem:[%s13551_s21 + $0x10] sm:$0xff]  ;;  %s324_s22 = scalar_lea.vmem [#allocation5], %s323_s14  ;;  %s10352_s27 = scalar_lea.sflag [#allocation6], %s323_s14 }
  0x1c   : > { %11743 = vmatprep.mubr.msk.f32.mxu0 %vm462_vm0, %v330_v6  ;;  %v333_v9 = vld [vmem:[%s13551_s21 + $0x18] sm:$0xff]  ;;  %v334_v10 = vld [vmem:[%s13551_s21 + $0x20] sm:$0xff]  ;;  %v335_v11 = vld [vmem:[%s13551_s21 + $0x28] sm:$0xff]  ;;  %s10364_s23 = sshll.u32 %s324_s22, 4  ;;  %s16774_s23 = int_to_ptr.vmem [resolvable:$true] %s10364_s23 }
  0x1d   : > { %12736 = vmatpush3.bf16.msra.mxu0 %v12733_v5  ;;  %v336_v12 = vld [vmem:[%s13551_s21 + $0x30] sm:$0xff]  ;;  %v337_v13 = vld [vmem:[%s13551_s21 + $0x38] sm:$0xff]  ;;  %v338_v14 = vld [vmem:[%s13551_s21 + $0x40] sm:$0xff]  ;;  %s13367_s28 = scalar_lea.vmem %s16774_s23, 16 }
  0x1e   : > { %v339_v15 = vld [vmem:[%s13551_s21 + $0x48] sm:$0xff]  ;;  %v340_v16 = vld [vmem:[%s13551_s21 + $0x50] sm:$0xff]  ;;  %v341_v17 = vld [vmem:[%s13551_s21 + $0x58] sm:$0xff]  ;;  %p13368_p11 = scmp.ne.s32.totalorder %s16774_s23, %s13367_s28 }
  0x1f   : > { %v342_v18 = vld [vmem:[%s13551_s21 + $0x60] sm:$0xff]  ;;  %v343_v19 = vld [vmem:[%s13551_s21 + $0x68] sm:$0xff]  ;;  %v344_v20 = vld [vmem:[%s13551_s21 + $0x70] sm:$0xff] }
  0x20   : > { %11744 = vmatmul.mubr.msk.f32.vlgmr.msra.gmra.mrb[0].mxu0 %vm462_vm0, %v331_v7  ;;  %v345_v21 = vld [vmem:[%s13551_s21 + $0x78] sm:$0xff]  ;;  %v346_v22 = vld [vmem:[%s13551_s21 + $0x80] sm:$0xff]  ;;  %v347_v23 = vld [vmem:[%s13551_s21 + $0x88] sm:$0xff]  ;;  %p13369_p12 = pnand %p13368_p11, %p13524_p5 }
  0x21   : > { %11746 = vmatprep.mubr.msk.f32.mxu0 %vm462_vm0, %v332_v8  ;;  %v348_v24 = vld [vmem:[%s13551_s21 + $0x90] sm:$0xff]  ;;  %v349_v25 = vld [vmem:[%s13551_s21 + $0x98] sm:$0xff]  ;;  %v350_v26 = vld [vmem:[%s13551_s21 + $0xa0] sm:$0xff] }
  0x22   : > { %v351_v27 = vld [vmem:[%s13551_s21 + $0xa8] sm:$0xff]  ;;  %v352_v28 = vld [vmem:[%s13551_s21 + $0xb0] sm:$0xff]  ;;  %v353_v29 = vld [vmem:[%s13551_s21 + $0xb8] sm:$0xff]  ;;  %p13370_p13 = pneg %p13369_p12 }
  0x23   : > { %v354_v30 = vld [vmem:[%s13551_s21 + $0xc0] sm:$0xff]  ;;  %v355_v31 = vld [vmem:[%s13551_s21 + $0xc8] sm:$0xff]  ;;  %v356_v32 = vld [vmem:[%s13551_s21 + $0xd0] sm:$0xff] }
  0x24   : > { %11747 = vmatmul.mubr.msk.f32.gmra.mrb[2].mxu0 %vm462_vm0, %v333_v9  ;;  %v357_v33 = vld [vmem:[%s13551_s21 + $0xd8] sm:$0xff]  ;;  %v358_v34 = vld [vmem:[%s13551_s21 + $0xe0] sm:$0xff]  ;;  %v359_v35 = vld [vmem:[%s13551_s21 + $0xe8] sm:$0xff] }
  0x25   : > { %11749 = vmatprep.mubr.msk.f32.mxu0 %vm462_vm0, %v334_v10  ;;  %v360_v36 = vld [vmem:[%s13551_s21 + $0xf0] sm:$0xff]  ;;  %v361_v37 = vld [vmem:[%s13551_s21 + $0xf8] sm:$0xff]  ;;  %v362_v38 = vld [vmem:[%s13551_s21 + $0x100] sm:$0xff] }
  0x26   : > { %v363_v39 = vld [vmem:[%s13551_s21 + $0x108] sm:$0xff]  ;;  %v364_v40 = vld [vmem:[%s13551_s21 + $0x110] sm:$0xff]  ;;  %v365_v41 = vld [vmem:[%s13551_s21 + $0x118] sm:$0xff] }
  0x27   : > { %v366_v42 = vld [vmem:[%s13551_s21 + $0x120] sm:$0xff]  ;;  %v367_v43 = vld [vmem:[%s13551_s21 + $0x128] sm:$0xff]  ;;  %v368_v44 = vld [vmem:[%s13551_s21 + $0x130] sm:$0xff] }
  0x28   : > { %11750 = vmatmul.mubr.msk.f32.gmra.mrb[4].mxu0 %vm462_vm0, %v335_v11  ;;  %v369_v45 = vld [vmem:[%s13551_s21 + $0x138] sm:$0xff]  ;;  %v370_v46 = vld [vmem:[%s13551_s21 + $0x140] sm:$0xff]  ;;  %v371_v47 = vld [vmem:[%s13551_s21 + $0x148] sm:$0xff] }
  0x29   : > { %11752 = vmatprep.mubr.msk.f32.mxu0 %vm462_vm0, %v336_v12  ;;  %v372_v48 = vld [vmem:[%s13551_s21 + $0x150] sm:$0xff]  ;;  %v373_v49 = vld [vmem:[%s13551_s21 + $0x158] sm:$0xff]  ;;  %v374_v50 = vld [vmem:[%s13551_s21 + $0x160] sm:$0xff] }
  0x2a   : > { %v375_v51 = vld [vmem:[%s13551_s21 + $0x168] sm:$0xff]  ;;  %v376_v52 = vld [vmem:[%s13551_s21 + $0x170] sm:$0xff]  ;;  %v377_v53 = vld [vmem:[%s13551_s21 + $0x178] sm:$0xff] }
  0x2b   : > { %v378_v54 = vld [vmem:[%s13551_s21 + $0x180] sm:$0xff]  ;;  %v379_v55 = vld [vmem:[%s13551_s21 + $0x188] sm:$0xff]  ;;  %v380_v56 = vld [vmem:[%s13551_s21 + $0x190] sm:$0xff] }
  0x2c   : > { %11753 = vmatmul.mubr.msk.f32.gmra.mrb[6].mxu0 %vm462_vm0, %v337_v13  ;;  %v381_v57 = vld [vmem:[%s13551_s21 + $0x198] sm:$0xff]  ;;  %v382_v58 = vld [vmem:[%s13551_s21 + $0x1a0] sm:$0xff]  ;;  %v383_v59 = vld [vmem:[%s13551_s21 + $0x1a8] sm:$0xff] }
  0x2d   : > { %11755 = vmatprep.mubr.msk.f32.mxu0 %vm462_vm0, %v338_v14  ;;  %v384_v60 = vld [vmem:[%s13551_s21 + $0x1b0] sm:$0xff]  ;;  %v385_v61 = vld [vmem:[%s13551_s21 + $0x1b8] sm:$0xff]  ;;  %v386_v62 = vld [vmem:[%s13551_s21 + $0x1c0] sm:$0xff] }
  0x2e   : > { %v387_v63 = vld [vmem:[%s13551_s21 + $0x1c8] sm:$0xff]  ;;  %v388_v0 = vld [vmem:[%s13551_s21 + $0x1d0] sm:$0xff]  ;;  %v389_v1 = vld [vmem:[%s13551_s21 + $0x1d8] sm:$0xff] }
  0x2f   : > { %v390_v2 = vld [vmem:[%s13551_s21 + $0x1e0] sm:$0xff]  ;;  %v391_v3 = vld [vmem:[%s13551_s21 + $0x1e8] sm:$0xff]  ;;  %v392_v4 = vld [vmem:[%s13551_s21 + $0x1f0] sm:$0xff] }
  0x30   : > { %11756 = vmatmul.mubr.msk.f32.gmra.mrb[8].mxu0 %vm462_vm0, %v339_v15  ;;  %v393_v5 = vld [vmem:[%s13551_s21 + $0x1f8] sm:$0xff]  ;;  %v394_v6 = vld [vmem:[%s13551_s21 + $0x200] sm:$0xff]  ;;  %v395_v7 = vld [vmem:[%s13551_s21 + $0x208] sm:$0xff] }
  0x31   : > { %11758 = vmatprep.mubr.msk.f32.mxu0 %vm462_vm0, %v340_v16  ;;  %v396_v8 = vld [vmem:[%s13551_s21 + $0x210] sm:$0xff]  ;;  %v397_v9 = vld [vmem:[%s13551_s21 + $0x218] sm:$0xff]  ;;  %v398_v10 = vld [vmem:[%s13551_s21 + $0x220] sm:$0xff] }
  0x32   : > { %v399_v11 = vld [vmem:[%s13551_s21 + $0x228] sm:$0xff]  ;;  %v400_v12 = vld [vmem:[%s13551_s21 + $0x230] sm:$0xff]  ;;  %v401_v13 = vld [vmem:[%s13551_s21 + $0x238] sm:$0xff] }
  0x33   : > { %v402_v14 = vld [vmem:[%s13551_s21 + $0x240] sm:$0xff]  ;;  %v403_v15 = vld [vmem:[%s13551_s21 + $0x248] sm:$0xff]  ;;  %v404_v16 = vld [vmem:[%s13551_s21 + $0x250] sm:$0xff] }
  0x34   : > { %11759 = vmatmul.mubr.msk.f32.gmra.mrb[10].mxu0 %vm462_vm0, %v341_v17  ;;  %v405_v17 = vld [vmem:[%s13551_s21 + $0x258] sm:$0xff] }
  0x35   : > { %11761 = vmatprep.mubr.msk.f32.mxu0 %vm462_vm0, %v342_v18  ;;  %v406_v18 = vld [vmem:[%s13551_s21 + $0x260] sm:$0xff] }
  0x38   : > { %11762 = vmatmul.mubr.msk.f32.gmra.mrb[12].mxu0 %vm462_vm0, %v343_v19  ;;  %v407_v19 = vld [vmem:[%s13551_s21 + $0x268] sm:$0xff] }
  0x39   : > { %11764 = vmatprep.mubr.msk.f32.mxu0 %vm462_vm0, %v344_v20  ;;  %v408_v20 = vld [vmem:[%s13551_s21 + $0x270] sm:$0xff] }
  0x3c   : > { %11765 = vmatmul.mubr.msk.f32.gmra.mrb[14].mxu0 %vm462_vm0, %v345_v21  ;;  %v409_v21 = vld [vmem:[%s13551_s21 + $0x278] sm:$0xff] }
  0x3d   : > { %11767 = vmatprep.mubr.msk.f32.mxu0 %vm462_vm0, %v346_v22  ;;  %v410_v22 = vld [vmem:[%s13551_s21 + $0x280] sm:$0xff] }
  0x40   : > { %11768 = vmatmul.mubr.msk.f32.gmra.mrb[16].mxu0 %vm462_vm0, %v347_v23  ;;  %v411_v23 = vld [vmem:[%s13551_s21 + $0x288] sm:$0xff] }
  0x41   : > { %11770 = vmatprep.mubr.msk.f32.mxu0 %vm462_vm0, %v348_v24  ;;  %v412_v24 = vld [vmem:[%s13551_s21 + $0x290] sm:$0xff] }
  0x44   : > { %11771 = vmatmul.mubr.msk.f32.gmra.mrb[18].mxu0 %vm462_vm0, %v349_v25  ;;  %v413_v25 = vld [vmem:[%s13551_s21 + $0x298] sm:$0xff] }
  0x45   : > { %11773 = vmatprep.mubr.msk.f32.mxu0 %vm462_vm0, %v350_v26  ;;  %v414_v26 = vld [vmem:[%s13551_s21 + $0x2a0] sm:$0xff] }
  0x48   : > { %11774 = vmatmul.mubr.msk.f32.gmra.mrb[20].mxu0 %vm462_vm0, %v351_v27  ;;  %v415_v27 = vld [vmem:[%s13551_s21 + $0x2a8] sm:$0xff] }
  0x49   : > { %11776 = vmatprep.mubr.msk.f32.mxu0 %vm462_vm0, %v352_v28  ;;  %v416_v28 = vld [vmem:[%s13551_s21 + $0x2b0] sm:$0xff] }
  0x4c   : > { %11777 = vmatmul.mubr.msk.f32.gmra.mrb[22].mxu0 %vm462_vm0, %v353_v29  ;;  %v417_v29 = vld [vmem:[%s13551_s21 + $0x2b8] sm:$0xff] }
  0x4d   : > { %11779 = vmatprep.mubr.msk.f32.mxu0 %vm462_vm0, %v354_v30  ;;  %v418_v30 = vld [vmem:[%s13551_s21 + $0x2c0] sm:$0xff] }
  0x50   : > { %11780 = vmatmul.mubr.msk.f32.gmra.mrb[24].mxu0 %vm462_vm0, %v355_v31  ;;  %v419_v31 = vld [vmem:[%s13551_s21 + $0x2c8] sm:$0xff] }
  0x51   : > { %11782 = vmatprep.mubr.msk.f32.mxu0 %vm462_vm0, %v356_v32  ;;  %v420_v32 = vld [vmem:[%s13551_s21 + $0x2d0] sm:$0xff] }
  0x54   : > { %11783 = vmatmul.mubr.msk.f32.gmra.mrb[26].mxu0 %vm462_vm0, %v357_v33  ;;  %v421_v33 = vld [vmem:[%s13551_s21 + $0x2d8] sm:$0xff] }
  0x55   : > { %11785 = vmatprep.mubr.msk.f32.mxu0 %vm462_vm0, %v358_v34  ;;  %v422_v34 = vld [vmem:[%s13551_s21 + $0x2e0] sm:$0xff] }
  0x58   : > { %11786 = vmatmul.mubr.msk.f32.gmra.mrb[28].mxu0 %vm462_vm0, %v359_v35  ;;  %v423_v35 = vld [vmem:[%s13551_s21 + $0x2e8] sm:$0xff] }
  0x59   : > { %11788 = vmatprep.mubr.msk.f32.mxu0 %vm462_vm0, %v360_v36  ;;  %v424_v36 = vld [vmem:[%s13551_s21 + $0x2f0] sm:$0xff] }
  0x5c   : > { %11789 = vmatmul.mubr.msk.f32.gmra.mrb[30].mxu0 %vm462_vm0, %v361_v37  ;;  %v425_v37 = vld [vmem:[%s13551_s21 + $0x2f8] sm:$0xff] }
  0x5d   : > { %11791 = vmatprep.mubr.msk.f32.mxu0 %vm462_vm0, %v362_v38  ;;  %v426_v38 = vld [vmem:[%s13551_s21 + $0x300] sm:$0xff] }
  0x60   : > { %11792 = vmatmul.mubr.msk.f32.gmra.mrb[32].mxu0 %vm462_vm0, %v363_v39  ;;  %v427_v39 = vld [vmem:[%s13551_s21 + $0x308] sm:$0xff] }
  0x61   : > { %11794 = vmatprep.mubr.msk.f32.mxu0 %vm462_vm0, %v364_v40  ;;  %v428_v40 = vld [vmem:[%s13551_s21 + $0x310] sm:$0xff] }
  0x64   : > { %11795 = vmatmul.mubr.msk.f32.gmra.mrb[34].mxu0 %vm462_vm0, %v365_v41  ;;  %v429_v41 = vld [vmem:[%s13551_s21 + $0x318] sm:$0xff] }
  0x65   : > { %11797 = vmatprep.mubr.msk.f32.mxu0 %vm462_vm0, %v366_v42  ;;  %v430_v42 = vld [vmem:[%s13551_s21 + $0x320] sm:$0xff] }
  0x68   : > { %11798 = vmatmul.mubr.msk.f32.gmra.mrb[36].mxu0 %vm462_vm0, %v367_v43  ;;  %v431_v43 = vld [vmem:[%s13551_s21 + $0x328] sm:$0xff] }
  0x69   : > { %11800 = vmatprep.mubr.msk.f32.mxu0 %vm462_vm0, %v368_v44  ;;  %v432_v44 = vld [vmem:[%s13551_s21 + $0x330] sm:$0xff] }
  0x6c   : > { %11801 = vmatmul.mubr.msk.f32.gmra.mrb[38].mxu0 %vm462_vm0, %v369_v45  ;;  %v433_v45 = vld [vmem:[%s13551_s21 + $0x338] sm:$0xff] }
  0x6d   : > { %11803 = vmatprep.mubr.msk.f32.mxu0 %vm462_vm0, %v370_v46  ;;  %v434_v46 = vld [vmem:[%s13551_s21 + $0x340] sm:$0xff] }
  0x70   : > { %11804 = vmatmul.mubr.msk.f32.gmra.mrb[40].mxu0 %vm462_vm0, %v371_v47  ;;  %v435_v47 = vld [vmem:[%s13551_s21 + $0x348] sm:$0xff] }
  0x71   : > { %11806 = vmatprep.mubr.msk.f32.mxu0 %vm462_vm0, %v372_v48  ;;  %v436_v48 = vld [vmem:[%s13551_s21 + $0x350] sm:$0xff] }
  0x74   : > { %11807 = vmatmul.mubr.msk.f32.gmra.mrb[42].mxu0 %vm462_vm0, %v373_v49  ;;  %v437_v49 = vld [vmem:[%s13551_s21 + $0x358] sm:$0xff] }
  0x75   : > { %11809 = vmatprep.mubr.msk.f32.mxu0 %vm462_vm0, %v374_v50  ;;  %v438_v50 = vld [vmem:[%s13551_s21 + $0x360] sm:$0xff] }
  0x78   : > { %11810 = vmatmul.mubr.msk.f32.gmra.mrb[44].mxu0 %vm462_vm0, %v375_v51 }
  0x79   : > { %11812 = vmatprep.mubr.msk.f32.mxu0 %vm462_vm0, %v376_v52 }
  0x7c   : > { %11813 = vmatmul.mubr.msk.f32.gmra.mrb[46].mxu0 %vm462_vm0, %v377_v53  ;;  %v439_v53 = vld [vmem:[%s13551_s21 + $0x368] sm:$0xff] }
  0x7d   : > { %11815 = vmatprep.mubr.msk.f32.mxu0 %vm462_vm0, %v378_v54  ;;  %v440_v54 = vld [vmem:[%s13551_s21 + $0x370] sm:$0xff] }
  0x80   : > { %11816 = vmatmul.mubr.msk.f32.gmra.mrb[48].mxu0 %vm462_vm0, %v379_v55 }
  0x81   : > { %11818 = vmatprep.mubr.msk.f32.mxu0 %vm462_vm0, %v380_v56 }
  0x84   : > { %11819 = vmatmul.mubr.msk.f32.gmra.mrb[50].mxu0 %vm462_vm0, %v381_v57  ;;  %v441_v57 = vld [vmem:[%s13551_s21 + $0x378] sm:$0xff] }
  0x85   : > { %11821 = vmatprep.mubr.msk.f32.mxu0 %vm462_vm0, %v382_v58  ;;  %v442_v58 = vld [vmem:[%s13551_s21 + $0x380] sm:$0xff] }
  0x88   : > { %11822 = vmatmul.mubr.msk.f32.gmra.mrb[52].mxu0 %vm462_vm0, %v383_v59 }
  0x89   : > { %11824 = vmatprep.mubr.msk.f32.mxu0 %vm462_vm0, %v384_v60 }
  0x8c   : > { %11825 = vmatmul.mubr.msk.f32.gmra.mrb[54].mxu0 %vm462_vm0, %v385_v61  ;;  %v443_v61 = vld [vmem:[%s13551_s21 + $0x388] sm:$0xff] }
  0x8d   : > { %11827 = vmatprep.mubr.msk.f32.mxu0 %vm462_vm0, %v386_v62  ;;  %v444_v62 = vld [vmem:[%s13551_s21 + $0x390] sm:$0xff] }
  0x90   : > { %11828 = vmatmul.mubr.msk.f32.gmra.mrb[56].mxu0 %vm462_vm0, %v387_v63 }
  0x91   : > { %11830 = vmatprep.mubr.msk.f32.mxu0 %vm462_vm0, %v388_v0 }
  0x94   : > { %11831 = vmatmul.mubr.msk.f32.gmra.mrb[58].mxu0 %vm462_vm0, %v389_v1  ;;  %v445_v1 = vld [vmem:[%s13551_s21 + $0x398] sm:$0xff] }
  0x95   : > { %11833 = vmatprep.mubr.msk.f32.mxu0 %vm462_vm0, %v390_v2  ;;  %v446_v2 = vld [vmem:[%s13551_s21 + $0x3a0] sm:$0xff] }
  0x98   : > { %11834 = vmatmul.mubr.msk.f32.gmra.mrb[60].mxu0 %vm462_vm0, %v391_v3 }
  0x99   : > { %11836 = vmatprep.mubr.msk.f32.mxu0 %vm462_vm0, %v392_v4 }
  0x9c   : > { %11837 = vmatmul.mubr.msk.f32.gmra.mrb[62].mxu0 %vm462_vm0, %v393_v5  ;;  %v447_v5 = vld [vmem:[%s13551_s21 + $0x3a8] sm:$0xff] }
  0x9d   : > { %11839 = vmatprep.mubr.msk.f32.mxu0 %vm462_vm0, %v394_v6  ;;  %v448_v6 = vld [vmem:[%s13551_s21 + $0x3b0] sm:$0xff] }
  0xa0   : > { %11840 = vmatmul.mubr.msk.f32.gmra.mrb[64].mxu0 %vm462_vm0, %v395_v7 }
  0xa1   : > { %11842 = vmatprep.mubr.msk.f32.mxu0 %vm462_vm0, %v396_v8 }
  0xa4   : > { %11843 = vmatmul.mubr.msk.f32.gmra.mrb[66].mxu0 %vm462_vm0, %v397_v9  ;;  %v449_v9 = vld [vmem:[%s13551_s21 + $0x3b8] sm:$0xff] }
  0xa5   : > { %11845 = vmatprep.mubr.msk.f32.mxu0 %vm462_vm0, %v398_v10  ;;  %v450_v10 = vld [vmem:[%s13551_s21 + $0x3c0] sm:$0xff] }
  0xa8   : > { %11846 = vmatmul.mubr.msk.f32.gmra.mrb[68].mxu0 %vm462_vm0, %v399_v11 }
  0xa9   : > { %11848 = vmatprep.mubr.msk.f32.mxu0 %vm462_vm0, %v400_v12 }
  0xac   : > { %11849 = vmatmul.mubr.msk.f32.gmra.mrb[70].mxu0 %vm462_vm0, %v401_v13  ;;  %v451_v13 = vld [vmem:[%s13551_s21 + $0x3c8] sm:$0xff] }
  0xad   : > { %11851 = vmatprep.mubr.msk.f32.mxu0 %vm462_vm0, %v402_v14  ;;  %v452_v14 = vld [vmem:[%s13551_s21 + $0x3d0] sm:$0xff] }
  0xb0   : > { %11852 = vmatmul.mubr.msk.f32.gmra.mrb[72].mxu0 %vm462_vm0, %v403_v15 }
  0xb1   : > { %11854 = vmatprep.mubr.msk.f32.mxu0 %vm462_vm0, %v404_v16 }
  0xb4   : > { %11855 = vmatmul.mubr.msk.f32.gmra.mrb[74].mxu0 %vm462_vm0, %v405_v17  ;;  %v453_v17 = vld [vmem:[%s13551_s21 + $0x3d8] sm:$0xff] }
  0xb5   : > { %11857 = vmatprep.mubr.msk.f32.mxu0 %vm462_vm0, %v406_v18  ;;  %v454_v18 = vld [vmem:[%s13551_s21 + $0x3e0] sm:$0xff] }
  0xb8   : > { %11858 = vmatmul.mubr.msk.f32.gmra.mrb[76].mxu0 %vm462_vm0, %v407_v19 }
  0xb9   : > { %11860 = vmatprep.mubr.msk.f32.mxu0 %vm462_vm0, %v408_v20 }
  0xbc   : > { %11861 = vmatmul.mubr.msk.f32.gmra.mrb[78].mxu0 %vm462_vm0, %v409_v21  ;;  %v455_v21 = vld [vmem:[%s13551_s21 + $0x3e8] sm:$0xff] }
  0xbd   : > { %11863 = vmatprep.mubr.msk.f32.mxu0 %vm462_vm0, %v410_v22  ;;  %v456_v22 = vld [vmem:[%s13551_s21 + $0x3f0] sm:$0xff] }
  0xc0   : > { %11864 = vmatmul.mubr.msk.f32.gmra.mrb[80].mxu0 %vm462_vm0, %v411_v23 }
  0xc1   : > { %11866 = vmatprep.mubr.msk.f32.mxu0 %vm462_vm0, %v412_v24 }
  0xc4   : > { %11867 = vmatmul.mubr.msk.f32.gmra.mrb[82].mxu0 %vm462_vm0, %v413_v25  ;;  %v457_v25 = vld [vmem:[%s13551_s21 + $0x3f8] sm:$0xff]  ;;  %s11108_s21 = sshll.u32 %s13507_s13, 4  ;;  %s13435_s13 = smov [#allocation5]  }
  0xc5   : > { %11869 = vmatprep.mubr.msk.f32.mxu0 %vm462_vm0, %v414_v26  ;;  %s16772_s26 = scalar_lea.hbm %s16823_s9, %s11108_s21  ;;  %s13371_s29 = sshll.u32 %s13435_s13, 4  ;;  %s13372_s29 = int_to_ptr.vmem [resolvable:$false] %s13371_s29 }
  0xc6   : > { %s13373_s16 = scalar_lea.vmem %s13372_s29, 32  ;;  %p13374_p0 = scmp.lt.s32.totalorder %s16774_s23, %s13372_s29 }
  0xc7   : > { %p13375_p1 = scmp.lt.s32.totalorder %s13373_s16, %s13367_s28 }
  0xc8   : > { %11870 = vmatmul.mubr.msk.f32.gmra.mrb[84].mxu0 %vm462_vm0, %v415_v27 }
  0xc9   : > { %11872 = vmatprep.mubr.msk.f32.mxu0 %vm462_vm0, %v416_v28  ;;  %p13376_p2 = por %p13375_p1, %p13374_p0 }
  0xcb   : > { %p13377_p3 = pnand %p13376_p2, %p13370_p13 }
  0xcc   : > { %11873 = vmatmul.mubr.msk.f32.gmra.mrb[86].mxu0 %vm462_vm0, %v417_v29 }
  0xcd   : > { %11875 = vmatprep.mubr.msk.f32.mxu0 %vm462_vm0, %v418_v30 }
  0xd0   : > { %11876 = vmatmul.mubr.msk.f32.gmra.mrb[88].mxu0 %vm462_vm0, %v419_v31 }
  0xd1   : > { %11878 = vmatprep.mubr.msk.f32.mxu0 %vm462_vm0, %v420_v32  ;;  %v13854_v32 = vld [vmem:[%s16819_s5] ss:$0 sm:$0xff] }
  0xd4   : > { %11879 = vmatmul.mubr.msk.f32.gmra.mrb[90].mxu0 %vm462_vm0, %v421_v33 }
  0xd5   : > { %11881 = vmatprep.mubr.msk.f32.mxu0 %vm462_vm0, %v422_v34 }
  0xd8   : > { %11882 = vmatmul.mubr.msk.f32.gmra.mrb[92].mxu0 %vm462_vm0, %v423_v35 }
  0xd9   : > { %11884 = vmatprep.mubr.msk.f32.mxu0 %vm462_vm0, %v424_v36  ;;  %v13865_v36 = vld [vmem:[%s16820_s6] ss:$0 sm:$0xff] }
  0xdc   : > { %11885 = vmatmul.mubr.msk.f32.gmra.mrb[94].mxu0 %vm462_vm0, %v425_v37 }
  0xdd   : > { %11887 = vmatprep.mubr.msk.f32.mxu0 %vm462_vm0, %v426_v38 }
  0xe0   : > { %11888 = vmatmul.mubr.msk.f32.gmra.mrb[96].mxu0 %vm462_vm0, %v427_v39 }
  0xe1   : > { %11890 = vmatprep.mubr.msk.f32.mxu0 %vm462_vm0, %v428_v40 }
  0xe4   : > { %11891 = vmatmul.mubr.msk.f32.gmra.mrb[98].mxu0 %vm462_vm0, %v429_v41 }
  0xe5   : > { %11893 = vmatprep.mubr.msk.f32.mxu0 %vm462_vm0, %v430_v42 }
  0xe8   : > { %11894 = vmatmul.mubr.msk.f32.gmra.mrb[100].mxu0 %vm462_vm0, %v431_v43 }
  0xe9   : > { %11896 = vmatprep.mubr.msk.f32.mxu0 %vm462_vm0, %v432_v44 }
  0xec   : > { %11897 = vmatmul.mubr.msk.f32.gmra.mrb[102].mxu0 %vm462_vm0, %v433_v45 }
  0xed   : > { %11899 = vmatprep.mubr.msk.f32.mxu0 %vm462_vm0, %v434_v46 }
  0xf0   : > { %11900 = vmatmul.mubr.msk.f32.gmra.mrb[104].mxu0 %vm462_vm0, %v435_v47 }
  0xf1   : > { %11902 = vmatprep.mubr.msk.f32.mxu0 %vm462_vm0, %v436_v48 }
  0xf3   : > { %v13769_v51 = vpop.f32.mrb[0].mxu0 }
  0xf4   : > { %v13771_v52 = vpop.f32.mrb[1].mxu0  ;;  %11903 = vmatmul.mubr.msk.f32.gmra.mrb[106].mxu0 %vm462_vm0, %v437_v49  ;;  %v1558_v34 = vmul.f32 %v13769_v51, %v13854_v32 }
  0xf5   : > { %11905 = vmatprep.mubr.msk.f32.mxu0 %vm462_vm0, %v438_v50  ;;  %v1557_v37 = vmul.f32 %v13854_v32, %v13771_v52 }
  0xf6   : > { %v1691_v46 = vadd.f32 %v13865_v36, %v1558_v34 }
  0xf7   : > { %v13777_v55 = vpop.f32.mrb[2].mxu0  ;;  %v1690_v48 = vadd.f32 %v13865_v36, %v1557_v37 }
  0xf8   : > { %v13779_v56 = vpop.f32.mrb[3].mxu0  ;;  %11906 = vmatmul.mubr.msk.f32.gmra.mrb[108].mxu0 %vm462_vm0, %v439_v53  ;;  %v1560_v38 = vmul.f32 %v13777_v55, %v13854_v32 }
  0xf9   : > { %11908 = vmatprep.mubr.msk.f32.mxu0 %vm462_vm0, %v440_v54  ;;  %v1559_v39 = vmul.f32 %v13854_v32, %v13779_v56 }
  0xfa   : > { %v1693_v49 = vadd.f32 %v13865_v36, %v1560_v38 }
  0xfb   : > { %v11751_v59 = vpop.f32.mrb[4].mxu0  ;;  %v1692_v50 = vadd.f32 %v13865_v36, %v1559_v39 }
  0xfc   : > { %v933_v60 = vpop.f32.mrb[5].mxu0  ;;  %11909 = vmatmul.mubr.msk.f32.gmra.mrb[110].mxu0 %vm462_vm0, %v441_v57  ;;  %v1562_v40 = vmul.f32 %v11751_v59, %v13854_v32 }
  0xfd   : > { %11911 = vmatprep.mubr.msk.f32.mxu0 %vm462_vm0, %v442_v58  ;;  %v1561_v41 = vmul.f32 %v13854_v32, %v933_v60  ;;  %v1819_v58 = vmax.f32 %v1691_v46, 0.0  ;;  %v1818_v60 = vmax.f32 %v1690_v48, 0.0 }
  0xfe   : > { %v1695_v51 = vadd.f32 %v13865_v36, %v1562_v40 }
  0xff   : > { %v11754_v63 = vpop.f32.mrb[6].mxu0  ;;  %v1694_v52 = vadd.f32 %v13865_v36, %v1561_v41 }
 0x100   : > { %v943_v0 = vpop.f32.mrb[7].mxu0  ;;  %11912 = vmatmul.mubr.msk.f32.gmra.mrb[112].mxu0 %vm462_vm0, %v443_v61  ;;  %v1564_v42 = vmul.f32 %v11754_v63, %v13854_v32  ;;  %v1821_v61 = vmax.f32 %v1693_v49, 0.0  ;;  %v1823_v63 = vmax.f32 %v1695_v51, 0.0  ;;  %v2328_v49 = vld [vmem:[%s16816_s2 + $0x20] sm:$0xff] }
 0x101   : > { %11914 = vmatprep.mubr.msk.f32.mxu0 %vm462_vm0, %v444_v62  ;;  %v1563_v43 = vmul.f32 %v13854_v32, %v943_v0  ;;  %v1820_v62 = vmax.f32 %v1692_v50, 0.0  ;;  %v1822_v0 = vmax.f32 %v1694_v52, 0.0  ;;  %v2329_v50 = vld [vmem:[%s16816_s2 + $0x28] sm:$0xff] }
 0x102   : > { %v1697_v53 = vadd.f32 %v13865_v36, %v1564_v42 }
 0x103   : > { %v11757_v3 = vpop.f32.mrb[8].mxu0  ;;  %v1696_v54 = vadd.f32 %v13865_v36, %v1563_v43 }
 0x104   : > { %v13793_v4 = vpop.f32.mrb[9].mxu0  ;;  %11915 = vmatmul.mubr.msk.f32.gmra.mrb[114].mxu0 %vm462_vm0, %v445_v1  ;;  %v1566_v44 = vmul.f32 %v11757_v3, %v13854_v32  ;;  %v1825_v1 = vmax.f32 %v1697_v53, 0.0  ;;  %v13953_v53 = vpack.c.bf16 %v2329_v50, %v2328_v49 }
 0x105   : > { %11917 = vmatprep.mubr.msk.f32.mxu0 %vm462_vm0, %v446_v2  ;;  %v1565_v56 = vmul.f32 %v13854_v32, %v13793_v4  ;;  %v1824_v2 = vmax.f32 %v1696_v54, 0.0 }
 0x106   : > { %v1699_v55 = vadd.f32 %v13865_v36, %v1566_v44  ;;  %12738 = vmatprep.subr.bf16.mxu0 %v13953_v53  ;;  %12959 = vmatprep.subr.bf16.mxu1 %v13953_v53 }
 0x107   : > { %v13799_v7 = vpop.f32.mrb[10].mxu0  ;;  %v13929_v37 = vsel %vm462_vm0, %v1824_v2, -inf  ;;  %12740 = vmatpush3.bf16.msra.mxu0 %v13953_v53  ;;  %12961 = vmatpush3.bf16.msra.mxu1 %v13953_v53 }
 0x108   : > { %v13801_v8 = vpop.f32.mrb[11].mxu0  ;;  %11918 = vmatmul.mubr.msk.f32.gmra.mrb[116].mxu0 %vm462_vm0, %v447_v5  ;;  %v1827_v3 = vmax.f32 %v1699_v55, 0.0  ;;  %v13898_v5 = vadd.f32 %v13865_v36, %v1565_v56  ;;  %v1568_v4 = vmul.f32 %v13799_v7, %v13854_v32  ;;  %v13922_v7 = vsel %vm462_vm0, %v1822_v0, -inf }
 0x109   : > { %11920 = vmatprep.mubr.msk.f32.mxu0 %vm462_vm0, %v448_v6 }
 0x10a   : > { %v13932_v38 = vsel %vm462_vm0, %v1827_v3, -inf  ;;  %v1826_v39 = vmax.f32 %v13898_v5, 0.0  ;;  %v13939_v42 = vadd.f32 %v13865_v36, %v1568_v4  ;;  %v2331_v5 = vld [vmem:[%s16816_s2 + $0x38] sm:$0xff] }
 0x10b   : > { %v13807_v11 = vpop.f32.mrb[12].mxu0 }
 0x10c   : > { %v13809_v12 = vpop.f32.mrb[13].mxu0  ;;  %11921 = vmatmul.mubr.msk.f32.gmra.mrb[118].mxu0 %vm462_vm0, %v449_v9  ;;  %v13901_v9 = vsel %vm462_vm0, %v1819_v58, -inf  ;;  %v13957_v54 = vmul.f32 %v13807_v11, %v13854_v32  ;;  %v16824_v58 = vmov 0.0   ;;  %v1829_v4 = vmax.f32 %v13939_v42, 0.0 }
 0x10d   : > { %11923 = vmatprep.mubr.msk.f32.mxu0 %vm462_vm0, %v450_v10  ;;  %v1567_v10 = vmul.f32 %v13854_v32, %v13801_v8  ;;  %v13925_v8 = vsel %vm462_vm0, %v1825_v1, -inf  ;;  %2177 = vst.msk [vmem:[#allocation2 + $0x20] sm:$0xff] %vm462_vm0, %v16824_v58  ;;  %2172 = vst.msk [vmem:[#allocation2] sm:$0xff] %vm462_vm0, %v16824_v58  ;;  %v1569_v11 = vmul.f32 %v13854_v32, %v13809_v12  ;;  %v14126_v12 = vsel %vm462_vm0, %v1826_v39, -inf }
 0x10e   : > { %2173 = vst.msk [vmem:[#allocation2 + $0x8] sm:$0xff] %vm462_vm0, %v16824_v58  ;;  %2176 = vst.msk [vmem:[#allocation2 + $0x18] sm:$0xff] %vm462_vm0, %v16824_v58  ;;  %v14162_v53 = vsel %vm462_vm0, %v1829_v4, -inf }
 0x10f   : > { %v13815_v15 = vpop.f32.mrb[14].mxu0  ;;  %v13942_v43 = vadd.f32 %v13865_v36, %v1567_v10  ;;  %2179 = vst.msk [vmem:[#allocation2 + $0x30] sm:$0xff] %vm462_vm0, %v16824_v58  ;;  %2180 = vst.msk [vmem:[#allocation2 + $0x38] sm:$0xff] %vm462_vm0, %v16824_v58 }
 0x110   : > { %v13817_v16 = vpop.f32.mrb[15].mxu0  ;;  %11924 = vmatmul.mubr.msk.f32.gmra.mrb[120].mxu0 %vm462_vm0, %v451_v13  ;;  %2182 = vst.msk [vmem:[#allocation2 + $0x48] sm:$0xff] %vm462_vm0, %v16824_v58  ;;  %2183 = vst.msk [vmem:[#allocation2 + $0x50] sm:$0xff] %vm462_vm0, %v16824_v58 }
 0x111   : > { %11926 = vmatprep.mubr.msk.f32.mxu0 %vm462_vm0, %v452_v14  ;;  %2185 = vst.msk [vmem:[#allocation2 + $0x60] sm:$0xff] %vm462_vm0, %v16824_v58  ;;  %2186 = vst.msk [vmem:[#allocation2 + $0x68] sm:$0xff] %vm462_vm0, %v16824_v58 }
 0x112   : > { %2188 = vst.msk [vmem:[#allocation2 + $0x78] sm:$0xff] %vm462_vm0, %v16824_v58  ;;  %2189 = vst.msk [vmem:[#allocation2 + $0x80] sm:$0xff] %vm462_vm0, %v16824_v58 }
 0x113   : > { %v13823_v19 = vpop.f32.mrb[16].mxu0  ;;  %2191 = vst.msk [vmem:[#allocation2 + $0x90] sm:$0xff] %vm462_vm0, %v16824_v58  ;;  %2192 = vst.msk [vmem:[#allocation2 + $0x98] sm:$0xff] %vm462_vm0, %v16824_v58 }
 0x114   : > { %v13825_v20 = vpop.f32.mrb[17].mxu0  ;;  %11927 = vmatmul.mubr.msk.f32.gmra.mrb[122].mxu0 %vm462_vm0, %v453_v17  ;;  %v13909_v17 = vsel %vm462_vm0, %v1818_v60, -inf  ;;  %2194 = vst.msk [vmem:[#allocation2 + $0xa8] sm:$0xff] %vm462_vm0, %v16824_v58  ;;  %2195 = vst.msk [vmem:[#allocation2 + $0xb0] sm:$0xff] %vm462_vm0, %v16824_v58 }
 0x115   : > { %11929 = vmatprep.mubr.msk.f32.mxu0 %vm462_vm0, %v454_v18  ;;  %v13912_v18 = vsel %vm462_vm0, %v1821_v61, -inf  ;;  %2197 = vst.msk [vmem:[#allocation2 + $0xc0] sm:$0xff] %vm462_vm0, %v16824_v58  ;;  %2198 = vst.msk [vmem:[#allocation2 + $0xc8] sm:$0xff] %vm462_vm0, %v16824_v58 }
 0x116   : > { %2200 = vst.msk [vmem:[#allocation2 + $0xd8] sm:$0xff] %vm462_vm0, %v16824_v58  ;;  %2201 = vst.msk [vmem:[#allocation2 + $0xe0] sm:$0xff] %vm462_vm0, %v16824_v58 }
 0x117   : > { %v13831_v23 = vpop.f32.mrb[18].mxu0  ;;  %2203 = vst.msk [vmem:[#allocation2 + $0xf0] sm:$0xff] %vm462_vm0, %v16824_v58  ;;  %2204 = vst.msk [vmem:[#allocation2 + $0xf8] sm:$0xff] %vm462_vm0, %v16824_v58 }
 0x118   : > { %v13833_v24 = vpop.f32.mrb[19].mxu0  ;;  %11930 = vmatmul.mubr.msk.f32.gmra.mrb[124].mxu0 %vm462_vm0, %v455_v21  ;;  %v13915_v21 = vsel %vm462_vm0, %v1820_v62, -inf  ;;  %2206 = vst.msk [vmem:[#allocation2 + $0x108] sm:$0xff] %vm462_vm0, %v16824_v58  ;;  %2207 = vst.msk [vmem:[#allocation2 + $0x110] sm:$0xff] %vm462_vm0, %v16824_v58 }
 0x119   : > { %11932 = vmatprep.mubr.msk.f32.mxu0 %vm462_vm0, %v456_v22  ;;  %2209 = vst.msk [vmem:[#allocation2 + $0x120] sm:$0xff] %vm462_vm0, %v16824_v58  ;;  %2210 = vst.msk [vmem:[#allocation2 + $0x128] sm:$0xff] %vm462_vm0, %v16824_v58 }
 0x11a   : > { %2212 = vst.msk [vmem:[#allocation2 + $0x138] sm:$0xff] %vm462_vm0, %v16824_v58  ;;  %2213 = vst.msk [vmem:[#allocation2 + $0x140] sm:$0xff] %vm462_vm0, %v16824_v58 }
 0x11b   : > { %v13838_v26 = vpop.f32.mrb[20].mxu0  ;;  %2215 = vst.msk [vmem:[#allocation2 + $0x150] sm:$0xff] %vm462_vm0, %v16824_v58  ;;  %2216 = vst.msk [vmem:[#allocation2 + $0x158] sm:$0xff] %vm462_vm0, %v16824_v58 }
 0x11c   : > { %v13840_v27 = vpop.f32.mrb[21].mxu0  ;;  %11933 = vmatmul.mubr.msk.f32.gmra.mrb[126].mxu0 %vm462_vm0, %v457_v25  ;;  %v13919_v25 = vsel %vm462_vm0, %v1823_v63, -inf  ;;  %2218 = vst.msk [vmem:[#allocation2 + $0x168] sm:$0xff] %vm462_vm0, %v16824_v58  ;;  %2219 = vst.msk [vmem:[#allocation2 + $0x170] sm:$0xff] %vm462_vm0, %v16824_v58 }
 0x11d   : > { %2221 = vst.msk [vmem:[#allocation2 + $0x180] sm:$0xff] %vm462_vm0, %v16824_v58  ;;  %2222 = vst.msk [vmem:[#allocation2 + $0x188] sm:$0xff] %vm462_vm0, %v16824_v58 }
 0x11e   : > { %2224 = vst.msk [vmem:[#allocation2 + $0x198] sm:$0xff] %vm462_vm0, %v16824_v58  ;;  %2225 = vst.msk [vmem:[#allocation2 + $0x1a0] sm:$0xff] %vm462_vm0, %v16824_v58 }
 0x11f   : > { %v13843_v28 = vpop.f32.mrb[22].mxu0  ;;  %7084 = vst.msk [vmem:[#allocation3] sm:$0xff] %vm462_vm0, %v16824_v58  ;;  %7086 = vst.msk [vmem:[#allocation3 + $0x10] sm:$0xff] %vm462_vm0, %v16824_v58 }
 0x120   : > { %v13845_v29 = vpop.f32.mrb[23].mxu0  ;;  %7088 = vst.msk [vmem:[#allocation3 + $0x20] sm:$0xff] %vm462_vm0, %v16824_v58  ;;  %7090 = vst.msk [vmem:[#allocation3 + $0x30] sm:$0xff] %vm462_vm0, %v16824_v58 }
 0x121   : > { %7092 = vst.msk [vmem:[#allocation3 + $0x40] sm:$0xff] %vm462_vm0, %v16824_v58  ;;  %7094 = vst.msk [vmem:[#allocation3 + $0x50] sm:$0xff] %vm462_vm0, %v16824_v58 }
 0x122   : > { %7096 = vst.msk [vmem:[#allocation3 + $0x60] sm:$0xff] %vm462_vm0, %v16824_v58  ;;  %7098 = vst.msk [vmem:[#allocation3 + $0x70] sm:$0xff] %vm462_vm0, %v16824_v58 }
 0x123   : > { %v13847_v30 = vpop.f32.mrb[24].mxu0  ;;  %7100 = vst.msk [vmem:[#allocation3 + $0x80] sm:$0xff] %vm462_vm0, %v16824_v58  ;;  %7102 = vst.msk [vmem:[#allocation3 + $0x90] sm:$0xff] %vm462_vm0, %v16824_v58 }
 0x124   : > { %v13849_v31 = vpop.f32.mrb[25].mxu0  ;;  %2178 = vst.msk [vmem:[#allocation2 + $0x28] sm:$0x3] %vm2174_vm1, %v16824_v58  ;;  %2175 = vst.msk [vmem:[#allocation2 + $0x10] sm:$0x3] %vm2174_vm1, %v16824_v58 }
 0x125   : > { %2181 = vst.msk [vmem:[#allocation2 + $0x40] sm:$0x3] %vm2174_vm1, %v16824_v58  ;;  %2184 = vst.msk [vmem:[#allocation2 + $0x58] sm:$0x3] %vm2174_vm1, %v16824_v58 }
 0x126   : > { %2187 = vst.msk [vmem:[#allocation2 + $0x70] sm:$0x3] %vm2174_vm1, %v16824_v58  ;;  %2190 = vst.msk [vmem:[#allocation2 + $0x88] sm:$0x3] %vm2174_vm1, %v16824_v58 }
 0x127   : > { %v13856_v33 = vpop.f32.mrb[26].mxu0  ;;  %2193 = vst.msk [vmem:[#allocation2 + $0xa0] sm:$0x3] %vm2174_vm1, %v16824_v58  ;;  %2196 = vst.msk [vmem:[#allocation2 + $0xb8] sm:$0x3] %vm2174_vm1, %v16824_v58 }
 0x128   : > { %v13860_v35 = vpop.f32.mrb[27].mxu0  ;;  %2199 = vst.msk [vmem:[#allocation2 + $0xd0] sm:$0x3] %vm2174_vm1, %v16824_v58  ;;  %2202 = vst.msk [vmem:[#allocation2 + $0xe8] sm:$0x3] %vm2174_vm1, %v16824_v58 }
 0x129   : > { %2205 = vst.msk [vmem:[#allocation2 + $0x100] sm:$0x3] %vm2174_vm1, %v16824_v58  ;;  %2208 = vst.msk [vmem:[#allocation2 + $0x118] sm:$0x3] %vm2174_vm1, %v16824_v58 }
 0x12a   : > { %2211 = vst.msk [vmem:[#allocation2 + $0x130] sm:$0x3] %vm2174_vm1, %v16824_v58  ;;  %2214 = vst.msk [vmem:[#allocation2 + $0x148] sm:$0x3] %vm2174_vm1, %v16824_v58 }
 0x12b   : > { %v13878_v45 = vpop.f32.mrb[28].mxu0  ;;  %2217 = vst.msk [vmem:[#allocation2 + $0x160] sm:$0x3] %vm2174_vm1, %v16824_v58  ;;  %2220 = vst.msk [vmem:[#allocation2 + $0x178] sm:$0x3] %vm2174_vm1, %v16824_v58 }
 0x12c   : > { %v13881_v47 = vpop.f32.mrb[29].mxu0  ;;  %2223 = vst.msk [vmem:[#allocation2 + $0x190] sm:$0x3] %vm2174_vm1, %v16824_v58  ;;  %2226 = vst.msk [vmem:[#allocation2 + $0x1a8] sm:$0x3] %vm2174_vm1, %v16824_v58 }
 0x12d   : > { %7085 = vst.msk [vmem:[#allocation3 + $0x8] sm:$0x3] %vm2174_vm1, %v16824_v58  ;;  %7087 = vst.msk [vmem:[#allocation3 + $0x18] sm:$0x3] %vm2174_vm1, %v16824_v58 }
 0x12e   : > { %7089 = vst.msk [vmem:[#allocation3 + $0x28] sm:$0x3] %vm2174_vm1, %v16824_v58  ;;  %7091 = vst.msk [vmem:[#allocation3 + $0x38] sm:$0x3] %vm2174_vm1, %v16824_v58 }
 0x12f   : > { %v13893_v57 = vpop.f32.mrb[30].mxu0  ;;  %7093 = vst.msk [vmem:[#allocation3 + $0x48] sm:$0x3] %vm2174_vm1, %v16824_v58  ;;  %7095 = vst.msk [vmem:[#allocation3 + $0x58] sm:$0x3] %vm2174_vm1, %v16824_v58 }
 0x130   : > { %v13895_v59 = vpop.f32.mrb[31].mxu0  ;;  %7097 = vst.msk [vmem:[#allocation3 + $0x68] sm:$0x3] %vm2174_vm1, %v16824_v58  ;;  %7099 = vst.msk [vmem:[#allocation3 + $0x78] sm:$0x3] %vm2174_vm1, %v16824_v58 }
 0x131   : > { %7101 = vst.msk [vmem:[#allocation3 + $0x88] sm:$0x3] %vm2174_vm1, %v16824_v58  ;;  %7103 = vst.msk [vmem:[#allocation3 + $0x98] sm:$0x3] %vm2174_vm1, %v16824_v58 }
 0x133   : > { %v11793_v6 = vpop.f32.mrb[32].mxu0 }
 0x134   : > { %v1590_v13 = vmul.f32 %v11793_v6, %v13854_v32  ;;  %v1073_v14 = vpop.f32.mrb[33].mxu0  ;;  %v2330_v6 = vld [vmem:[%s16816_s2 + $0x30] sm:$0xff] }
 0x135   : > { %v1589_v22 = vmul.f32 %v13854_v32, %v1073_v14  ;;  %v12741_v14 = vpack.c.bf16 %v2331_v5, %v2330_v6 }
 0x136   : > { %v1723_v34 = vadd.f32 %v13865_v36, %v1590_v13 }
 0x137   : > { %v13936_v40 = vadd.f32 %v13865_v36, %v1589_v22  ;;  %v11796_v41 = vpop.f32.mrb[34].mxu0  ;;  %v1828_v22 = vmax.f32 %v13942_v43, 0.0  ;;  %12742 = vmatprep.subr.bf16.mxu0 %v12741_v14  ;;  %12960 = vmatprep.subr.bf16.mxu1 %v12741_v14  ;;  %v1572_v43 = vmul.f32 %v13815_v15, %v13854_v32 }
 0x138   : > { %v1851_v44 = vmax.f32 %v1723_v34, 0.0  ;;  %v1592_v46 = vmul.f32 %v11796_v41, %v13854_v32  ;;  %v1083_v48 = vpop.f32.mrb[35].mxu0  ;;  %v1703_v34 = vadd.f32 %v13865_v36, %v13957_v54  ;;  %v1702_v41 = vadd.f32 %v13865_v36, %v1569_v11  ;;  %12744 = vmatpush3.bf16.msra.mxu0 %v12741_v14  ;;  %12962 = vmatpush3.bf16.msra.mxu1 %v12741_v14 }
 0x139   : > { %v1850_v51 = vmax.f32 %v13936_v40, 0.0  ;;  %v1591_v52 = vmul.f32 %v13854_v32, %v1083_v48  ;;  %v1571_v54 = vmul.f32 %v13854_v32, %v13817_v16  ;;  %v14168_v15 = vsel %vm462_vm0, %v1828_v22, -inf }
 0x13a   : > { %v13960_v55 = vsel %vm462_vm0, %v1851_v44, -inf  ;;  %v13963_v56 = vadd.f32 %v13865_v36, %v1592_v46  ;;  %v1830_v6 = vmax.f32 %v1702_v41, 0.0 }
 0x13b   : > { %v14062_v61 = vsel %vm462_vm0, %v1850_v51, -inf  ;;  %v1724_v62 = vadd.f32 %v13865_v36, %v1591_v52  ;;  %v11799_v63 = vpop.f32.mrb[36].mxu0  ;;  %v1704_v41 = vadd.f32 %v13865_v36, %v1571_v54 }
 0x13c   : > { %v1853_v1 = vmax.f32 %v13963_v56, 0.0  ;;  %v1594_v2 = vmul.f32 %v11799_v63, %v13854_v32  ;;  %v1093_v3 = vpop.f32.mrb[37].mxu0  ;;  %v1831_v63 = vmax.f32 %v1703_v34, 0.0 }
 0x13d   : > { %v1852_v10 = vmax.f32 %v1724_v62, 0.0  ;;  %v1593_v13 = vmul.f32 %v13854_v32, %v1093_v3  ;;  %v2296_v62 = vld [vmem:[#allocation2 + $0x1] sm:$0xff]  ;;  %v2297_v3 = vld [vmem:[#allocation2 + $0x9] sm:$0xff] }
 0x13e   : > { %v14146_v39 = vsel %vm462_vm0, %v1853_v1, -inf  ;;  %v1727_v40 = vadd.f32 %v13865_v36, %v1594_v2  ;;  %11943 = vmatprep.mubr.msk.f32.mxu0 %vm462_vm0, %v2296_v62 }
 0x13f   : > { %v14153_v42 = vsel %vm462_vm0, %v1852_v10, -inf  ;;  %v1726_v46 = vadd.f32 %v13865_v36, %v1593_v13  ;;  %v11802_v48 = vpop.f32.mrb[38].mxu0  ;;  %11944 = vmatmul.mubr.msk.f32.vlgmr.msra.gmra.mrb[128].mxu0 %vm462_vm0, %v2297_v3  ;;  %v1705_v13 = vadd.f32 %v13865_v36, %v1572_v43  ;;  %v1573_v43 = vmul.f32 %v13854_v32, %v13825_v20 }
 0x140   : > { %v1855_v50 = vmax.f32 %v1727_v40, 0.0  ;;  %v1596_v51 = vmul.f32 %v11802_v48, %v13854_v32  ;;  %v1103_v52 = vpop.f32.mrb[39].mxu0 }
 0x141   : > { %v1854_v56 = vmax.f32 %v1726_v46, 0.0  ;;  %v1595_v11 = vmul.f32 %v13854_v32, %v1103_v52  ;;  %v1574_v46 = vmul.f32 %v13823_v19, %v13854_v32 }
 0x142   : > { %v14171_v1 = vsel %vm462_vm0, %v1855_v50, -inf  ;;  %v1729_v2 = vadd.f32 %v13865_v36, %v1596_v51  ;;  %v14191_v51 = vsel %vm462_vm0, %v1831_v63, -inf }
 0x143   : > { %v14178_v5 = vsel %vm462_vm0, %v1854_v56, -inf  ;;  %v1728_v4 = vadd.f32 %v13865_v36, %v1595_v11  ;;  %v11805_v10 = vpop.f32.mrb[40].mxu0  ;;  %v14200_v11 = vsel %vm462_vm0, %v1830_v6, -inf  ;;  %v1707_v6 = vadd.f32 %v13865_v36, %v1574_v46 }
 0x144   : > { %v1857_v22 = vmax.f32 %v1729_v2, 0.0  ;;  %v1598_v34 = vmul.f32 %v11805_v10, %v13854_v32  ;;  %v1113_v40 = vpop.f32.mrb[41].mxu0  ;;  %v1833_v2 = vmax.f32 %v1705_v13, 0.0 }
 0x145   : > { %v1856_v48 = vmax.f32 %v1728_v4, 0.0  ;;  %v1597_v50 = vmul.f32 %v13854_v32, %v1113_v40 }
 0x146   : > { %v14196_v52 = vsel %vm462_vm0, %v1857_v22, -inf  ;;  %v1731_v56 = vadd.f32 %v13865_v36, %v1598_v34  ;;  %v1832_v22 = vmax.f32 %v1704_v41, 0.0  ;;  %v1835_v41 = vmax.f32 %v1707_v6, 0.0 }
 0x147   : > { %v14205_v54 = vsel %vm462_vm0, %v1856_v48, -inf  ;;  %v1730_v62 = vadd.f32 %v13865_v36, %v1597_v50  ;;  %v11808_v63 = vpop.f32.mrb[42].mxu0  ;;  %v1706_v48 = vadd.f32 %v13865_v36, %v1573_v43  ;;  %v1576_v50 = vmul.f32 %v13831_v23, %v13854_v32 }
 0x148   : > { %v1859_v3 = vmax.f32 %v1731_v56, 0.0  ;;  %v1600_v4 = vmul.f32 %v11808_v63, %v13854_v32  ;;  %v1123_v10 = vpop.f32.mrb[43].mxu0  ;;  %v1575_v56 = vmul.f32 %v13854_v32, %v13833_v24  ;;  %v14229_v63 = vsel %vm462_vm0, %v1833_v2, -inf }
 0x149   : > { %v1858_v34 = vmax.f32 %v1730_v62, 0.0  ;;  %v1599_v40 = vmul.f32 %v13854_v32, %v1123_v10  ;;  %v14235_v24 = vsel %vm462_vm0, %v1832_v22, -inf  ;;  %v1834_v19 = vmax.f32 %v1706_v48, 0.0 }
 0x14a   : > { %v14217_v13 = vsel %vm462_vm0, %v1859_v3, -inf  ;;  %v1733_v58 = vadd.f32 %v13865_v36, %v1600_v4  ;;  %v1578_v48 = vmul.f32 %v13838_v26, %v13854_v32 }
 0x14b   : > { %v14225_v46 = vsel %vm462_vm0, %v1858_v34, -inf  ;;  %v1732_v62 = vadd.f32 %v13865_v36, %v1599_v40  ;;  %v11811_v43 = vpop.f32.mrb[44].mxu0  ;;  %v1709_v40 = vadd.f32 %v13865_v36, %v1576_v50  ;;  %v14262_v23 = vsel %vm462_vm0, %v1834_v19, -inf }
 0x14c   : > { %v1861_v3 = vmax.f32 %v1733_v58, 0.0  ;;  %v1602_v4 = vmul.f32 %v11811_v43, %v13854_v32  ;;  %v1133_v10 = vpop.f32.mrb[45].mxu0  ;;  %v1708_v58 = vadd.f32 %v13865_v36, %v1575_v56  ;;  %v14256_v56 = vsel %vm462_vm0, %v1835_v41, -inf }
 0x14d   : > { %v1860_v20 = vmax.f32 %v1732_v62, 0.0  ;;  %v1601_v34 = vmul.f32 %v13854_v32, %v1133_v10  ;;  %16911 = vst [vmem:[#allocation8_spill] sm:$0xff] %v14256_v56  ;;  %v1837_v26 = vmax.f32 %v1709_v40, 0.0 }
 0x14e   : > { %v14240_v2 = vsel %vm462_vm0, %v1861_v3, -inf  ;;  %v1735_v14 = vadd.f32 %v13865_v36, %v1602_v4 }
 0x14f   : > { %v14247_v22 = vsel %vm462_vm0, %v1860_v20, -inf  ;;  %v1734_v6 = vadd.f32 %v13865_v36, %v1601_v34  ;;  %v11814_v62 = vpop.f32.mrb[46].mxu0  ;;  %v1577_v20 = vmul.f32 %v13854_v32, %v13840_v27 }
 0x150   : > { %v1863_v3 = vmax.f32 %v1735_v14, 0.0  ;;  %v1604_v4 = vmul.f32 %v11814_v62, %v13854_v32  ;;  %v1143_v10 = vpop.f32.mrb[47].mxu0  ;;  %v1836_v62 = vmax.f32 %v1708_v58, 0.0 }
 0x151   : > { %v1862_v43 = vmax.f32 %v1734_v6, 0.0  ;;  %v1603_v34 = vmul.f32 %v13854_v32, %v1143_v10  ;;  %v1711_v10 = vadd.f32 %v13865_v36, %v1578_v48  ;;  %v1710_v58 = vadd.f32 %v13865_v36, %v1577_v20 }
 0x152   : > { %v14265_v16 = vsel %vm462_vm0, %v1863_v3, -inf  ;;  %v1737_v14 = vadd.f32 %v13865_v36, %v1604_v4  ;;  %v1580_v4 = vmul.f32 %v13843_v28, %v13854_v32  ;;  %v1579_v48 = vmul.f32 %v13854_v32, %v13845_v29 }
 0x153   : > { %v14271_v50 = vsel %vm462_vm0, %v1862_v43, -inf  ;;  %v1736_v27 = vadd.f32 %v13865_v36, %v1603_v34  ;;  %v11817_v6 = vpop.f32.mrb[48].mxu0  ;;  %v14283_v34 = vsel %vm462_vm0, %v1837_v26, -inf  ;;  %v1838_v0 = vmax.f32 %v1710_v58, 0.0 }
 0x154   : > { %v1865_v40 = vmax.f32 %v1737_v14, 0.0  ;;  %v1606_v3 = vmul.f32 %v11817_v6, %v13854_v32  ;;  %v1153_v49 = vpop.f32.mrb[49].mxu0  ;;  %v14292_v6 = vsel %vm462_vm0, %v1836_v62, -inf  ;;  %v1713_v62 = vadd.f32 %v13865_v36, %v1580_v4 }
 0x155   : > { %v1864_v41 = vmax.f32 %v1736_v27, 0.0  ;;  %v1605_v43 = vmul.f32 %v13854_v32, %v1153_v49  ;;  %v1839_v27 = vmax.f32 %v1711_v10, 0.0 }
 0x156   : > { %v14288_v19 = vsel %vm462_vm0, %v1865_v40, -inf  ;;  %v1739_v14 = vadd.f32 %v13865_v36, %v1606_v3  ;;  %v1841_v58 = vmax.f32 %v1713_v62, 0.0 }
 0x157   : > { %v14297_v20 = vsel %vm462_vm0, %v1864_v41, -inf  ;;  %v1738_v49 = vadd.f32 %v13865_v36, %v1605_v43  ;;  %v11820_v26 = vpop.f32.mrb[50].mxu0  ;;  %v1712_v41 = vadd.f32 %v13865_v36, %v1579_v48  ;;  %v1582_v43 = vmul.f32 %v13847_v30, %v13854_v32 }
 0x158   : > { %16912 = vst [vmem:[#allocation9_spill] sm:$0xff] %v14297_v20  ;;  %v1867_v40 = vmax.f32 %v1739_v14, 0.0  ;;  %v1608_v44 = vmul.f32 %v11820_v26, %v13854_v32  ;;  %v1163_v3 = vpop.f32.mrb[51].mxu0  ;;  %v1581_v14 = vmul.f32 %v13854_v32, %v13849_v31  ;;  %v14321_v26 = vsel %vm462_vm0, %v1839_v27, -inf }
 0x159   : > { %v1866_v60 = vmax.f32 %v1738_v49, 0.0  ;;  %v1607_v28 = vmul.f32 %v13854_v32, %v1163_v3  ;;  %v14327_v31 = vsel %vm462_vm0, %v1838_v0, -inf  ;;  %v1840_v56 = vmax.f32 %v1712_v41, 0.0 }
 0x15a   : > { %v14309_v10 = vsel %vm462_vm0, %v1867_v40, -inf  ;;  %v1741_v29 = vadd.f32 %v13865_v36, %v1608_v44  ;;  %16914 = vst [vmem:[#allocation11_spill] sm:$0xff] %v14327_v31  ;;  %v1584_v41 = vmul.f32 %v13856_v33, %v13854_v32 }
 0x15b   : > { %16913 = vst [vmem:[#allocation10_spill] sm:$0xff] %v14309_v10  ;;  %v14317_v4 = vsel %vm462_vm0, %v1866_v60, -inf  ;;  %v1740_v49 = vadd.f32 %v13865_v36, %v1607_v28  ;;  %v11823_v48 = vpop.f32.mrb[52].mxu0  ;;  %v1715_v28 = vadd.f32 %v13865_v36, %v1582_v43  ;;  %v14354_v30 = vsel %vm462_vm0, %v1840_v56, -inf }
 0x15c   : > { %v1869_v40 = vmax.f32 %v1741_v29, 0.0  ;;  %v1610_v44 = vmul.f32 %v11823_v48, %v13854_v32  ;;  %v1173_v3 = vpop.f32.mrb[53].mxu0  ;;  %v1714_v29 = vadd.f32 %v13865_v36, %v1581_v14  ;;  %v14348_v14 = vsel %vm462_vm0, %v1841_v58, -inf }
 0x15d   : > { %v1868_v10 = vmax.f32 %v1740_v49, 0.0  ;;  %v1609_v60 = vmul.f32 %v13854_v32, %v1173_v3  ;;  %v1843_v33 = vmax.f32 %v1715_v28, 0.0 }
 0x15e   : > { %v14332_v27 = vsel %vm462_vm0, %v1869_v40, -inf  ;;  %v1743_v20 = vadd.f32 %v13865_v36, %v1610_v44 }
 0x15f   : > { %16915 = vst [vmem:[#allocation12_spill] sm:$0xff] %v14332_v27  ;;  %v14339_v0 = vsel %vm462_vm0, %v1868_v10, -inf  ;;  %v1742_v62 = vadd.f32 %v13865_v36, %v1609_v60  ;;  %v11826_v49 = vpop.f32.mrb[54].mxu0  ;;  %v1583_v10 = vmul.f32 %v13854_v32, %v13860_v35 }
 0x160   : > { %16916 = vst [vmem:[#allocation13_spill] sm:$0xff] %v14339_v0  ;;  %v1871_v40 = vmax.f32 %v1743_v20, 0.0  ;;  %v1612_v44 = vmul.f32 %v11826_v49, %v13854_v32  ;;  %v1183_v3 = vpop.f32.mrb[55].mxu0  ;;  %v1842_v49 = vmax.f32 %v1714_v29, 0.0 }
 0x161   : > { %v1870_v48 = vmax.f32 %v1742_v62, 0.0  ;;  %v1611_v60 = vmul.f32 %v13854_v32, %v1183_v3  ;;  %v1717_v3 = vadd.f32 %v13865_v36, %v1584_v41  ;;  %v1716_v29 = vadd.f32 %v13865_v36, %v1583_v10 }
 0x162   : > { %v14357_v27 = vsel %vm462_vm0, %v1871_v40, -inf  ;;  %v1745_v20 = vadd.f32 %v13865_v36, %v1612_v44  ;;  %v1586_v44 = vmul.f32 %v13878_v45, %v13854_v32  ;;  %v1585_v41 = vmul.f32 %v13854_v32, %v13881_v47 }
 0x163   : > { %16917 = vst [vmem:[#allocation14_spill] sm:$0xff] %v14357_v27  ;;  %v14363_v43 = vsel %vm462_vm0, %v1870_v48, -inf  ;;  %v1744_v35 = vadd.f32 %v13865_v36, %v1611_v60  ;;  %v11829_v62 = vpop.f32.mrb[56].mxu0  ;;  %v14375_v60 = vsel %vm462_vm0, %v1843_v33, -inf  ;;  %v1844_v31 = vmax.f32 %v1716_v29, 0.0 }
 0x164   : > { %16918 = vst [vmem:[#allocation15_spill] sm:$0xff] %v14363_v43  ;;  %v1873_v28 = vmax.f32 %v1745_v20, 0.0  ;;  %v1614_v40 = vmul.f32 %v11829_v62, %v13854_v32  ;;  %v1193_v0 = vpop.f32.mrb[57].mxu0  ;;  %16919 = vst [vmem:[#allocation16_spill] sm:$0xff] %v14375_v60  ;;  %v14384_v62 = vsel %vm462_vm0, %v1842_v49, -inf  ;;  %v1719_v49 = vadd.f32 %v13865_v36, %v1586_v44 }
 0x165   : > { %v1872_v58 = vmax.f32 %v1744_v35, 0.0  ;;  %v1613_v48 = vmul.f32 %v13854_v32, %v1193_v0  ;;  %v1845_v35 = vmax.f32 %v1717_v3, 0.0 }
 0x166   : > { %v14380_v56 = vsel %vm462_vm0, %v1873_v28, -inf  ;;  %v1747_v20 = vadd.f32 %v13865_v36, %v1614_v40  ;;  %v1847_v29 = vmax.f32 %v1719_v49, 0.0 }
 0x167   : > { %v14389_v10 = vsel %vm462_vm0, %v1872_v58, -inf  ;;  %v1746_v0 = vadd.f32 %v13865_v36, %v1613_v48  ;;  %v11832_v33 = vpop.f32.mrb[58].mxu0  ;;  %v1718_v58 = vadd.f32 %v13865_v36, %v1585_v41  ;;  %v1588_v48 = vmul.f32 %v13893_v57, %v13854_v32 }
 0x168   : > { %16920 = vst [vmem:[#allocation17_spill] sm:$0xff] %v14389_v10  ;;  %v1875_v28 = vmax.f32 %v1747_v20, 0.0  ;;  %v1616_v43 = vmul.f32 %v11832_v33, %v13854_v32  ;;  %v1203_v40 = vpop.f32.mrb[59].mxu0  ;;  %v1587_v20 = vmul.f32 %v13854_v32, %v13895_v59  ;;  %v14413_v33 = vsel %vm462_vm0, %v1845_v35, -inf }
 0x169   : > { %v1874_v27 = vmax.f32 %v1746_v0, 0.0  ;;  %v1615_v45 = vmul.f32 %v13854_v32, %v1203_v40  ;;  %v14419_v59 = vsel %vm462_vm0, %v1844_v31, -inf  ;;  %v1846_v60 = vmax.f32 %v1718_v58, 0.0 }
 0x16a   : > { %v14401_v3 = vsel %vm462_vm0, %v1875_v28, -inf  ;;  %v1749_v47 = vadd.f32 %v13865_v36, %v1616_v43 }
 0x16b   : > { %16921 = vst [vmem:[#allocation18_spill] sm:$0xff] %v14401_v3  ;;  %v14409_v44 = vsel %vm462_vm0, %v1874_v27, -inf  ;;  %v1748_v0 = vadd.f32 %v13865_v36, %v1615_v45  ;;  %v11835_v41 = vpop.f32.mrb[60].mxu0  ;;  %v1721_v45 = vadd.f32 %v13865_v36, %v1588_v48 }
 0x16c   : > { %v1877_v28 = vmax.f32 %v1749_v47, 0.0  ;;  %v1618_v43 = vmul.f32 %v11835_v41, %v13854_v32  ;;  %v1213_v40 = vpop.f32.mrb[61].mxu0  ;;  %v1720_v47 = vadd.f32 %v13865_v36, %v1587_v20  ;;  %v14442_v41 = vsel %vm462_vm0, %v1846_v60, -inf }
 0x16d   : > { %v1876_v3 = vmax.f32 %v1748_v0, 0.0  ;;  %v1617_v27 = vmul.f32 %v13854_v32, %v1213_v40 }
 0x16e   : > { %v14424_v35 = vsel %vm462_vm0, %v1877_v28, -inf  ;;  %v1751_v10 = vadd.f32 %v13865_v36, %v1618_v43  ;;  %v14438_v43 = vsel %vm462_vm0, %v1847_v29, -inf  ;;  %v1848_v58 = vmax.f32 %v1720_v47, 0.0 }
 0x16f   : > { %16922 = vst [vmem:[#allocation19_spill] sm:$0xff] %v14424_v35  ;;  %v14431_v31 = vsel %vm462_vm0, %v1876_v3, -inf  ;;  %v1750_v49 = vadd.f32 %v13865_v36, %v1617_v27  ;;  %v11838_v0 = vpop.f32.mrb[62].mxu0  ;;  %v1849_v3 = vmax.f32 %v1721_v45, 0.0 }
 0x170   : > { %16923 = vst [vmem:[#allocation20_spill] sm:$0xff] %v14431_v31  ;;  %v1879_v48 = vmax.f32 %v1751_v10, 0.0  ;;  %v1620_v28 = vmul.f32 %v11838_v0, %v13854_v32  ;;  %v1223_v40 = vpop.f32.mrb[63].mxu0 }
 0x171   : > { %v1878_v20 = vmax.f32 %v1750_v49, 0.0  ;;  %v1619_v57 = vmul.f32 %v13854_v32, %v1223_v40  ;;  %v14459_v47 = vsel %vm462_vm0, %v1849_v3, -inf }
 0x172   : > { %v14445_v27 = vsel %vm462_vm0, %v1879_v48, -inf  ;;  %v1753_v35 = vadd.f32 %v13865_v36, %v1620_v28  ;;  %16925 = vst [vmem:[#allocation22_spill] sm:$0xff] %v14459_v47 }
 0x173   : > { %v14451_v0 = vsel %vm462_vm0, %v1878_v20, -inf  ;;  %v1752_v29 = vadd.f32 %v13865_v36, %v1619_v57  ;;  %v11841_v49 = vpop.f32.mrb[64].mxu0  ;;  %v14466_v57 = vsel %vm462_vm0, %v1848_v58, -inf  ;;  %v2292_v58 = vld [vmem:[%s16816_s2] sm:$0xff] }
 0x174   : > { %16924 = vst [vmem:[#allocation21_spill] sm:$0xff] %v14451_v0  ;;  %v1881_v40 = vmax.f32 %v1753_v35, 0.0  ;;  %v1622_v45 = vmul.f32 %v11841_v49, %v13854_v32  ;;  %v1233_v48 = vpop.f32.mrb[65].mxu0  ;;  %16927 = vst [vmem:[#allocation24_spill] sm:$0xff] %v14466_v57 }
 0x175   : > { %v1880_v31 = vmax.f32 %v1752_v29, 0.0  ;;  %v1621_v28 = vmul.f32 %v13854_v32, %v1233_v48 }
 0x176   : > { %v14462_v10 = vsel %vm462_vm0, %v1881_v40, -inf  ;;  %v1755_v20 = vadd.f32 %v13865_v36, %v1622_v45  ;;  %v2293_v45 = vld [vmem:[%s16816_s2 + $0x8] sm:$0xff] }
 0x177   : > { %16926 = vst [vmem:[#allocation23_spill] sm:$0xff] %v14462_v10  ;;  %v14471_v49 = vsel %vm462_vm0, %v1880_v31, -inf  ;;  %v1754_v29 = vadd.f32 %v13865_v36, %v1621_v28  ;;  %v11844_v48 = vpop.f32.mrb[66].mxu0  ;;  %v14484_v28 = vpack.c.bf16 %v2293_v45, %v2292_v58 }
 0x178   : > { %16928 = vst [vmem:[#allocation25_spill] sm:$0xff] %v14471_v49  ;;  %v1883_v60 = vmax.f32 %v1755_v20, 0.0  ;;  %v1624_v40 = vmul.f32 %v11844_v48, %v13854_v32  ;;  %v1243_v0 = vpop.f32.mrb[67].mxu0  ;;  %v16929_v48 = vmax.f32 %v13901_v9, %v13960_v55 }
 0x179   : > { %v1882_v31 = vmax.f32 %v1754_v29, 0.0  ;;  %v1623_v35 = vmul.f32 %v13854_v32, %v1243_v0  ;;  %12746 = vmatprep.subr.bf16.mxu1 %v14484_v28  ;;  %v16930_v0 = vmax.f32 %v13909_v17, %v14062_v61 }
 0x17a   : > { %v1956_v10 = vsel %vm462_vm0, %v1883_v60, -inf  ;;  %v1757_v20 = vadd.f32 %v13865_v36, %v1624_v40 }
 0x17b   : > { %v14491_v3 = vmax.f32 %v16929_v48, %v1956_v10  ;;  %v1949_v49 = vsel %vm462_vm0, %v1882_v31, -inf  ;;  %v1756_v57 = vadd.f32 %v13865_v36, %v1623_v35  ;;  %v11847_v47 = vpop.f32.mrb[68].mxu0  ;;  %v16931_v35 = vmax.f32 %v13912_v18, %v14146_v39 }
 0x17c   : > { %v14499_v29 = vmax.f32 %v16930_v0, %v1949_v49  ;;  %v1885_v60 = vmax.f32 %v1757_v20, 0.0  ;;  %v1626_v40 = vmul.f32 %v11847_v47, %v13854_v32  ;;  %v1253_v58 = vpop.f32.mrb[69].mxu0  ;;  %v16932_v47 = vmax.f32 %v13915_v21, %v14153_v42 }
 0x17d   : > { %v1884_v45 = vmax.f32 %v1756_v57, 0.0  ;;  %v1625_v9 = vmul.f32 %v13854_v32, %v1253_v58  ;;  %v16933_v58 = vmax.f32 %v13919_v25, %v14171_v1 }
 0x17e   : > { %v1970_v55 = vsel %vm462_vm0, %v1885_v60, -inf  ;;  %v1759_v10 = vadd.f32 %v13865_v36, %v1626_v40 }
 0x17f   : > { %v14508_v31 = vmax.f32 %v16931_v35, %v1970_v55  ;;  %v1963_v17 = vsel %vm462_vm0, %v1884_v45, -inf  ;;  %v1758_v61 = vadd.f32 %v13865_v36, %v1625_v9  ;;  %v11850_v49 = vpop.f32.mrb[70].mxu0  ;;  %v16934_v55 = vmax.f32 %v13922_v7, %v14178_v5 }
 0x180   : > { %v14515_v57 = vmax.f32 %v16932_v47, %v1963_v17  ;;  %v1887_v20 = vmax.f32 %v1759_v10, 0.0  ;;  %v1628_v48 = vmul.f32 %v11850_v49, %v13854_v32  ;;  %v1263_v0 = vpop.f32.mrb[71].mxu0 }
 0x181   : > { %v1886_v60 = vmax.f32 %v1758_v61, 0.0  ;;  %v1627_v40 = vmul.f32 %v13854_v32, %v1263_v0 }
 0x182   : > { %v1984_v18 = vsel %vm462_vm0, %v1887_v20, -inf  ;;  %v1761_v39 = vadd.f32 %v13865_v36, %v1628_v48  ;;  %v16935_v20 = vmax.f32 %v13925_v8, %v14196_v52 }
 0x183   : > { %v14524_v45 = vmax.f32 %v16933_v58, %v1984_v18  ;;  %v1977_v21 = vsel %vm462_vm0, %v1886_v60, -inf  ;;  %v1760_v42 = vadd.f32 %v13865_v36, %v1627_v40  ;;  %v11853_v9 = vpop.f32.mrb[72].mxu0  ;;  %v16936_v60 = vmax.f32 %v13929_v37, %v14205_v54 }
 0x184   : > { %v14531_v10 = vmax.f32 %v16934_v55, %v1977_v21  ;;  %v1889_v35 = vmax.f32 %v1761_v39, 0.0  ;;  %v1630_v17 = vmul.f32 %v11853_v9, %v13854_v32  ;;  %v1273_v61 = vpop.f32.mrb[73].mxu0  ;;  %v16937_v9 = vmax.f32 %v13932_v38, %v14217_v13 }
 0x185   : > { %v1888_v49 = vmax.f32 %v1760_v42, 0.0  ;;  %v1629_v47 = vmul.f32 %v13854_v32, %v1273_v61 }
 0x186   : > { %v1998_v25 = vsel %vm462_vm0, %v1889_v35, -inf  ;;  %v1763_v1 = vadd.f32 %v13865_v36, %v1630_v17  ;;  %v16938_v17 = vmax.f32 %v14126_v12, %v14225_v46 }
 0x187   : > { %v14540_v48 = vmax.f32 %v16935_v20, %v1998_v25  ;;  %v1991_v7 = vsel %vm462_vm0, %v1888_v49, -inf  ;;  %v1762_v5 = vadd.f32 %v13865_v36, %v1629_v47  ;;  %v11856_v0 = vpop.f32.mrb[74].mxu0 }
 0x188   : > { %v14547_v40 = vmax.f32 %v16936_v60, %v1991_v7  ;;  %v1891_v18 = vmax.f32 %v1763_v1, 0.0  ;;  %v1632_v39 = vmul.f32 %v11856_v0, %v13854_v32  ;;  %v1283_v58 = vpop.f32.mrb[75].mxu0  ;;  %v16939_v7 = vmax.f32 %v14162_v53, %v14240_v2 }
 0x189   : > { %v1890_v21 = vmax.f32 %v1762_v5, 0.0  ;;  %v1631_v42 = vmul.f32 %v13854_v32, %v1283_v58  ;;  %v16940_v60 = vmax.f32 %v14168_v15, %v14247_v22 }
 0x18a   : > { %v2012_v8 = vsel %vm462_vm0, %v1891_v18, -inf  ;;  %v1765_v52 = vadd.f32 %v13865_v36, %v1632_v39 }
 0x18b   : > { %v14556_v55 = vmax.f32 %v16937_v9, %v2012_v8  ;;  %v2005_v37 = vsel %vm462_vm0, %v1890_v21, -inf  ;;  %v1764_v54 = vadd.f32 %v13865_v36, %v1631_v42  ;;  %v11859_v35 = vpop.f32.mrb[76].mxu0 }
 0x18c   : > { %v14563_v61 = vmax.f32 %v16938_v17, %v2005_v37  ;;  %v1893_v49 = vmax.f32 %v1765_v52, 0.0  ;;  %v1634_v47 = vmul.f32 %v11859_v35, %v13854_v32  ;;  %v1293_v25 = vpop.f32.mrb[77].mxu0  ;;  %v16941_v52 = vmax.f32 %v14191_v51, %v14265_v16  ;;  %v14600_v17 = vld [vmem:[%s16819_s5] ss:$0 sm:$0xff] }
 0x18d   : > { %v1892_v1 = vmax.f32 %v1764_v54, 0.0  ;;  %v1633_v20 = vmul.f32 %v13854_v32, %v1293_v25  ;;  %v16942_v54 = vmax.f32 %v14200_v11, %v14271_v50  ;;  %v14608_v11 = vld [vmem:[%s16820_s6] ss:$0 sm:$0xff]  ;;  %v16943_v25 = vmax.f32 %v14229_v63, %v14288_v19 }
 0x18e   : > { %v2026_v38 = vsel %vm462_vm0, %v1893_v49, -inf  ;;  %v1767_v13 = vadd.f32 %v13865_v36, %v1634_v47 }
 0x18f   : > { %v14572_v5 = vmax.f32 %v16939_v7, %v2026_v38  ;;  %v2019_v12 = vsel %vm462_vm0, %v1892_v1, -inf  ;;  %v1766_v46 = vadd.f32 %v13865_v36, %v1633_v20  ;;  %v11862_v0 = vpop.f32.mrb[78].mxu0  ;;  %v16944_v7 = vld [vmem:[#allocation9_spill] sm:$0xff] }
 0x190   : > { %v14579_v18 = vmax.f32 %v16940_v60, %v2019_v12  ;;  %v1895_v39 = vmax.f32 %v1767_v13, 0.0  ;;  %v1636_v58 = vmul.f32 %v11862_v0, %v13854_v32  ;;  %v1303_v21 = vpop.f32.mrb[79].mxu0  ;;  %v16945_v12 = vmax.f32 %v14235_v24, %v16944_v7 }
 0x191   : > { %v1894_v42 = vmax.f32 %v1766_v46, 0.0  ;;  %v1635_v8 = vmul.f32 %v13854_v32, %v1303_v21 }
 0x192   : > { %v2040_v53 = vsel %vm462_vm0, %v1895_v39, -inf  ;;  %v1769_v2 = vadd.f32 %v13865_v36, %v1636_v58 }
 0x193   : > { %v14588_v9 = vmax.f32 %v16941_v52, %v2040_v53  ;;  %v2033_v15 = vsel %vm462_vm0, %v1894_v42, -inf  ;;  %v1768_v22 = vadd.f32 %v13865_v36, %v1635_v8  ;;  %v11865_v37 = vpop.f32.mrb[80].mxu0  ;;  %v16946_v42 = vld [vmem:[#allocation8_spill] sm:$0xff]  ;;  %v16947_v8 = vld [vmem:[#allocation10_spill] sm:$0xff] }
 0x194   : > { %v14595_v35 = vmax.f32 %v16942_v54, %v2033_v15  ;;  %v1897_v32 = vmax.f32 %v1769_v2, 0.0  ;;  %v1638_v16 = vmul.f32 %v14600_v17, %v11865_v37  ;;  %v1313_v51 = vpop.f32.mrb[81].mxu0  ;;  %v16948_v53 = vmax.f32 %v16946_v42, %v16947_v8 }
 0x195   : > { %v1896_v49 = vmax.f32 %v1768_v22, 0.0  ;;  %v1637_v47 = vmul.f32 %v14600_v17, %v1313_v51  ;;  %v16949_v22 = vmax.f32 %v14262_v23, %v14317_v4 }
 0x196   : > { %v2054_v36 = vsel %vm462_vm0, %v1897_v32, -inf  ;;  %v1771_v50 = vadd.f32 %v14608_v11, %v1638_v16 }
 0x197   : > { %v14614_v1 = vmax.f32 %v16943_v25, %v2054_v36  ;;  %v2047_v20 = vsel %vm462_vm0, %v1896_v49, -inf  ;;  %v1770_v38 = vadd.f32 %v14608_v11, %v1637_v47  ;;  %v11868_v13 = vpop.f32.mrb[82].mxu0 }
 0x198   : > { %v14621_v46 = vmax.f32 %v16945_v12, %v2047_v20  ;;  %v1899_v0 = vmax.f32 %v1771_v50, 0.0  ;;  %v1640_v60 = vmul.f32 %v14600_v17, %v11868_v13  ;;  %v1323_v39 = vpop.f32.mrb[83].mxu0  ;;  %v16950_v50 = vld [vmem:[#allocation12_spill] sm:$0xff]  ;;  %v16952_v13 = vld [vmem:[#allocation13_spill] sm:$0xff] }
 0x199   : > { %v1898_v58 = vmax.f32 %v1770_v38, 0.0  ;;  %v1639_v21 = vmul.f32 %v14600_v17, %v1323_v39  ;;  %v16951_v25 = vmax.f32 %v14283_v34, %v16950_v50  ;;  %v16953_v7 = vmax.f32 %v14292_v6, %v16952_v13  ;;  %v16960_v13 = vld [vmem:[#allocation17_spill] sm:$0xff] }
 0x19a   : > { %v2068_v63 = vsel %vm462_vm0, %v1899_v0, -inf  ;;  %v1773_v19 = vadd.f32 %v14608_v11, %v1640_v60  ;;  %v16959_v50 = vmax.f32 %v14348_v14, %v14380_v56 }
 0x19b   : > { %v14630_v2 = vmax.f32 %v16948_v53, %v2068_v63  ;;  %v2061_v24 = vsel %vm462_vm0, %v1898_v58, -inf  ;;  %v1772_v52 = vadd.f32 %v14608_v11, %v1639_v21  ;;  %v11871_v15 = vpop.f32.mrb[84].mxu0 }
 0x19c   : > { %v14637_v37 = vmax.f32 %v16949_v22, %v2061_v24  ;;  %v1901_v54 = vmax.f32 %v1773_v19, 0.0  ;;  %v1642_v32 = vmul.f32 %v14600_v17, %v11871_v15  ;;  %v1333_v16 = vpop.f32.mrb[85].mxu0  ;;  %v16954_v19 = vld [vmem:[#allocation14_spill] sm:$0xff]  ;;  %v16957_v15 = vld [vmem:[#allocation15_spill] sm:$0xff] }
 0x19d   : > { %v1900_v51 = vmax.f32 %v1772_v52, 0.0  ;;  %v1641_v49 = vmul.f32 %v14600_v17, %v1333_v16  ;;  %v16955_v42 = vmax.f32 %v14321_v26, %v16954_v19  ;;  %v16956_v52 = vld [vmem:[#allocation11_spill] sm:$0xff]  ;;  %v16963_v19 = vld [vmem:[#allocation18_spill] sm:$0xff] }
 0x19e   : > { %v2082_v47 = vsel %vm462_vm0, %v1901_v54, -inf  ;;  %v1775_v36 = vadd.f32 %v14608_v11, %v1642_v32  ;;  %v16958_v22 = vmax.f32 %v16956_v52, %v16957_v15  ;;  %v16965_v52 = vmax.f32 %v14384_v62, %v14409_v44 }
 0x19f   : > { %v14646_v20 = vmax.f32 %v16951_v25, %v2082_v47  ;;  %v2075_v23 = vsel %vm462_vm0, %v1900_v51, -inf  ;;  %v1774_v4 = vadd.f32 %v14608_v11, %v1641_v49  ;;  %v11874_v38 = vpop.f32.mrb[86].mxu0 }
 0x1a0   : > { %v14653_v12 = vmax.f32 %v16953_v7, %v2075_v23  ;;  %v1903_v0 = vmax.f32 %v1775_v36, 0.0  ;;  %v1644_v60 = vmul.f32 %v14600_v17, %v11874_v38  ;;  %v1343_v39 = vpop.f32.mrb[87].mxu0  ;;  %v16961_v7 = vmax.f32 %v14354_v30, %v16960_v13 }
 0x1a1   : > { %v1902_v58 = vmax.f32 %v1774_v4, 0.0  ;;  %v1643_v21 = vmul.f32 %v14600_v17, %v1343_v39 }
 0x1a2   : > { %v2096_v34 = vsel %vm462_vm0, %v1903_v0, -inf  ;;  %v1777_v63 = vadd.f32 %v14608_v11, %v1644_v60 }
 0x1a3   : > { %v14662_v8 = vmax.f32 %v16955_v42, %v2096_v34  ;;  %v2089_v6 = vsel %vm462_vm0, %v1902_v58, -inf  ;;  %v1776_v53 = vadd.f32 %v14608_v11, %v1643_v21  ;;  %v11877_v24 = vpop.f32.mrb[88].mxu0 }
 0x1a4   : > { %v14669_v54 = vmax.f32 %v16958_v22, %v2089_v6  ;;  %v1905_v32 = vmax.f32 %v1777_v63, 0.0  ;;  %v1646_v16 = vmul.f32 %v14600_v17, %v11877_v24  ;;  %v1353_v51 = vpop.f32.mrb[89].mxu0  ;;  %v16962_v63 = vld [vmem:[#allocation16_spill] sm:$0xff] }
 0x1a5   : > { %v1904_v49 = vmax.f32 %v1776_v53, 0.0  ;;  %v1645_v47 = vmul.f32 %v14600_v17, %v1353_v51  ;;  %v16964_v42 = vmax.f32 %v16962_v63, %v16963_v19 }
 0x1a6   : > { %v2110_v26 = vsel %vm462_vm0, %v1905_v32, -inf  ;;  %v1779_v36 = vadd.f32 %v14608_v11, %v1646_v16 }
 0x1a7   : > { %v14678_v25 = vmax.f32 %v16959_v50, %v2110_v26  ;;  %v2103_v23 = vsel %vm462_vm0, %v1904_v49, -inf  ;;  %v1778_v4 = vadd.f32 %v14608_v11, %v1645_v47  ;;  %v11880_v38 = vpop.f32.mrb[90].mxu0 }
 0x1a8   : > { %v14685_v0 = vmax.f32 %v16961_v7, %v2103_v23  ;;  %v1907_v60 = vmax.f32 %v1779_v36, 0.0  ;;  %v1648_v39 = vmul.f32 %v14600_v17, %v11880_v38  ;;  %v1363_v58 = vpop.f32.mrb[91].mxu0  ;;  %v16966_v36 = vld [vmem:[#allocation19_spill] sm:$0xff]  ;;  %v16968_v38 = vld [vmem:[#allocation20_spill] sm:$0xff] }
 0x1a9   : > { %v1906_v21 = vmax.f32 %v1778_v4, 0.0  ;;  %v1647_v34 = vmul.f32 %v14600_v17, %v1363_v58  ;;  %v16967_v50 = vmax.f32 %v14413_v33, %v16966_v36  ;;  %v16969_v13 = vmax.f32 %v14419_v59, %v16968_v38 }
 0x1aa   : > { %v2124_v14 = vsel %vm462_vm0, %v1907_v60, -inf  ;;  %v1781_v56 = vadd.f32 %v14608_v11, %v1648_v39 }
 0x1ab   : > { %v14694_v6 = vmax.f32 %v16964_v42, %v2124_v14  ;;  %v2117_v30 = vsel %vm462_vm0, %v1906_v21, -inf  ;;  %v1780_v53 = vadd.f32 %v14608_v11, %v1647_v34  ;;  %v11883_v24 = vpop.f32.mrb[92].mxu0 }
 0x1ac   : > { %v14701_v15 = vmax.f32 %v16965_v52, %v2117_v30  ;;  %v1909_v22 = vmax.f32 %v1781_v56, 0.0  ;;  %v1650_v32 = vmul.f32 %v14600_v17, %v11883_v24  ;;  %v1373_v16 = vpop.f32.mrb[93].mxu0  ;;  %v16970_v56 = vmax.f32 %v14438_v43, %v14445_v27  ;;  %v16971_v30 = vld [vmem:[#allocation21_spill] sm:$0xff] }
 0x1ad   : > { %v1908_v51 = vmax.f32 %v1780_v53, 0.0  ;;  %v1649_v49 = vmul.f32 %v14600_v17, %v1373_v16  ;;  %v16972_v53 = vmax.f32 %v14442_v41, %v16971_v30 }
 0x1ae   : > { %v2138_v47 = vsel %vm462_vm0, %v1909_v22, -inf  ;;  %v1783_v26 = vadd.f32 %v14608_v11, %v1650_v32 }
 0x1af   : > { %v14710_v23 = vmax.f32 %v16967_v50, %v2138_v47  ;;  %v2131_v62 = vsel %vm462_vm0, %v1908_v51, -inf  ;;  %v1782_v44 = vadd.f32 %v14608_v11, %v1649_v49  ;;  %v11886_v4 = vpop.f32.mrb[94].mxu0  ;;  %v16973_v49 = vld [vmem:[#allocation22_spill] sm:$0xff]  ;;  %v16974_v47 = vld [vmem:[#allocation23_spill] sm:$0xff] }
 0x1b0   : > { %v14717_v7 = vmax.f32 %v16969_v13, %v2131_v62  ;;  %v1911_v60 = vmax.f32 %v1783_v26, 0.0  ;;  %v1652_v39 = vmul.f32 %v14600_v17, %v11886_v4  ;;  %v1383_v58 = vpop.f32.mrb[95].mxu0  ;;  %v16975_v26 = vmax.f32 %v16973_v49, %v16974_v47  ;;  %v16977_v4 = vld [vmem:[#allocation25_spill] sm:$0xff] }
 0x1b1   : > { %v1910_v21 = vmax.f32 %v1782_v44, 0.0  ;;  %v1651_v34 = vmul.f32 %v14600_v17, %v1383_v58  ;;  %v16976_v44 = vld [vmem:[#allocation24_spill] sm:$0xff] }
 0x1b2   : > { %v2152_v33 = vsel %vm462_vm0, %v1911_v60, -inf  ;;  %v1785_v14 = vadd.f32 %v14608_v11, %v1652_v39  ;;  %v16978_v38 = vmax.f32 %v16976_v44, %v16977_v4 }
 0x1b3   : > { %v14726_v63 = vmax.f32 %v16970_v56, %v2152_v33  ;;  %v2145_v59 = vsel %vm462_vm0, %v1910_v21, -inf  ;;  %v1784_v19 = vadd.f32 %v14608_v11, %v1651_v34  ;;  %v11889_v42 = vpop.f32.mrb[96].mxu0 }
 0x1b4   : > { %v14733_v24 = vmax.f32 %v16972_v53, %v2145_v59  ;;  %v1913_v52 = vmax.f32 %v1785_v14, 0.0  ;;  %v1654_v22 = vmul.f32 %v14600_v17, %v11889_v42  ;;  %v1393_v32 = vpop.f32.mrb[97].mxu0 }
 0x1b5   : > { %v1912_v16 = vmax.f32 %v1784_v19, 0.0  ;;  %v1653_v51 = vmul.f32 %v14600_v17, %v1393_v32 }
 0x1b6   : > { %v2166_v43 = vsel %vm462_vm0, %v1913_v52, -inf  ;;  %v1787_v27 = vadd.f32 %v14608_v11, %v1654_v22 }
 0x1b7   : > { %v14742_v36 = vmax.f32 %v16975_v26, %v2166_v43  ;;  %v2159_v41 = vsel %vm462_vm0, %v1912_v16, -inf  ;;  %v1786_v50 = vadd.f32 %v14608_v11, %v1653_v51  ;;  %v11892_v62 = vpop.f32.mrb[98].mxu0 }
 0x1b8   : > { %v14749_v13 = vmax.f32 %v16978_v38, %v2159_v41  ;;  %v1915_v60 = vmax.f32 %v1787_v27, 0.0  ;;  %v1656_v39 = vmul.f32 %v14600_v17, %v11892_v62  ;;  %v1403_v58 = vpop.f32.mrb[99].mxu0 }
 0x1b9   : > { %v1914_v21 = vmax.f32 %v1786_v50, 0.0  ;;  %v1655_v34 = vmul.f32 %v14600_v17, %v1403_v58 }
 0x1ba   : > { %v1958_v33 = vsel %vm462_vm0, %v1915_v60, -inf  ;;  %v1789_v14 = vadd.f32 %v14608_v11, %v1656_v39 }
 0x1bb   : > { %v1959_v56 = vmax.f32 %v14491_v3, %v1958_v33  ;;  %v1951_v59 = vsel %vm462_vm0, %v1914_v21, -inf  ;;  %v1788_v19 = vadd.f32 %v14608_v11, %v1655_v34  ;;  %v11895_v42 = vpop.f32.mrb[100].mxu0 }
 0x1bc   : > { %v1952_v30 = vmax.f32 %v14499_v29, %v1951_v59  ;;  %v1917_v53 = vmax.f32 %v1789_v14, 0.0  ;;  %v1658_v52 = vmul.f32 %v14600_v17, %v11895_v42  ;;  %v1413_v22 = vpop.f32.mrb[101].mxu0 }
 0x1bd   : > { %2229 = vst.msk [vmem:[#allocation2 + $0x21] sm:$0xff] %vm462_vm0, %v1959_v56  ;;  %v1916_v32 = vmax.f32 %v1788_v19, 0.0  ;;  %v1657_v16 = vmul.f32 %v14600_v17, %v1413_v22 }
 0x1be   : > { %2228 = vst.msk [vmem:[#allocation2 + $0x19] sm:$0xff] %vm462_vm0, %v1952_v30  ;;  %v1972_v3 = vsel %vm462_vm0, %v1917_v53, -inf  ;;  %v1791_v51 = vadd.f32 %v14608_v11, %v1658_v52 }
 0x1bf   : > { %v1973_v43 = vmax.f32 %v14508_v31, %v1972_v3  ;;  %v1965_v27 = vsel %vm462_vm0, %v1916_v32, -inf  ;;  %v1790_v29 = vadd.f32 %v14608_v11, %v1657_v16  ;;  %v11898_v49 = vpop.f32.mrb[102].mxu0 }
 0x1c0   : > { %v1966_v47 = vmax.f32 %v14515_v57, %v1965_v27  ;;  %v1919_v26 = vmax.f32 %v1791_v51, 0.0  ;;  %v1660_v41 = vmul.f32 %v14600_v17, %v11898_v49  ;;  %v1423_v50 = vpop.f32.mrb[103].mxu0 }
 0x1c1   : > { %2231 = vst.msk [vmem:[#allocation2 + $0x39] sm:$0xff] %vm462_vm0, %v1973_v43  ;;  %v1918_v62 = vmax.f32 %v1790_v29, 0.0  ;;  %v1659_v44 = vmul.f32 %v14600_v17, %v1423_v50 }
 0x1c2   : > { %2230 = vst.msk [vmem:[#allocation2 + $0x31] sm:$0xff] %vm462_vm0, %v1966_v47  ;;  %v1986_v31 = vsel %vm462_vm0, %v1919_v26, -inf  ;;  %v1793_v4 = vadd.f32 %v14608_v11, %v1660_v41 }
 0x1c3   : > { %v1987_v38 = vmax.f32 %v14524_v45, %v1986_v31  ;;  %v1979_v60 = vsel %vm462_vm0, %v1918_v62, -inf  ;;  %v1792_v57 = vadd.f32 %v14608_v11, %v1659_v44  ;;  %v11901_v39 = vpop.f32.mrb[104].mxu0 }
 0x1c4   : > { %v1980_v58 = vmax.f32 %v14531_v10, %v1979_v60  ;;  %v1921_v21 = vmax.f32 %v1793_v4, 0.0  ;;  %v1662_v34 = vmul.f32 %v14600_v17, %v11901_v39  ;;  %v1433_v33 = vpop.f32.mrb[105].mxu0  ;;  %v14789_v10 = vld [vmem:[#allocation2 + $0x21] sm:$0xff] }
 0x1c5   : > { %2233 = vst.msk [vmem:[#allocation2 + $0x51] sm:$0xff] %vm462_vm0, %v1987_v38  ;;  %v1920_v14 = vmax.f32 %v1792_v57, 0.0  ;;  %v1661_v56 = vmul.f32 %v14600_v17, %v1433_v33  ;;  %v14782_v59 = vld [vmem:[#allocation2 + $0x19] sm:$0xff] }
 0x1c6   : > { %2232 = vst.msk [vmem:[#allocation2 + $0x49] sm:$0xff] %vm462_vm0, %v1980_v58  ;;  %v2000_v45 = vsel %vm462_vm0, %v1921_v21, -inf  ;;  %v1795_v19 = vadd.f32 %v14608_v11, %v1662_v34  ;;  %11946 = vmatprep.mubr.msk.f32.mxu0 %vm462_vm0, %v14782_v59 }
 0x1c7   : > { %v2001_v42 = vmax.f32 %v14540_v48, %v2000_v45  ;;  %v1993_v30 = vsel %vm462_vm0, %v1920_v14, -inf  ;;  %v1794_v53 = vadd.f32 %v14608_v11, %v1661_v56  ;;  %v11904_v52 = vpop.f32.mrb[106].mxu0  ;;  %11947 = vmatmul.mubr.msk.f32.gmra.mrb[130].mxu0 %vm462_vm0, %v14789_v10 }
 0x1c8   : > { %v1994_v22 = vmax.f32 %v14547_v40, %v1993_v30  ;;  %v1923_v32 = vmax.f32 %v1795_v19, 0.0  ;;  %v1664_v16 = vmul.f32 %v14600_v17, %v11904_v52  ;;  %v1443_v3 = vpop.f32.mrb[107].mxu0  ;;  %v14807_v40 = vld [vmem:[#allocation2 + $0x39] sm:$0xff] }
 0x1c9   : > { %2235 = vst.msk [vmem:[#allocation2 + $0x69] sm:$0xff] %vm462_vm0, %v2001_v42  ;;  %v1922_v51 = vmax.f32 %v1794_v53, 0.0  ;;  %v1663_v43 = vmul.f32 %v14600_v17, %v1443_v3  ;;  %v14800_v48 = vld [vmem:[#allocation2 + $0x31] sm:$0xff] }
 0x1ca   : > { %2234 = vst.msk [vmem:[#allocation2 + $0x61] sm:$0xff] %vm462_vm0, %v1994_v22  ;;  %v2014_v27 = vsel %vm462_vm0, %v1923_v32, -inf  ;;  %v1797_v29 = vadd.f32 %v14608_v11, %v1664_v16  ;;  %11949 = vmatprep.mubr.msk.f32.mxu0 %vm462_vm0, %v14800_v48 }
 0x1cb   : > { %v2015_v49 = vmax.f32 %v14556_v55, %v2014_v27  ;;  %v2007_v47 = vsel %vm462_vm0, %v1922_v51, -inf  ;;  %v1796_v26 = vadd.f32 %v14608_v11, %v1663_v43  ;;  %v11907_v41 = vpop.f32.mrb[108].mxu0  ;;  %11950 = vmatmul.mubr.msk.f32.gmra.mrb[132].mxu0 %vm462_vm0, %v14807_v40 }
 0x1cc   : > { %v2008_v50 = vmax.f32 %v14563_v61, %v2007_v47  ;;  %v1925_v62 = vmax.f32 %v1797_v29, 0.0  ;;  %v1666_v44 = vmul.f32 %v14600_v17, %v11907_v41  ;;  %v1453_v31 = vpop.f32.mrb[109].mxu0  ;;  %v14825_v61 = vld [vmem:[#allocation2 + $0x51] sm:$0xff] }
 0x1cd   : > { %2237 = vst.msk [vmem:[#allocation2 + $0x81] sm:$0xff] %vm462_vm0, %v2015_v49  ;;  %v1924_v4 = vmax.f32 %v1796_v26, 0.0  ;;  %v1665_v38 = vmul.f32 %v14600_v17, %v1453_v31  ;;  %v14818_v55 = vld [vmem:[#allocation2 + $0x49] sm:$0xff] }
 0x1ce   : > { %2236 = vst.msk [vmem:[#allocation2 + $0x79] sm:$0xff] %vm462_vm0, %v2008_v50  ;;  %v2028_v60 = vsel %vm462_vm0, %v1925_v62, -inf  ;;  %v1799_v57 = vadd.f32 %v14608_v11, %v1666_v44  ;;  %11952 = vmatprep.mubr.msk.f32.mxu0 %vm462_vm0, %v14818_v55 }
 0x1cf   : > { %v2029_v39 = vmax.f32 %v14572_v5, %v2028_v60  ;;  %v2021_v58 = vsel %vm462_vm0, %v1924_v4, -inf  ;;  %v1798_v21 = vadd.f32 %v14608_v11, %v1665_v38  ;;  %v11910_v34 = vpop.f32.mrb[110].mxu0  ;;  %11953 = vmatmul.mubr.msk.f32.gmra.mrb[134].mxu0 %vm462_vm0, %v14825_v61 }
 0x1d0   : > { %v2022_v33 = vmax.f32 %v14579_v18, %v2021_v58  ;;  %v1927_v14 = vmax.f32 %v1799_v57, 0.0  ;;  %v1668_v56 = vmul.f32 %v14600_v17, %v11910_v34  ;;  %v1463_v45 = vpop.f32.mrb[111].mxu0  ;;  %v14843_v18 = vld [vmem:[#allocation2 + $0x69] sm:$0xff] }
 0x1d1   : > { %2239 = vst.msk [vmem:[#allocation2 + $0x99] sm:$0xff] %vm462_vm0, %v2029_v39  ;;  %v1926_v19 = vmax.f32 %v1798_v21, 0.0  ;;  %v1667_v42 = vmul.f32 %v14600_v17, %v1463_v45  ;;  %v14836_v5 = vld [vmem:[#allocation2 + $0x61] sm:$0xff] }
 0x1d2   : > { %2238 = vst.msk [vmem:[#allocation2 + $0x91] sm:$0xff] %vm462_vm0, %v2022_v33  ;;  %v2042_v30 = vsel %vm462_vm0, %v1927_v14, -inf  ;;  %v1801_v53 = vadd.f32 %v14608_v11, %v1668_v56  ;;  %11955 = vmatprep.mubr.msk.f32.mxu0 %vm462_vm0, %v14836_v5 }
 0x1d3   : > { %v2043_v52 = vmax.f32 %v14588_v9, %v2042_v30  ;;  %v2035_v22 = vsel %vm462_vm0, %v1926_v19, -inf  ;;  %v1800_v32 = vadd.f32 %v14608_v11, %v1667_v42  ;;  %v11913_v16 = vpop.f32.mrb[112].mxu0  ;;  %11956 = vmatmul.mubr.msk.f32.gmra.mrb[136].mxu0 %vm462_vm0, %v14843_v18 }
 0x1d4   : > { %v2036_v3 = vmax.f32 %v14595_v35, %v2035_v22  ;;  %v1929_v51 = vmax.f32 %v1801_v53, 0.0  ;;  %v1670_v43 = vmul.f32 %v14600_v17, %v11913_v16  ;;  %v1473_v27 = vpop.f32.mrb[113].mxu0  ;;  %v14861_v35 = vld [vmem:[#allocation2 + $0x81] sm:$0xff] }
 0x1d5   : > { %2241 = vst.msk [vmem:[#allocation2 + $0xb1] sm:$0xff] %vm462_vm0, %v2043_v52  ;;  %v1928_v29 = vmax.f32 %v1800_v32, 0.0  ;;  %v1669_v49 = vmul.f32 %v14600_v17, %v1473_v27  ;;  %v14854_v9 = vld [vmem:[#allocation2 + $0x79] sm:$0xff] }
 0x1d6   : > { %2240 = vst.msk [vmem:[#allocation2 + $0xa9] sm:$0xff] %vm462_vm0, %v2036_v3  ;;  %v2056_v47 = vsel %vm462_vm0, %v1929_v51, -inf  ;;  %v1803_v26 = vadd.f32 %v14608_v11, %v1670_v43  ;;  %11958 = vmatprep.mubr.msk.f32.mxu0 %vm462_vm0, %v14854_v9 }
 0x1d7   : > { %v2057_v41 = vmax.f32 %v14614_v1, %v2056_v47  ;;  %v2049_v50 = vsel %vm462_vm0, %v1928_v29, -inf  ;;  %v1802_v62 = vadd.f32 %v14608_v11, %v1669_v49  ;;  %v11916_v44 = vpop.f32.mrb[114].mxu0  ;;  %11959 = vmatmul.mubr.msk.f32.gmra.mrb[138].mxu0 %vm462_vm0, %v14861_v35 }
 0x1d8   : > { %v2050_v31 = vmax.f32 %v14621_v46, %v2049_v50  ;;  %v1931_v4 = vmax.f32 %v1803_v26, 0.0  ;;  %v1672_v38 = vmul.f32 %v14600_v17, %v11916_v44  ;;  %v1483_v60 = vpop.f32.mrb[115].mxu0  ;;  %v14879_v46 = vld [vmem:[#allocation2 + $0x99] sm:$0xff] }
 0x1d9   : > { %2243 = vst.msk [vmem:[#allocation2 + $0xc9] sm:$0xff] %vm462_vm0, %v2057_v41  ;;  %v1930_v57 = vmax.f32 %v1802_v62, 0.0  ;;  %v1671_v39 = vmul.f32 %v14600_v17, %v1483_v60  ;;  %v14872_v1 = vld [vmem:[#allocation2 + $0x91] sm:$0xff] }
 0x1da   : > { %2242 = vst.msk [vmem:[#allocation2 + $0xc1] sm:$0xff] %vm462_vm0, %v2050_v31  ;;  %v2070_v58 = vsel %vm462_vm0, %v1931_v4, -inf  ;;  %v1805_v21 = vadd.f32 %v14608_v11, %v1672_v38  ;;  %11961 = vmatprep.mubr.msk.f32.mxu0 %vm462_vm0, %v14872_v1 }
 0x1db   : > { %v2071_v34 = vmax.f32 %v14630_v2, %v2070_v58  ;;  %v2063_v33 = vsel %vm462_vm0, %v1930_v57, -inf  ;;  %v1804_v14 = vadd.f32 %v14608_v11, %v1671_v39  ;;  %v11919_v56 = vpop.f32.mrb[116].mxu0  ;;  %11962 = vmatmul.mubr.msk.f32.gmra.mrb[140].mxu0 %vm462_vm0, %v14879_v46 }
 0x1dc   : > { %v2064_v45 = vmax.f32 %v14637_v37, %v2063_v33  ;;  %v1933_v19 = vmax.f32 %v1805_v21, 0.0  ;;  %v1674_v42 = vmul.f32 %v14600_v17, %v11919_v56  ;;  %v1493_v30 = vpop.f32.mrb[117].mxu0  ;;  %v14897_v37 = vld [vmem:[#allocation2 + $0xb1] sm:$0xff] }
 0x1dd   : > { %2245 = vst.msk [vmem:[#allocation2 + $0xe1] sm:$0xff] %vm462_vm0, %v2071_v34  ;;  %v1932_v53 = vmax.f32 %v1804_v14, 0.0  ;;  %v1673_v52 = vmul.f32 %v14600_v17, %v1493_v30  ;;  %v14890_v2 = vld [vmem:[#allocation2 + $0xa9] sm:$0xff] }
 0x1de   : > { %2244 = vst.msk [vmem:[#allocation2 + $0xd9] sm:$0xff] %vm462_vm0, %v2064_v45  ;;  %v2084_v22 = vsel %vm462_vm0, %v1933_v19, -inf  ;;  %v1807_v32 = vadd.f32 %v14608_v11, %v1674_v42  ;;  %11964 = vmatprep.mubr.msk.f32.mxu0 %vm462_vm0, %v14890_v2 }
 0x1df   : > { %v2085_v16 = vmax.f32 %v14646_v20, %v2084_v22  ;;  %v2077_v3 = vsel %vm462_vm0, %v1932_v53, -inf  ;;  %v1806_v51 = vadd.f32 %v14608_v11, %v1673_v52  ;;  %v11922_v43 = vpop.f32.mrb[118].mxu0  ;;  %11965 = vmatmul.mubr.msk.f32.gmra.mrb[142].mxu0 %vm462_vm0, %v14897_v37 }
 0x1e0   : > { %v2078_v27 = vmax.f32 %v14653_v12, %v2077_v3  ;;  %v1935_v29 = vmax.f32 %v1807_v32, 0.0  ;;  %v1676_v49 = vmul.f32 %v14600_v17, %v11922_v43  ;;  %v1503_v47 = vpop.f32.mrb[119].mxu0  ;;  %v14915_v12 = vld [vmem:[#allocation2 + $0xc9] sm:$0xff] }
 0x1e1   : > { %2247 = vst.msk [vmem:[#allocation2 + $0xf9] sm:$0xff] %vm462_vm0, %v2085_v16  ;;  %v1934_v26 = vmax.f32 %v1806_v51, 0.0  ;;  %v1675_v41 = vmul.f32 %v14600_v17, %v1503_v47  ;;  %v14908_v20 = vld [vmem:[#allocation2 + $0xc1] sm:$0xff] }
 0x1e2   : > { %2246 = vst.msk [vmem:[#allocation2 + $0xf1] sm:$0xff] %vm462_vm0, %v2078_v27  ;;  %v2098_v50 = vsel %vm462_vm0, %v1935_v29, -inf  ;;  %v1809_v62 = vadd.f32 %v14608_v11, %v1676_v49  ;;  %11967 = vmatprep.mubr.msk.f32.mxu0 %vm462_vm0, %v14908_v20 }
 0x1e3   : > { %v2099_v44 = vmax.f32 %v14662_v8, %v2098_v50  ;;  %v2091_v31 = vsel %vm462_vm0, %v1934_v26, -inf  ;;  %v1808_v4 = vadd.f32 %v14608_v11, %v1675_v41  ;;  %v11925_v38 = vpop.f32.mrb[120].mxu0  ;;  %11968 = vmatmul.mubr.msk.f32.gmra.mrb[144].mxu0 %vm462_vm0, %v14915_v12 }
 0x1e4   : > { %v2092_v60 = vmax.f32 %v14669_v54, %v2091_v31  ;;  %v1937_v57 = vmax.f32 %v1809_v62, 0.0  ;;  %v1678_v39 = vmul.f32 %v14600_v17, %v11925_v38  ;;  %v1513_v58 = vpop.f32.mrb[121].mxu0  ;;  %v14933_v54 = vld [vmem:[#allocation2 + $0xe1] sm:$0xff]  ;;  %v2294_v38 = vld [vmem:[%s16816_s2 + $0x10] sm:$0xff] }
 0x1e5   : > { %2249 = vst.msk [vmem:[#allocation2 + $0x111] sm:$0xff] %vm462_vm0, %v2099_v44  ;;  %v1936_v21 = vmax.f32 %v1808_v4, 0.0  ;;  %v1677_v34 = vmul.f32 %v14600_v17, %v1513_v58  ;;  %v14926_v8 = vld [vmem:[#allocation2 + $0xd9] sm:$0xff] }
 0x1e6   : > { %2248 = vst.msk [vmem:[#allocation2 + $0x109] sm:$0xff] %vm462_vm0, %v2092_v60  ;;  %v2112_v33 = vsel %vm462_vm0, %v1937_v57, -inf  ;;  %v1811_v14 = vadd.f32 %v14608_v11, %v1678_v39  ;;  %11970 = vmatprep.mubr.msk.f32.mxu0 %vm462_vm0, %v14926_v8  ;;  %v2295_v60 = vld [vmem:[%s16816_s2 + $0x18] sm:$0xff] }
 0x1e7   : > { %v2113_v56 = vmax.f32 %v14678_v25, %v2112_v33  ;;  %v2105_v45 = vsel %vm462_vm0, %v1936_v21, -inf  ;;  %v1810_v19 = vadd.f32 %v14608_v11, %v1677_v34  ;;  %v11928_v42 = vpop.f32.mrb[122].mxu0  ;;  %11971 = vmatmul.mubr.msk.f32.gmra.mrb[146].mxu0 %vm462_vm0, %v14933_v54 }
 0x1e8   : > { %v2106_v30 = vmax.f32 %v14685_v0, %v2105_v45  ;;  %v1939_v53 = vmax.f32 %v1811_v14, 0.0  ;;  %v1680_v52 = vmul.f32 %v14600_v17, %v11928_v42  ;;  %v1523_v22 = vpop.f32.mrb[123].mxu0  ;;  %v14951_v0 = vld [vmem:[#allocation2 + $0xf9] sm:$0xff]  ;;  %v12749_v42 = vpack.c.bf16 %v2295_v60, %v2294_v38  ;;  %v3396_v38 = vld [vmem:[%s16816_s2 + $0x68] sm:$0xff] }
 0x1e9   : > { %2251 = vst.msk [vmem:[#allocation2 + $0x129] sm:$0xff] %vm462_vm0, %v2113_v56  ;;  %v1938_v32 = vmax.f32 %v1810_v19, 0.0  ;;  %v1679_v16 = vmul.f32 %v14600_v17, %v1523_v22  ;;  %v14944_v25 = vld [vmem:[#allocation2 + $0xf1] sm:$0xff] }
 0x1ea   : > { %2250 = vst.msk [vmem:[#allocation2 + $0x121] sm:$0xff] %vm462_vm0, %v2106_v30  ;;  %v2126_v3 = vsel %vm462_vm0, %v1939_v53, -inf  ;;  %v1813_v51 = vadd.f32 %v14608_v11, %v1680_v52  ;;  %11973 = vmatprep.mubr.msk.f32.mxu0 %vm462_vm0, %v14944_v25  ;;  %v3006_v52 = vld [vmem:[%s16816_s2 + $0x40] sm:$0xff]  ;;  %v15054_v60 = vld [vmem:[#allocation2 + $0x18] sm:$0xff] }
 0x1eb   : > { %v2127_v43 = vmax.f32 %v14694_v6, %v2126_v3  ;;  %v2119_v27 = vsel %vm462_vm0, %v1938_v32, -inf  ;;  %v1812_v29 = vadd.f32 %v14608_v11, %v1679_v16  ;;  %v11931_v49 = vpop.f32.mrb[124].mxu0  ;;  %11974 = vmatmul.mubr.msk.f32.gmra.mrb[148].mxu0 %vm462_vm0, %v14951_v0 }
 0x1ec   : > { %v2120_v47 = vmax.f32 %v14701_v15, %v2119_v27  ;;  %v1941_v26 = vmax.f32 %v1813_v51, 0.0  ;;  %v1682_v41 = vmul.f32 %v14600_v17, %v11931_v49  ;;  %v1533_v50 = vpop.f32.mrb[125].mxu0  ;;  %v14969_v15 = vld [vmem:[#allocation2 + $0x111] sm:$0xff] }
 0x1ed   : > { %2253 = vst.msk [vmem:[#allocation2 + $0x141] sm:$0xff] %vm462_vm0, %v2127_v43  ;;  %v1940_v62 = vmax.f32 %v1812_v29, 0.0  ;;  %v1681_v44 = vmul.f32 %v14600_v17, %v1533_v50  ;;  %v14962_v6 = vld [vmem:[#allocation2 + $0x109] sm:$0xff] }
 0x1ee   : > { %2252 = vst.msk [vmem:[#allocation2 + $0x139] sm:$0xff] %vm462_vm0, %v2120_v47  ;;  %v2140_v31 = vsel %vm462_vm0, %v1941_v26, -inf  ;;  %v1815_v4 = vadd.f32 %v14608_v11, %v1682_v41  ;;  %11976 = vmatprep.mubr.msk.f32.mxu0 %vm462_vm0, %v14962_v6  ;;  %v2260_v41 = vld [vmem:[#allocation2] sm:$0xff]  ;;  %v3008_v50 = vld [vmem:[%s16816_s2 + $0x50] sm:$0xff] }
 0x1ef   : > { %v2141_v57 = vmax.f32 %v14710_v23, %v2140_v31  ;;  %v2133_v39 = vsel %vm462_vm0, %v1940_v62, -inf  ;;  %v1814_v58 = vadd.f32 %v14608_v11, %v1681_v44  ;;  %v11934_v21 = vpop.f32.mrb[126].mxu0  ;;  %11977 = vmatmul.mubr.msk.f32.gmra.mrb[150].mxu0 %vm462_vm0, %v14969_v15  ;;  %v3009_v62 = vld [vmem:[%s16816_s2 + $0x58] sm:$0xff]  ;;  %v2261_v44 = vld [vmem:[#allocation2 + $0x8] sm:$0xff] }
 0x1f0   : > { %v2134_v34 = vmax.f32 %v14717_v7, %v2133_v39  ;;  %v1943_v33 = vmax.f32 %v1815_v4, 0.0  ;;  %v1684_v14 = vmul.f32 %v14600_v17, %v11934_v21  ;;  %v1543_v56 = vpop.f32.mrb[127].mxu0  ;;  %v14993_v7 = vld [vmem:[#allocation2 + $0x129] sm:$0xff]  ;;  %v12757_v31 = vpack.c.bf16 %v3009_v62, %v3008_v50  ;;  %v3395_v4 = vld [vmem:[%s16816_s2 + $0x60] sm:$0xff]  ;;  %v15069_v21 = vld [vmem:[#allocation2 + $0x38] sm:$0xff] }
 0x1f1   : > { %2255 = vst.msk [vmem:[#allocation2 + $0x159] sm:$0xff] %vm462_vm0, %v2141_v57  ;;  %v1942_v45 = vmax.f32 %v1814_v58, 0.0  ;;  %v1683_v19 = vmul.f32 %v14600_v17, %v1543_v56  ;;  %v14986_v23 = vld [vmem:[#allocation2 + $0x121] sm:$0xff]  ;;  %v15058_v57 = vpack.c.bf16 %v3396_v38, %v3395_v4  ;;  %v15064_v58 = vld [vmem:[#allocation2 + $0x30] sm:$0xff] }
 0x1f2   : > { %2254 = vst.msk [vmem:[#allocation2 + $0x151] sm:$0xff] %vm462_vm0, %v2134_v34  ;;  %v2154_v30 = vsel %vm462_vm0, %v1943_v33, -inf  ;;  %v1817_v53 = vadd.f32 %v14608_v11, %v1684_v14  ;;  %11979 = vmatprep.mubr.msk.f32.mxu1 %vm462_vm0, %v14986_v23  ;;  %v3007_v17 = vld [vmem:[%s16816_s2 + $0x48] sm:$0xff]  ;;  %v15060_v39 = vld [vmem:[#allocation2 + $0x20] sm:$0xff]  ;;  %v15077_v33 = vld [vmem:[#allocation2 + $0x50] sm:$0xff] }
 0x1f3   : > { %v2155_v22 = vmax.f32 %v14726_v63, %v2154_v30  ;;  %v2147_v32 = vsel %vm462_vm0, %v1942_v45, -inf  ;;  %v1816_v16 = vadd.f32 %v14608_v11, %v1683_v19  ;;  %11980 = vmatmul.mubr.msk.f32.vlgmr.msra.gmra.mrb[0].mxu1 %vm462_vm0, %v14993_v7  ;;  %v12753_v29 = vpack.c.bf16 %v3007_v17, %v3006_v52  ;;  %v15073_v34 = vld [vmem:[#allocation2 + $0x48] sm:$0xff]  ;;  %v15081_v14 = vld [vmem:[#allocation2 + $0x60] sm:$0xff]  ;;  %v15089_v45 = vld [vmem:[#allocation2 + $0x78] sm:$0xff] }
 0x1f4   : > { %v2148_v3 = vmax.f32 %v14733_v24, %v2147_v32  ;;  %v1945_v51 = vmax.f32 %v1817_v53, 0.0  ;;  %12748 = vmatpush3.bf16.msra.mxu1 %v14484_v28  ;;  %v15015_v11 = vld [vmem:[#allocation2 + $0x141] sm:$0xff]  ;;  %v15105_v52 = vld [vmem:[#allocation2 + $0x98] sm:$0xff] }
 0x1f5   : > { %2257 = vst.msk [vmem:[#allocation2 + $0x171] sm:$0xff] %vm462_vm0, %v2155_v22  ;;  %v1944_v43 = vmax.f32 %v1816_v16, 0.0  ;;  %v15009_v27 = vld [vmem:[#allocation2 + $0x139] sm:$0xff]  ;;  %12750 = vmatprep.subr.bf16.mxu1 %v12749_v42  ;;  %16979 = vst [vmem:[#allocation9_spill] sm:$0xff] %v15015_v11  ;;  %v15085_v56 = vld [vmem:[#allocation2 + $0x68] sm:$0xff] }
 0x1f6   : > { %2256 = vst.msk [vmem:[#allocation2 + $0x169] sm:$0xff] %vm462_vm0, %v2148_v3  ;;  %v2168_v63 = vsel %vm462_vm0, %v1945_v51, -inf  ;;  %11982 = vmatprep.mubr.msk.f32.mxu1 %vm462_vm0, %v15009_v27  ;;  %v15093_v19 = vld [vmem:[#allocation2 + $0x80] sm:$0xff]  ;;  %v15109_v17 = vld [vmem:[#allocation2 + $0xa8] sm:$0xff]  ;;  %v15113_v22 = vld [vmem:[#allocation2 + $0xb0] sm:$0xff] }
 0x1f7   : > { %v2169_v24 = vmax.f32 %v14742_v36, %v2168_v63  ;;  %v2161_v28 = vsel %vm462_vm0, %v1944_v43, -inf  ;;  %11983 = vmatmul.mubr.msk.f32.gmra.mrb[2].mxu1 %vm462_vm0, %v15015_v11  ;;  %v15117_v32 = vld [vmem:[#allocation2 + $0xc0] sm:$0xff]  ;;  %v15121_v16 = vld [vmem:[#allocation2 + $0xc8] sm:$0xff]  ;;  %v15125_v3 = vld [vmem:[#allocation2 + $0xd8] sm:$0xff] }
 0x1f8   : > { %v2162_v49 = vmax.f32 %v14749_v13, %v2161_v28  ;;  %12752 = vmatpush3.bf16.msra.mxu1 %v12749_v42  ;;  %v15028_v26 = vld [vmem:[#allocation2 + $0x159] sm:$0xff]  ;;  %v15097_v42 = vld [vmem:[#allocation2 + $0x90] sm:$0xff]  ;;  %v15141_v63 = vld [vmem:[#allocation2 + $0x108] sm:$0xff] }
 0x1f9   : > { %2259 = vst.msk [vmem:[#allocation2 + $0x189] sm:$0xff] %vm462_vm0, %v2169_v24  ;;  %v15023_v47 = vld [vmem:[#allocation2 + $0x151] sm:$0xff]  ;;  %12754 = vmatprep.subr.bf16.mxu1 %v12753_v29  ;;  %16981 = vst [vmem:[#allocation10_spill] sm:$0xff] %v15028_v26  ;;  %v15129_v51 = vld [vmem:[#allocation2 + $0xe0] sm:$0xff] }
 0x1fa   : > { %16980 = vst [vmem:[#allocation8_spill] sm:$0xff] %v15023_v47  ;;  %2258 = vst.msk [vmem:[#allocation2 + $0x181] sm:$0xff] %vm462_vm0, %v2162_v49  ;;  %11985 = vmatprep.mubr.msk.f32.mxu1 %vm462_vm0, %v15023_v47  ;;  %v15133_v43 = vld [vmem:[#allocation2 + $0xf0] sm:$0xff]  ;;  %v15149_v28 = vld [vmem:[#allocation2 + $0x120] sm:$0xff] }
 0x1fb   : > { %11986 = vmatmul.mubr.msk.f32.gmra.mrb[4].mxu1 %vm462_vm0, %v15028_v26  ;;  %v15145_v24 = vld [vmem:[#allocation2 + $0x110] sm:$0xff]  ;;  %v15153_v49 = vld [vmem:[#allocation2 + $0x128] sm:$0xff]  ;;  %v15161_v50 = vld [vmem:[#allocation2 + $0x140] sm:$0xff] }
 0x1fc   : > { %v15036_v13 = vld [vmem:[#allocation2 + $0x171] sm:$0xff]  ;;  %v2974_v4 = vld [vmem:[#allocation2 + $0x2] sm:$0xff]  ;;  %v15195_v11 = vld [vmem:[#allocation2 + $0x1a] sm:$0xff] }
 0x1fd   : > { %v15032_v36 = vld [vmem:[#allocation2 + $0x169] sm:$0xff]  ;;  %16983 = vst [vmem:[#allocation13_spill] sm:$0xff] %v15036_v13  ;;  %v3784_v26 = vld [vmem:[%s16816_s2 + $0x80] sm:$0xff] }
 0x1fe   : > { %16982 = vst [vmem:[#allocation12_spill] sm:$0xff] %v15032_v36  ;;  %11988 = vmatprep.mubr.msk.f32.mxu1 %vm462_vm0, %v15032_v36  ;;  %v15165_v62 = vld [vmem:[#allocation2 + $0x150] sm:$0xff]  ;;  %v3785_v47 = vld [vmem:[%s16816_s2 + $0x88] sm:$0xff] }
 0x1ff   : > { %11989 = vmatmul.mubr.msk.f32.gmra.mrb[6].mxu1 %vm462_vm0, %v15036_v13  ;;  %v15177_v38 = vld [vmem:[#allocation2 + $0x170] sm:$0xff] }
 0x200   : > { %11999 = vmatprep.mubr.msk.f32.mxu1 %vm462_vm0, %v2260_v41  ;;  %v15157_v41 = vld [vmem:[#allocation2 + $0x138] sm:$0xff]  ;;  %16986 = vst [vmem:[#allocation15_spill] sm:$0xff] %v15177_v38  ;;  %v2975_v13 = vld [vmem:[#allocation2 + $0xa] sm:$0xff] }
 0x203   : > { %12000 = vmatmul.mubr.msk.f32.vlgmr.msra.gmra.mrb[8].mxu1 %vm462_vm0, %v2261_v44  ;;  %v15169_v44 = vld [vmem:[#allocation2 + $0x158] sm:$0xff] }
 0x204   : > { %12756 = vmatpush3.bf16.msra.mxu1 %v12753_v29  ;;  %12002 = vmatprep.mubr.msk.f32.mxu1 %vm462_vm0, %v15054_v60  ;;  %v15137_v29 = vld [vmem:[#allocation2 + $0xf8] sm:$0xff] }
 0x205   : > { %12758 = vmatprep.subr.bf16.mxu1 %v12757_v31 }
 0x207   : > { %12003 = vmatmul.mubr.msk.f32.gmra.mrb[10].mxu1 %vm462_vm0, %v15060_v39 }
 0x208   : > { %12005 = vmatprep.mubr.msk.f32.mxu1 %vm462_vm0, %v15064_v58  ;;  %12760 = vmatpush3.bf16.msra.mxu1 %v12757_v31  ;;  %v15173_v31 = vld [vmem:[#allocation2 + $0x168] sm:$0xff] }
 0x209   : > { %12762 = vmatprep.subr.bf16.mxu1 %v15058_v57 }
 0x20b   : > { %12006 = vmatmul.mubr.msk.f32.gmra.mrb[12].mxu1 %vm462_vm0, %v15069_v21 }
 0x20c   : > { %12008 = vmatprep.mubr.msk.f32.mxu1 %vm462_vm0, %v15073_v34 }
 0x20f   : > { %12009 = vmatmul.mubr.msk.f32.gmra.mrb[14].mxu1 %vm462_vm0, %v15077_v33 }
 0x210   : > { %12011 = vmatprep.mubr.msk.f32.mxu1 %vm462_vm0, %v15081_v14 }
 0x212   : > { %v15099_v30 = vpop.f32.mrb[128].mxu0 }
 0x213   : > { %12012 = vmatmul.mubr.msk.f32.gmra.mrb[16].mxu1 %vm462_vm0, %v15085_v56  ;;  %16984 = vst [vmem:[#allocation14_spill] sm:$0xff] %v15099_v30  ;;  %v15103_v53 = vpop.f32.mrb[129].mxu0  ;;  %v3398_v30 = vld [vmem:[%s16816_s2 + $0x78] sm:$0xff] }
 0x214   : > { %12014 = vmatprep.mubr.msk.f32.mxu1 %vm462_vm0, %v15089_v45  ;;  %16985 = vst [vmem:[#allocation11_spill] sm:$0xff] %v15103_v53  ;;  %v3397_v53 = vld [vmem:[%s16816_s2 + $0x70] sm:$0xff] }
 0x215   : > { %v12765_v36 = vpack.c.bf16 %v3398_v30, %v3397_v53  ;;  %v15202_v30 = vld [vmem:[#allocation2 + $0x22] sm:$0xff]  ;;  %v15206_v53 = vld [vmem:[#allocation2 + $0x32] sm:$0xff] }
 0x216   : > { %16987 = vst [vmem:[#allocation17_spill] sm:$0xff] %v15206_v53 }
 0x217   : > { %12015 = vmatmul.mubr.msk.f32.gmra.mrb[18].mxu1 %vm462_vm0, %v15093_v19 }
 0x218   : > { %12017 = vmatprep.mubr.msk.f32.mxu1 %vm462_vm0, %v15097_v42 }
 0x21b   : > { %12018 = vmatmul.mubr.msk.f32.gmra.mrb[20].mxu1 %vm462_vm0, %v15105_v52 }
 0x21c   : > { %12020 = vmatprep.mubr.msk.f32.mxu1 %vm462_vm0, %v15109_v17 }
 0x21f   : > { %12021 = vmatmul.mubr.msk.f32.gmra.mrb[22].mxu1 %vm462_vm0, %v15113_v22 }
 0x220   : > { %12023 = vmatprep.mubr.msk.f32.mxu1 %vm462_vm0, %v15117_v32 }
 0x223   : > { %12024 = vmatmul.mubr.msk.f32.gmra.mrb[24].mxu1 %vm462_vm0, %v15121_v16 }
 0x224   : > { %12026 = vmatprep.mubr.msk.f32.mxu1 %vm462_vm0, %v15125_v3 }
 0x227   : > { %12027 = vmatmul.mubr.msk.f32.gmra.mrb[26].mxu1 %vm462_vm0, %v15129_v51 }
 0x228   : > { %12029 = vmatprep.mubr.msk.f32.mxu1 %vm462_vm0, %v15133_v43 }
 0x22b   : > { %12030 = vmatmul.mubr.msk.f32.gmra.mrb[28].mxu1 %vm462_vm0, %v15137_v29 }
 0x22c   : > { %12032 = vmatprep.mubr.msk.f32.mxu1 %vm462_vm0, %v15141_v63 }
 0x22f   : > { %12033 = vmatmul.mubr.msk.f32.gmra.mrb[30].mxu1 %vm462_vm0, %v15145_v24 }
 0x230   : > { %12035 = vmatprep.mubr.msk.f32.mxu1 %vm462_vm0, %v15149_v28 }
 0x233   : > { %12036 = vmatmul.mubr.msk.f32.gmra.mrb[0].mxu1 %vm462_vm0, %v15153_v49 }
 0x234   : > { %12038 = vmatprep.mubr.msk.f32.mxu1 %vm462_vm0, %v15157_v41 }
 0x237   : > { %12039 = vmatmul.mubr.msk.f32.gmra.mrb[2].mxu1 %vm462_vm0, %v15161_v50 }
 0x238   : > { %12041 = vmatprep.mubr.msk.f32.mxu1 %vm462_vm0, %v15165_v62 }
 0x23b   : > { %12042 = vmatmul.mubr.msk.f32.gmra.mrb[4].mxu1 %vm462_vm0, %v15169_v44 }
 0x23c   : > { %12044 = vmatprep.mubr.msk.f32.mxu1 %vm462_vm0, %v15173_v31 }
 0x23f   : > { %12045 = vmatmul.mubr.msk.f32.gmra.mrb[6].mxu1 %vm462_vm0, %v15177_v38 }
 0x240   : > { %12055 = vmatprep.mubr.msk.f32.mxu1 %vm462_vm0, %v2974_v4  ;;  %v15200_v4 = vpack.c.bf16 %v3785_v47, %v3784_v26  ;;  %v15215_v47 = vld [vmem:[#allocation2 + $0x4a] sm:$0xff]  ;;  %v15219_v26 = vld [vmem:[#allocation2 + $0x52] sm:$0xff] }
 0x241   : > { %16989 = vst [vmem:[#allocation18_spill] sm:$0xff] %v15215_v47  ;;  %16990 = vst [vmem:[#allocation19_spill] sm:$0xff] %v15219_v26 }
 0x243   : > { %12056 = vmatmul.mubr.msk.f32.vlgmr.msra.gmra.mrb[8].mxu1 %vm462_vm0, %v2975_v13  ;;  %v15211_v13 = vld [vmem:[#allocation2 + $0x3a] sm:$0xff] }
 0x244   : > { %12764 = vmatpush3.bf16.msra.mxu1 %v15058_v57  ;;  %12058 = vmatprep.mubr.msk.f32.mxu1 %vm462_vm0, %v15195_v11  ;;  %16988 = vst [vmem:[#allocation16_spill] sm:$0xff] %v15211_v13  ;;  %v15223_v57 = vld [vmem:[#allocation2 + $0x62] sm:$0xff] }
 0x245   : > { %12766 = vmatprep.subr.bf16.mxu1 %v12765_v36  ;;  %16991 = vst [vmem:[#allocation20_spill] sm:$0xff] %v15223_v57 }
 0x247   : > { %12059 = vmatmul.mubr.msk.f32.gmra.mrb[10].mxu1 %vm462_vm0, %v15202_v30 }
 0x248   : > { %12061 = vmatprep.mubr.msk.f32.mxu1 %vm462_vm0, %v15206_v53  ;;  %12768 = vmatpush3.bf16.msra.mxu1 %v12765_v36  ;;  %v15227_v36 = vld [vmem:[#allocation2 + $0x6a] sm:$0xff] }
 0x249   : > { %12770 = vmatprep.subr.bf16.mxu1 %v15200_v4  ;;  %16992 = vst [vmem:[#allocation21_spill] sm:$0xff] %v15227_v36  ;;  %v4174_v53 = vld [vmem:[%s16816_s2 + $0xa8] sm:$0xff] }
 0x24b   : > { %12062 = vmatmul.mubr.msk.f32.gmra.mrb[12].mxu1 %vm462_vm0, %v15211_v13  ;;  %v15231_v13 = vld [vmem:[#allocation2 + $0x7a] sm:$0xff] }
 0x24c   : > { %12064 = vmatprep.mubr.msk.f32.mxu1 %vm462_vm0, %v15215_v47  ;;  %16993 = vst [vmem:[#allocation22_spill] sm:$0xff] %v15231_v13  ;;  %v15235_v47 = vld [vmem:[#allocation2 + $0x82] sm:$0xff] }
 0x24d   : > { %16994 = vst [vmem:[#allocation23_spill] sm:$0xff] %v15235_v47 }
 0x24f   : > { %12065 = vmatmul.mubr.msk.f32.gmra.mrb[14].mxu1 %vm462_vm0, %v15219_v26  ;;  %v15239_v26 = vld [vmem:[#allocation2 + $0x92] sm:$0xff] }
 0x250   : > { %12067 = vmatprep.mubr.msk.f32.mxu1 %vm462_vm0, %v15223_v57  ;;  %16995 = vst [vmem:[#allocation24_spill] sm:$0xff] %v15239_v26  ;;  %v15243_v57 = vld [vmem:[#allocation2 + $0x9a] sm:$0xff] }
 0x251   : > { %16996 = vst [vmem:[#allocation25_spill] sm:$0xff] %v15243_v57 }
 0x253   : > { %12068 = vmatmul.mubr.msk.f32.gmra.mrb[16].mxu1 %vm462_vm0, %v15227_v36  ;;  %v15247_v36 = vld [vmem:[#allocation2 + $0xaa] sm:$0xff] }
 0x254   : > { %12070 = vmatprep.mubr.msk.f32.mxu1 %vm462_vm0, %v15231_v13  ;;  %16997 = vst [vmem:[#allocation26_spill] sm:$0xff] %v15247_v36  ;;  %v15251_v13 = vld [vmem:[#allocation2 + $0xb2] sm:$0xff] }
 0x255   : > { %16998 = vst [vmem:[#allocation27_spill] sm:$0xff] %v15251_v13 }
 0x257   : > { %12071 = vmatmul.mubr.msk.f32.gmra.mrb[18].mxu1 %vm462_vm0, %v15235_v47  ;;  %v15255_v47 = vld [vmem:[#allocation2 + $0xc2] sm:$0xff] }
 0x258   : > { %12073 = vmatprep.mubr.msk.f32.mxu1 %vm462_vm0, %v15239_v26  ;;  %16999 = vst [vmem:[#allocation28_spill] sm:$0xff] %v15255_v47  ;;  %v15259_v26 = vld [vmem:[#allocation2 + $0xca] sm:$0xff] }
 0x259   : > { %17000 = vst [vmem:[#allocation29_spill] sm:$0xff] %v15259_v26 }
 0x25b   : > { %12074 = vmatmul.mubr.msk.f32.gmra.mrb[20].mxu1 %vm462_vm0, %v15243_v57  ;;  %v15263_v57 = vld [vmem:[#allocation2 + $0xda] sm:$0xff] }
 0x25c   : > { %12076 = vmatprep.mubr.msk.f32.mxu1 %vm462_vm0, %v15247_v36  ;;  %17001 = vst [vmem:[#allocation30_spill] sm:$0xff] %v15263_v57  ;;  %v15267_v36 = vld [vmem:[#allocation2 + $0xe2] sm:$0xff] }
 0x25d   : > { %17002 = vst [vmem:[#allocation31_spill] sm:$0xff] %v15267_v36 }
 0x25f   : > { %12077 = vmatmul.mubr.msk.f32.gmra.mrb[22].mxu1 %vm462_vm0, %v15251_v13  ;;  %v15271_v13 = vld [vmem:[#allocation2 + $0xf2] sm:$0xff] }
 0x260   : > { %12079 = vmatprep.mubr.msk.f32.mxu1 %vm462_vm0, %v15255_v47  ;;  %17003 = vst [vmem:[#allocation32_spill] sm:$0xff] %v15271_v13  ;;  %v15275_v47 = vld [vmem:[#allocation2 + $0xfa] sm:$0xff] }
 0x261   : > { %17004 = vst [vmem:[#allocation33_spill] sm:$0xff] %v15275_v47 }
 0x263   : > { %12080 = vmatmul.mubr.msk.f32.gmra.mrb[24].mxu1 %vm462_vm0, %v15259_v26  ;;  %v15279_v26 = vld [vmem:[#allocation2 + $0x10a] sm:$0xff] }
 0x264   : > { %12082 = vmatprep.mubr.msk.f32.mxu1 %vm462_vm0, %v15263_v57  ;;  %17005 = vst [vmem:[#allocation34_spill] sm:$0xff] %v15279_v26  ;;  %v15283_v57 = vld [vmem:[#allocation2 + $0x112] sm:$0xff] }
 0x265   : > { %17006 = vst [vmem:[#allocation35_spill] sm:$0xff] %v15283_v57 }
 0x267   : > { %12083 = vmatmul.mubr.msk.f32.gmra.mrb[26].mxu1 %vm462_vm0, %v15267_v36  ;;  %v15287_v36 = vld [vmem:[#allocation2 + $0x122] sm:$0xff] }
 0x268   : > { %12085 = vmatprep.mubr.msk.f32.mxu1 %vm462_vm0, %v15271_v13  ;;  %17007 = vst [vmem:[#allocation36_spill] sm:$0xff] %v15287_v36  ;;  %v15291_v13 = vld [vmem:[#allocation2 + $0x12a] sm:$0xff] }
 0x269   : > { %17008 = vst [vmem:[#allocation37_spill] sm:$0xff] %v15291_v13 }
 0x26b   : > { %12086 = vmatmul.mubr.msk.f32.gmra.mrb[28].mxu1 %vm462_vm0, %v15275_v47  ;;  %v15295_v47 = vld [vmem:[#allocation2 + $0x13a] sm:$0xff] }
 0x26c   : > { %12088 = vmatprep.mubr.msk.f32.mxu1 %vm462_vm0, %v15279_v26  ;;  %17009 = vst [vmem:[#allocation38_spill] sm:$0xff] %v15295_v47  ;;  %v15299_v26 = vld [vmem:[#allocation2 + $0x142] sm:$0xff] }
 0x26d   : > { %17010 = vst [vmem:[#allocation39_spill] sm:$0xff] %v15299_v26 }
 0x26f   : > { %12089 = vmatmul.mubr.msk.f32.gmra.mrb[30].mxu1 %vm462_vm0, %v15283_v57  ;;  %v15303_v57 = vld [vmem:[#allocation2 + $0x152] sm:$0xff] }
 0x270   : > { %12091 = vmatprep.mubr.msk.f32.mxu1 %vm462_vm0, %v15287_v36  ;;  %17011 = vst [vmem:[#allocation40_spill] sm:$0xff] %v15303_v57  ;;  %v15307_v36 = vld [vmem:[#allocation2 + $0x15a] sm:$0xff] }
 0x271   : > { %17012 = vst [vmem:[#allocation41_spill] sm:$0xff] %v15307_v36 }
 0x273   : > { %12092 = vmatmul.mubr.msk.f32.gmra.mrb[0].mxu1 %vm462_vm0, %v15291_v13  ;;  %v15311_v13 = vld [vmem:[#allocation2 + $0x16a] sm:$0xff] }
 0x274   : > { %12094 = vmatprep.mubr.msk.f32.mxu1 %vm462_vm0, %v15295_v47  ;;  %17013 = vst [vmem:[#allocation42_spill] sm:$0xff] %v15311_v13  ;;  %v15315_v47 = vld [vmem:[#allocation2 + $0x172] sm:$0xff] }
 0x275   : > { %17014 = vst [vmem:[#allocation43_spill] sm:$0xff] %v15315_v47 }
 0x277   : > { %12095 = vmatmul.mubr.msk.f32.gmra.mrb[2].mxu1 %vm462_vm0, %v15299_v26  ;;  %v3786_v26 = vld [vmem:[%s16816_s2 + $0x90] sm:$0xff] }
 0x278   : > { %12097 = vmatprep.mubr.msk.f32.mxu1 %vm462_vm0, %v15303_v57  ;;  %v3787_v57 = vld [vmem:[%s16816_s2 + $0x98] sm:$0xff] }
 0x27b   : > { %12098 = vmatmul.mubr.msk.f32.gmra.mrb[4].mxu1 %vm462_vm0, %v15307_v36  ;;  %v12773_v36 = vpack.c.bf16 %v3787_v57, %v3786_v26 }
 0x27c   : > { %12100 = vmatprep.mubr.msk.f32.mxu1 %vm462_vm0, %v15311_v13  ;;  %v4173_v13 = vld [vmem:[%s16816_s2 + $0xa0] sm:$0xff] }
 0x27f   : > { %12101 = vmatmul.mubr.msk.f32.gmra.mrb[6].mxu1 %vm462_vm0, %v15315_v47  ;;  %v15338_v47 = vpack.c.bf16 %v4174_v53, %v4173_v13 }
 0x280   : > { %12111 = vmatprep.mubr.msk.f32.mxu1 %vm462_vm0, %v15054_v60 }
 0x283   : > { %12112 = vmatmul.mubr.msk.f32.vlgmr.msra.gmra.mrb[8].mxu1 %vm462_vm0, %v15060_v39 }
 0x284   : > { %12772 = vmatpush3.bf16.msra.mxu1 %v15200_v4  ;;  %12114 = vmatprep.mubr.msk.f32.mxu1 %vm462_vm0, %v15064_v58 }
 0x285   : > { %12774 = vmatprep.subr.bf16.mxu1 %v12773_v36 }
 0x287   : > { %12115 = vmatmul.mubr.msk.f32.gmra.mrb[10].mxu1 %vm462_vm0, %v15069_v21 }
 0x288   : > { %12117 = vmatprep.mubr.msk.f32.mxu1 %vm462_vm0, %v15073_v34  ;;  %12776 = vmatpush3.bf16.msra.mxu1 %v12773_v36 }
 0x289   : > { %12778 = vmatprep.subr.bf16.mxu1 %v15338_v47 }
 0x28b   : > { %12118 = vmatmul.mubr.msk.f32.gmra.mrb[12].mxu1 %vm462_vm0, %v15077_v33 }
 0x28c   : > { %12120 = vmatprep.mubr.msk.f32.mxu1 %vm462_vm0, %v15081_v14 }
 0x28f   : > { %12121 = vmatmul.mubr.msk.f32.gmra.mrb[14].mxu1 %vm462_vm0, %v15085_v56 }
 0x290   : > { %12123 = vmatprep.mubr.msk.f32.mxu1 %vm462_vm0, %v15089_v45 }
 0x293   : > { %12124 = vmatmul.mubr.msk.f32.gmra.mrb[16].mxu1 %vm462_vm0, %v15093_v19 }
 0x294   : > { %12126 = vmatprep.mubr.msk.f32.mxu1 %vm462_vm0, %v15097_v42 }
 0x297   : > { %12127 = vmatmul.mubr.msk.f32.gmra.mrb[18].mxu1 %vm462_vm0, %v15105_v52 }
 0x298   : > { %12129 = vmatprep.mubr.msk.f32.mxu1 %vm462_vm0, %v15109_v17 }
 0x29a   : > { %v15361_v60 = vpop.f32.mrb[130].mxu0 }
 0x29b   : > { %17015 = vst [vmem:[#allocation44_spill] sm:$0xff] %v15361_v60  ;;  %v15363_v39 = vpop.f32.mrb[131].mxu0  ;;  %12130 = vmatmul.mubr.msk.f32.gmra.mrb[20].mxu1 %vm462_vm0, %v15113_v22  ;;  %v4563_v60 = vld [vmem:[%s16816_s2 + $0xc0] sm:$0xff] }
 0x29c   : > { %17016 = vst [vmem:[#allocation45_spill] sm:$0xff] %v15363_v39  ;;  %12132 = vmatprep.mubr.msk.f32.mxu1 %vm462_vm0, %v15117_v32 }
 0x29e   : > { %v15369_v4 = vpop.f32.mrb[132].mxu0 }
 0x29f   : > { %17017 = vst [vmem:[#allocation46_spill] sm:$0xff] %v15369_v4  ;;  %v15371_v53 = vpop.f32.mrb[133].mxu0  ;;  %12133 = vmatmul.mubr.msk.f32.gmra.mrb[22].mxu1 %vm462_vm0, %v15121_v16  ;;  %v4175_v4 = vld [vmem:[%s16816_s2 + $0xb0] sm:$0xff] }
 0x2a0   : > { %17018 = vst [vmem:[#allocation47_spill] sm:$0xff] %v15371_v53  ;;  %12135 = vmatprep.mubr.msk.f32.mxu1 %vm462_vm0, %v15125_v3 }
 0x2a2   : > { %v15377_v13 = vpop.f32.mrb[134].mxu0 }
 0x2a3   : > { %17019 = vst [vmem:[#allocation48_spill] sm:$0xff] %v15377_v13  ;;  %v15379_v26 = vpop.f32.mrb[135].mxu0  ;;  %12136 = vmatmul.mubr.msk.f32.gmra.mrb[24].mxu1 %vm462_vm0, %v15129_v51 }
 0x2a4   : > { %17020 = vst [vmem:[#allocation49_spill] sm:$0xff] %v15379_v26  ;;  %12138 = vmatprep.mubr.msk.f32.mxu1 %vm462_vm0, %v15133_v43 }
 0x2a6   : > { %v15385_v57 = vpop.f32.mrb[136].mxu0 }
 0x2a7   : > { %17021 = vst [vmem:[#allocation50_spill] sm:$0xff] %v15385_v57  ;;  %v15387_v36 = vpop.f32.mrb[137].mxu0  ;;  %12139 = vmatmul.mubr.msk.f32.gmra.mrb[26].mxu1 %vm462_vm0, %v15137_v29 }
 0x2a8   : > { %17022 = vst [vmem:[#allocation51_spill] sm:$0xff] %v15387_v36  ;;  %12141 = vmatprep.mubr.msk.f32.mxu1 %vm462_vm0, %v15141_v63 }
 0x2aa   : > { %v15393_v53 = vpop.f32.mrb[138].mxu0 }
 0x2ab   : > { %17023 = vst [vmem:[#allocation52_spill] sm:$0xff] %v15393_v53  ;;  %v15395_v13 = vpop.f32.mrb[139].mxu0  ;;  %12142 = vmatmul.mubr.msk.f32.gmra.mrb[28].mxu1 %vm462_vm0, %v15145_v24 }
 0x2ac   : > { %17024 = vst [vmem:[#allocation53_spill] sm:$0xff] %v15395_v13  ;;  %12144 = vmatprep.mubr.msk.f32.mxu1 %vm462_vm0, %v15149_v28 }
 0x2ae   : > { %v15401_v26 = vpop.f32.mrb[140].mxu0 }
 0x2af   : > { %17025 = vst [vmem:[#allocation54_spill] sm:$0xff] %v15401_v26  ;;  %v15403_v57 = vpop.f32.mrb[141].mxu0  ;;  %12145 = vmatmul.mubr.msk.f32.gmra.mrb[30].mxu1 %vm462_vm0, %v15153_v49 }
 0x2b0   : > { %17026 = vst [vmem:[#allocation55_spill] sm:$0xff] %v15403_v57  ;;  %12147 = vmatprep.mubr.msk.f32.mxu1 %vm462_vm0, %v15157_v41 }
 0x2b2   : > { %v15409_v36 = vpop.f32.mrb[142].mxu0 }
 0x2b3   : > { %17027 = vst [vmem:[#allocation56_spill] sm:$0xff] %v15409_v36  ;;  %v15411_v53 = vpop.f32.mrb[143].mxu0  ;;  %12148 = vmatmul.mubr.msk.f32.gmra.mrb[0].mxu1 %vm462_vm0, %v15161_v50 }
 0x2b4   : > { %17028 = vst [vmem:[#allocation57_spill] sm:$0xff] %v15411_v53  ;;  %12150 = vmatprep.mubr.msk.f32.mxu1 %vm462_vm0, %v15165_v62  ;;  %v15431_v53 = vld [vmem:[#allocation2 + $0x180] sm:$0xff] }
 0x2b5   : > { %17033 = vst [vmem:[#allocation62_spill] sm:$0xff] %v15431_v53 }
 0x2b6   : > { %v15417_v13 = vpop.f32.mrb[144].mxu0 }
 0x2b7   : > { %17029 = vst [vmem:[#allocation58_spill] sm:$0xff] %v15417_v13  ;;  %v15419_v26 = vpop.f32.mrb[145].mxu0  ;;  %12151 = vmatmul.mubr.msk.f32.gmra.mrb[2].mxu1 %vm462_vm0, %v15169_v44 }
 0x2b8   : > { %17030 = vst [vmem:[#allocation59_spill] sm:$0xff] %v15419_v26  ;;  %12153 = vmatprep.mubr.msk.f32.mxu1 %vm462_vm0, %v15173_v31  ;;  %v15437_v26 = vld [vmem:[#allocation2 + $0x188] sm:$0xff] }
 0x2ba   : > { %v15425_v57 = vpop.f32.mrb[146].mxu0 }
 0x2bb   : > { %17031 = vst [vmem:[#allocation60_spill] sm:$0xff] %v15425_v57  ;;  %v15427_v36 = vpop.f32.mrb[147].mxu0  ;;  %12154 = vmatmul.mubr.msk.f32.gmra.mrb[4].mxu1 %vm462_vm0, %v15177_v38 }
 0x2bc   : > { %17032 = vst [vmem:[#allocation61_spill] sm:$0xff] %v15427_v36  ;;  %12156 = vmatprep.mubr.msk.f32.mxu1 %vm462_vm0, %v15431_v53  ;;  %v4176_v36 = vld [vmem:[%s16816_s2 + $0xb8] sm:$0xff]  ;;  %v4564_v53 = vld [vmem:[%s16816_s2 + $0xc8] sm:$0xff] }
 0x2bd   : > { %v12781_v39 = vpack.c.bf16 %v4176_v36, %v4175_v4  ;;  %v17059_v4 = vld [vmem:[#allocation32_spill] sm:$0xff]  ;;  %v17061_v36 = vld [vmem:[#allocation34_spill] sm:$0xff] }
 0x2be   : > { %v15435_v13 = vpop.f32.mrb[148].mxu0 }
 0x2bf   : > { %17034 = vst [vmem:[#allocation63_spill] sm:$0xff] %v15435_v13  ;;  %v15445_v57 = vpop.f32.mrb[149].mxu0  ;;  %12157 = vmatmul.mubr.msk.f32.gmra.mrb[6].mxu1 %vm462_vm0, %v15437_v26 }
 0x2c0   : > { %17035 = vst [vmem:[#allocation64_spill] sm:$0xff] %v15445_v57  ;;  %12167 = vmatprep.mubr.msk.f32.mxu1 %vm462_vm0, %v14782_v59  ;;  %v12785_v59 = vpack.c.bf16 %v4564_v53, %v4563_v60  ;;  %v17057_v60 = vld [vmem:[#allocation30_spill] sm:$0xff]  ;;  %v17060_v53 = vld [vmem:[#allocation33_spill] sm:$0xff] }
 0x2c2   : > { %v15451_v13 = vpop.f32.mrb[150].mxu0 }
 0x2c3   : > { %17036 = vst [vmem:[#allocation65_spill] sm:$0xff] %v15451_v13  ;;  %v15459_v38 = vpop.f32.mrb[151].mxu0  ;;  %12168 = vmatmul.mubr.msk.f32.vlgmr.msra.gmra.mrb[8].mxu1 %vm462_vm0, %v14789_v10  ;;  %v17038_v10 = vld [vmem:[#allocation9_spill] sm:$0xff]  ;;  %v4955_v13 = vld [vmem:[%s16816_s2 + $0xf8] sm:$0xff] }
 0x2c4   : > { %17037 = vst [vmem:[#allocation66_spill] sm:$0xff] %v15459_v38  ;;  %12780 = vmatpush3.bf16.msra.mxu1 %v15338_v47  ;;  %12170 = vmatprep.mubr.msk.f32.mxu1 %vm462_vm0, %v14800_v48  ;;  %v17039_v48 = vld [vmem:[#allocation8_spill] sm:$0xff]  ;;  %v17056_v47 = vld [vmem:[#allocation29_spill] sm:$0xff] }
 0x2c5   : > { %12782 = vmatprep.subr.bf16.mxu1 %v12781_v39  ;;  %v4954_v38 = vld [vmem:[%s16816_s2 + $0xf0] sm:$0xff] }
 0x2c6   : > { %v12797_v57 = vpack.c.bf16 %v4955_v13, %v4954_v38  ;;  %v4940_v38 = vld [vmem:[#allocation2 + $0x121] sm:$0xff]  ;;  %v4941_v13 = vld [vmem:[#allocation2 + $0x129] sm:$0xff] }
 0x2c7   : > { %12171 = vmatmul.mubr.msk.f32.gmra.mrb[10].mxu1 %vm462_vm0, %v14807_v40  ;;  %v17040_v40 = vld [vmem:[#allocation10_spill] sm:$0xff] }
 0x2c8   : > { %12173 = vmatprep.mubr.msk.f32.mxu1 %vm462_vm0, %v14818_v55  ;;  %12784 = vmatpush3.bf16.msra.mxu1 %v12781_v39  ;;  %v17041_v55 = vld [vmem:[#allocation12_spill] sm:$0xff]  ;;  %v17058_v39 = vld [vmem:[#allocation31_spill] sm:$0xff] }
 0x2c9   : > { %12786 = vmatprep.subr.bf16.mxu1 %v12785_v59 }
 0x2cb   : > { %12174 = vmatmul.mubr.msk.f32.gmra.mrb[12].mxu1 %vm462_vm0, %v14825_v61  ;;  %v17042_v61 = vld [vmem:[#allocation13_spill] sm:$0xff] }
 0x2cc   : > { %12176 = vmatprep.mubr.msk.f32.mxu1 %vm462_vm0, %v14836_v5  ;;  %v15520_v5 = vld [vmem:[#allocation2 + $0x181] sm:$0xff] }
 0x2cf   : > { %12177 = vmatmul.mubr.msk.f32.gmra.mrb[14].mxu1 %vm462_vm0, %v14843_v18  ;;  %v15524_v18 = vld [vmem:[#allocation2 + $0x189] sm:$0xff] }
 0x2d0   : > { %12179 = vmatprep.mubr.msk.f32.mxu1 %vm462_vm0, %v14854_v9  ;;  %v4565_v9 = vld [vmem:[%s16816_s2 + $0xd0] sm:$0xff] }
 0x2d3   : > { %12180 = vmatmul.mubr.msk.f32.gmra.mrb[16].mxu1 %vm462_vm0, %v14861_v35  ;;  %v4566_v35 = vld [vmem:[%s16816_s2 + $0xd8] sm:$0xff] }
 0x2d4   : > { %12182 = vmatprep.mubr.msk.f32.mxu1 %vm462_vm0, %v14872_v1  ;;  %v12789_v1 = vpack.c.bf16 %v4566_v35, %v4565_v9  ;;  %v17068_v9 = vld [vmem:[#allocation41_spill] sm:$0xff]  ;;  %v17069_v35 = vld [vmem:[#allocation42_spill] sm:$0xff] }
 0x2d7   : > { %12183 = vmatmul.mubr.msk.f32.gmra.mrb[18].mxu1 %vm462_vm0, %v14879_v46  ;;  %v4952_v46 = vld [vmem:[%s16816_s2 + $0xe0] sm:$0xff] }
 0x2d8   : > { %12185 = vmatprep.mubr.msk.f32.mxu1 %vm462_vm0, %v14890_v2  ;;  %v4953_v2 = vld [vmem:[%s16816_s2 + $0xe8] sm:$0xff] }
 0x2db   : > { %12186 = vmatmul.mubr.msk.f32.gmra.mrb[20].mxu1 %vm462_vm0, %v14897_v37  ;;  %v17043_v37 = vld [vmem:[#allocation17_spill] sm:$0xff] }
 0x2dc   : > { %12188 = vmatprep.mubr.msk.f32.mxu1 %vm462_vm0, %v14908_v20  ;;  %v12793_v20 = vpack.c.bf16 %v4953_v2, %v4952_v46  ;;  %v15600_v46 = vld [vmem:[#allocation2 + $0x182] sm:$0xff]  ;;  %v15604_v2 = vld [vmem:[#allocation2 + $0x18a] sm:$0xff] }
 0x2dd   : > { %17071 = vst [vmem:[#allocation9_spill] sm:$0xff] %v15600_v46  ;;  %17072 = vst [vmem:[#allocation8_spill] sm:$0xff] %v15604_v2 }
 0x2df   : > { %12189 = vmatmul.mubr.msk.f32.gmra.mrb[22].mxu1 %vm462_vm0, %v14915_v12  ;;  %v17044_v12 = vld [vmem:[#allocation16_spill] sm:$0xff] }
 0x2e0   : > { %12191 = vmatprep.mubr.msk.f32.mxu1 %vm462_vm0, %v14926_v8  ;;  %v17045_v8 = vld [vmem:[#allocation18_spill] sm:$0xff] }
 0x2e3   : > { %12192 = vmatmul.mubr.msk.f32.gmra.mrb[24].mxu1 %vm462_vm0, %v14933_v54  ;;  %v17046_v54 = vld [vmem:[#allocation19_spill] sm:$0xff] }
 0x2e4   : > { %12194 = vmatprep.mubr.msk.f32.mxu1 %vm462_vm0, %v14944_v25  ;;  %v17047_v25 = vld [vmem:[#allocation20_spill] sm:$0xff] }
 0x2e7   : > { %12195 = vmatmul.mubr.msk.f32.gmra.mrb[26].mxu1 %vm462_vm0, %v14951_v0  ;;  %v17048_v0 = vld [vmem:[#allocation21_spill] sm:$0xff] }
 0x2e8   : > { %12197 = vmatprep.mubr.msk.f32.mxu1 %vm462_vm0, %v14962_v6  ;;  %v17049_v6 = vld [vmem:[#allocation22_spill] sm:$0xff] }
 0x2eb   : > { %12198 = vmatmul.mubr.msk.f32.gmra.mrb[28].mxu1 %vm462_vm0, %v14969_v15  ;;  %v17050_v15 = vld [vmem:[#allocation23_spill] sm:$0xff] }
 0x2ec   : > { %12200 = vmatprep.mubr.msk.f32.mxu1 %vm462_vm0, %v14986_v23  ;;  %v17051_v23 = vld [vmem:[#allocation24_spill] sm:$0xff] }
 0x2ef   : > { %12201 = vmatmul.mubr.msk.f32.gmra.mrb[30].mxu1 %vm462_vm0, %v14993_v7  ;;  %v17052_v7 = vld [vmem:[#allocation25_spill] sm:$0xff] }
 0x2f0   : > { %12203 = vmatprep.mubr.msk.f32.mxu1 %vm462_vm0, %v15009_v27  ;;  %v17053_v27 = vld [vmem:[#allocation26_spill] sm:$0xff] }
 0x2f3   : > { %12204 = vmatmul.mubr.msk.f32.gmra.mrb[0].mxu1 %vm462_vm0, %v17038_v10  ;;  %v17063_v10 = vld [vmem:[#allocation36_spill] sm:$0xff] }
 0x2f4   : > { %12206 = vmatprep.mubr.msk.f32.mxu1 %vm462_vm0, %v17039_v48  ;;  %v17064_v48 = vld [vmem:[#allocation37_spill] sm:$0xff] }
 0x2f7   : > { %12207 = vmatmul.mubr.msk.f32.gmra.mrb[2].mxu1 %vm462_vm0, %v17040_v40  ;;  %v17065_v40 = vld [vmem:[#allocation38_spill] sm:$0xff] }
 0x2f8   : > { %12209 = vmatprep.mubr.msk.f32.mxu1 %vm462_vm0, %v17041_v55  ;;  %v17066_v55 = vld [vmem:[#allocation39_spill] sm:$0xff] }
 0x2fb   : > { %12210 = vmatmul.mubr.msk.f32.gmra.mrb[4].mxu1 %vm462_vm0, %v17042_v61  ;;  %v17067_v61 = vld [vmem:[#allocation40_spill] sm:$0xff] }
 0x2fc   : > { %12212 = vmatprep.mubr.msk.f32.mxu1 %vm462_vm0, %v15520_v5 }
 0x2ff   : > { %12213 = vmatmul.mubr.msk.f32.gmra.mrb[6].mxu1 %vm462_vm0, %v15524_v18 }
 0x300   : > { %12223 = vmatprep.mubr.msk.f32.mxu1 %vm462_vm0, %v15195_v11  ;;  %v17054_v11 = vld [vmem:[#allocation27_spill] sm:$0xff] }
 0x303   : > { %12224 = vmatmul.mubr.msk.f32.vlgmr.msra.gmra.mrb[8].mxu1 %vm462_vm0, %v15202_v30  ;;  %v17055_v30 = vld [vmem:[#allocation28_spill] sm:$0xff] }
 0x304   : > { %12788 = vmatpush3.bf16.msra.mxu1 %v12785_v59  ;;  %12226 = vmatprep.mubr.msk.f32.mxu1 %vm462_vm0, %v17043_v37  ;;  %v17062_v59 = vld [vmem:[#allocation35_spill] sm:$0xff] }
 0x305   : > { %12790 = vmatprep.subr.bf16.mxu1 %v12789_v1 }
 0x307   : > { %12227 = vmatmul.mubr.msk.f32.gmra.mrb[10].mxu1 %vm462_vm0, %v17044_v12 }
 0x308   : > { %12229 = vmatprep.mubr.msk.f32.mxu1 %vm462_vm0, %v17045_v8  ;;  %12792 = vmatpush3.bf16.msra.mxu1 %v12789_v1  ;;  %v17070_v1 = vld [vmem:[#allocation43_spill] sm:$0xff] }
 0x309   : > { %12794 = vmatprep.subr.bf16.mxu1 %v12793_v20 }
 0x30b   : > { %12230 = vmatmul.mubr.msk.f32.gmra.mrb[12].mxu1 %vm462_vm0, %v17046_v54 }
 0x30c   : > { %12232 = vmatprep.mubr.msk.f32.mxu1 %vm462_vm0, %v17047_v25 }
 0x30f   : > { %12233 = vmatmul.mubr.msk.f32.gmra.mrb[14].mxu1 %vm462_vm0, %v17048_v0 }
 0x310   : > { %12235 = vmatprep.mubr.msk.f32.mxu1 %vm462_vm0, %v17049_v6 }
 0x313   : > { %12236 = vmatmul.mubr.msk.f32.gmra.mrb[16].mxu1 %vm462_vm0, %v17050_v15 }
 0x314   : > { %12238 = vmatprep.mubr.msk.f32.mxu1 %vm462_vm0, %v17051_v23 }
 0x317   : > { %12239 = vmatmul.mubr.msk.f32.gmra.mrb[18].mxu1 %vm462_vm0, %v17052_v7 }
 0x318   : > { %12241 = vmatprep.mubr.msk.f32.mxu1 %vm462_vm0, %v17053_v27 }
 0x31b   : > { %12242 = vmatmul.mubr.msk.f32.gmra.mrb[20].mxu1 %vm462_vm0, %v17054_v11 }
 0x31c   : > { %12244 = vmatprep.mubr.msk.f32.mxu1 %vm462_vm0, %v17055_v30 }
 0x31f   : > { %12245 = vmatmul.mubr.msk.f32.gmra.mrb[22].mxu1 %vm462_vm0, %v17056_v47 }
 0x320   : > { %12247 = vmatprep.mubr.msk.f32.mxu1 %vm462_vm0, %v17057_v60 }
 0x323   : > { %12248 = vmatmul.mubr.msk.f32.gmra.mrb[24].mxu1 %vm462_vm0, %v17058_v39 }
 0x324   : > { %12250 = vmatprep.mubr.msk.f32.mxu1 %vm462_vm0, %v17059_v4 }
 0x327   : > { %12251 = vmatmul.mubr.msk.f32.gmra.mrb[26].mxu1 %vm462_vm0, %v17060_v53 }
 0x328   : > { %12253 = vmatprep.mubr.msk.f32.mxu1 %vm462_vm0, %v17061_v36 }
 0x32b   : > { %12254 = vmatmul.mubr.msk.f32.gmra.mrb[28].mxu1 %vm462_vm0, %v17062_v59 }
 0x32c   : > { %12256 = vmatprep.mubr.msk.f32.mxu1 %vm462_vm0, %v17063_v10 }
 0x32f   : > { %12257 = vmatmul.mubr.msk.f32.gmra.mrb[30].mxu1 %vm462_vm0, %v17064_v48 }
 0x330   : > { %12259 = vmatprep.mubr.msk.f32.mxu1 %vm462_vm0, %v17065_v40 }
 0x333   : > { %12260 = vmatmul.mubr.msk.f32.gmra.mrb[0].mxu1 %vm462_vm0, %v17066_v55 }
 0x334   : > { %12262 = vmatprep.mubr.msk.f32.mxu1 %vm462_vm0, %v17067_v61 }
 0x337   : > { %12263 = vmatmul.mubr.msk.f32.gmra.mrb[2].mxu1 %vm462_vm0, %v17068_v9 }
 0x338   : > { %12265 = vmatprep.mubr.msk.f32.mxu1 %vm462_vm0, %v17069_v35 }
 0x33b   : > { %12266 = vmatmul.mubr.msk.f32.gmra.mrb[4].mxu1 %vm462_vm0, %v17070_v1  ;;  %v5342_v1 = vld [vmem:[%s16816_s2 + $0x108] sm:$0xff] }
 0x33c   : > { %12268 = vmatprep.mubr.msk.f32.mxu1 %vm462_vm0, %v15600_v46  ;;  %v5341_v46 = vld [vmem:[%s16816_s2 + $0x100] sm:$0xff] }
 0x33f   : > { %12269 = vmatmul.mubr.msk.f32.gmra.mrb[6].mxu1 %vm462_vm0, %v15604_v2  ;;  %v12801_v2 = vpack.c.bf16 %v5342_v1, %v5341_v46  ;;  %v4945_v1 = vld [vmem:[#allocation2 + $0x159] sm:$0xff]  ;;  %v4946_v46 = vld [vmem:[#allocation2 + $0x169] sm:$0xff] }
 0x340   : > { %12279 = vmatprep.mubr.msk.f32.mxu1 %vm462_vm0, %v15064_v58  ;;  %v17073_v58 = vld [vmem:[#allocation15_spill] sm:$0xff] }
 0x343   : > { %12280 = vmatmul.mubr.msk.f32.vlgmr.msra.gmra.mrb[8].mxu1 %vm462_vm0, %v15069_v21  ;;  %v17074_v21 = vld [vmem:[#allocation62_spill] sm:$0xff] }
 0x344   : > { %12796 = vmatpush3.bf16.msra.mxu1 %v12793_v20  ;;  %12282 = vmatprep.mubr.msk.f32.mxu1 %vm462_vm0, %v15073_v34  ;;  %v4561_v34 = vld [vmem:[#allocation2 + $0x198] sm:$0xff] }
 0x345   : > { %12798 = vmatprep.subr.bf16.mxu1 %v12797_v57  ;;  %v4944_v20 = vld [vmem:[#allocation2 + $0x151] sm:$0xff] }
 0x347   : > { %12283 = vmatmul.mubr.msk.f32.gmra.mrb[10].mxu1 %vm462_vm0, %v15077_v33  ;;  %v4562_v33 = vld [vmem:[#allocation2 + $0x1a0] sm:$0xff] }
 0x348   : > { %12285 = vmatprep.mubr.msk.f32.mxu1 %vm462_vm0, %v15081_v14  ;;  %12800 = vmatpush3.bf16.msra.mxu1 %v12797_v57  ;;  %v5343_v14 = vld [vmem:[%s16816_s2 + $0x110] sm:$0xff]  ;;  %v4943_v57 = vld [vmem:[#allocation2 + $0x141] sm:$0xff] }
 0x349   : > { %12802 = vmatprep.subr.bf16.mxu1 %v12801_v2 }
 0x34b   : > { %12286 = vmatmul.mubr.msk.f32.gmra.mrb[12].mxu1 %vm462_vm0, %v15085_v56  ;;  %v5344_v56 = vld [vmem:[%s16816_s2 + $0x118] sm:$0xff] }
 0x34c   : > { %12288 = vmatprep.mubr.msk.f32.mxu1 %vm462_vm0, %v15089_v45  ;;  %v4920_v45 = vld [vmem:[#allocation2 + $0x31] sm:$0xff] }
 0x34f   : > { %12289 = vmatmul.mubr.msk.f32.gmra.mrb[14].mxu1 %vm462_vm0, %v15093_v19  ;;  %v12805_v19 = vpack.c.bf16 %v5344_v56, %v5343_v14 }
 0x350   : > { %12291 = vmatprep.mubr.msk.f32.mxu1 %vm462_vm0, %v15097_v42  ;;  %v4921_v42 = vld [vmem:[#allocation2 + $0x39] sm:$0xff] }
 0x353   : > { %12292 = vmatmul.mubr.msk.f32.gmra.mrb[16].mxu1 %vm462_vm0, %v15105_v52  ;;  %v4922_v52 = vld [vmem:[#allocation2 + $0x49] sm:$0xff] }
 0x354   : > { %12294 = vmatprep.mubr.msk.f32.mxu1 %vm462_vm0, %v15109_v17  ;;  %v4923_v17 = vld [vmem:[#allocation2 + $0x51] sm:$0xff] }
 0x357   : > { %12295 = vmatmul.mubr.msk.f32.gmra.mrb[18].mxu1 %vm462_vm0, %v15113_v22  ;;  %v4924_v22 = vld [vmem:[#allocation2 + $0x61] sm:$0xff] }
 0x358   : > { %12297 = vmatprep.mubr.msk.f32.mxu1 %vm462_vm0, %v15117_v32  ;;  %v4925_v32 = vld [vmem:[#allocation2 + $0x69] sm:$0xff] }
 0x35b   : > { %12298 = vmatmul.mubr.msk.f32.gmra.mrb[20].mxu1 %vm462_vm0, %v15121_v16  ;;  %v4926_v16 = vld [vmem:[#allocation2 + $0x79] sm:$0xff] }
 0x35c   : > { %12300 = vmatprep.mubr.msk.f32.mxu1 %vm462_vm0, %v15125_v3  ;;  %v4927_v3 = vld [vmem:[#allocation2 + $0x81] sm:$0xff] }
 0x35f   : > { %12301 = vmatmul.mubr.msk.f32.gmra.mrb[22].mxu1 %vm462_vm0, %v15129_v51  ;;  %v4928_v51 = vld [vmem:[#allocation2 + $0x91] sm:$0xff] }
 0x360   : > { %12303 = vmatprep.mubr.msk.f32.mxu1 %vm462_vm0, %v15133_v43  ;;  %v4929_v43 = vld [vmem:[#allocation2 + $0x99] sm:$0xff] }
 0x363   : > { %12304 = vmatmul.mubr.msk.f32.gmra.mrb[24].mxu1 %vm462_vm0, %v15137_v29  ;;  %v4930_v29 = vld [vmem:[#allocation2 + $0xa9] sm:$0xff] }
 0x364   : > { %12306 = vmatprep.mubr.msk.f32.mxu1 %vm462_vm0, %v15141_v63  ;;  %v4931_v63 = vld [vmem:[#allocation2 + $0xb1] sm:$0xff] }
 0x367   : > { %12307 = vmatmul.mubr.msk.f32.gmra.mrb[26].mxu1 %vm462_vm0, %v15145_v24  ;;  %v4932_v24 = vld [vmem:[#allocation2 + $0xc1] sm:$0xff] }
 0x368   : > { %12309 = vmatprep.mubr.msk.f32.mxu1 %vm462_vm0, %v15149_v28  ;;  %v4933_v28 = vld [vmem:[#allocation2 + $0xc9] sm:$0xff] }
 0x36b   : > { %12310 = vmatmul.mubr.msk.f32.gmra.mrb[28].mxu1 %vm462_vm0, %v15153_v49  ;;  %v4934_v49 = vld [vmem:[#allocation2 + $0xd9] sm:$0xff] }
 0x36c   : > { %12312 = vmatprep.mubr.msk.f32.mxu1 %vm462_vm0, %v15157_v41  ;;  %v4935_v41 = vld [vmem:[#allocation2 + $0xe1] sm:$0xff] }
 0x36f   : > { %12313 = vmatmul.mubr.msk.f32.gmra.mrb[30].mxu1 %vm462_vm0, %v15161_v50  ;;  %v4936_v50 = vld [vmem:[#allocation2 + $0xf1] sm:$0xff] }
 0x370   : > { %12315 = vmatprep.mubr.msk.f32.mxu1 %vm462_vm0, %v15165_v62  ;;  %v4937_v62 = vld [vmem:[#allocation2 + $0xf9] sm:$0xff] }
 0x373   : > { %12316 = vmatmul.mubr.msk.f32.gmra.mrb[0].mxu1 %vm462_vm0, %v15169_v44  ;;  %v4938_v44 = vld [vmem:[#allocation2 + $0x109] sm:$0xff] }
 0x374   : > { %12318 = vmatprep.mubr.msk.f32.mxu1 %vm462_vm0, %v15173_v31  ;;  %v4939_v31 = vld [vmem:[#allocation2 + $0x111] sm:$0xff] }
 0x377   : > { %12319 = vmatmul.mubr.msk.f32.gmra.mrb[2].mxu1 %vm462_vm0, %v17073_v58  ;;  %v4950_v58 = vld [vmem:[#allocation2 + $0x199] sm:$0xff] }
 0x378   : > { %12321 = vmatprep.mubr.msk.f32.mxu1 %vm462_vm0, %v17074_v21  ;;  %v4951_v21 = vld [vmem:[#allocation2 + $0x1a1] sm:$0xff] }
 0x37b   : > { %12322 = vmatmul.mubr.msk.f32.gmra.mrb[4].mxu1 %vm462_vm0, %v15437_v26  ;;  %v4942_v26 = vld [vmem:[#allocation2 + $0x139] sm:$0xff] }
 0x37c   : > { %12324 = vmatprep.mubr.msk.f32.mxu1 %vm462_vm0, %v4561_v34 }
 0x37f   : > { %12325 = vmatmul.mubr.msk.f32.gmra.mrb[6].mxu1 %vm462_vm0, %v4562_v33  ;;  %v17080_v33 = vld [vmem:[#allocation44_spill] sm:$0xff] }
 0x380   : > { %12335 = vmatprep.mubr.msk.f32.mxu1 %vm462_vm0, %v4920_v45 }
 0x383   : > { %12336 = vmatmul.mubr.msk.f32.vlgmr.msra.gmra.mrb[8].mxu1 %vm462_vm0, %v4921_v42 }
 0x384   : > { %12804 = vmatpush3.bf16.msra.mxu1 %v12801_v2  ;;  %12338 = vmatprep.mubr.msk.f32.mxu1 %vm462_vm0, %v4922_v52  ;;  %v4947_v2 = vld [vmem:[#allocation2 + $0x171] sm:$0xff] }
 0x385   : > { %12806 = vmatprep.subr.bf16.mxu1 %v12805_v19 }
 0x387   : > { %12339 = vmatmul.mubr.msk.f32.gmra.mrb[10].mxu1 %vm462_vm0, %v4923_v17 }
 0x388   : > { %12341 = vmatprep.mubr.msk.f32.mxu1 %vm462_vm0, %v4924_v22  ;;  %12808 = vmatpush3.bf16.msra.mxu1 %v12805_v19  ;;  %v17081_v19 = vld [vmem:[#allocation45_spill] sm:$0xff] }
 0x38b   : > { %12342 = vmatmul.mubr.msk.f32.gmra.mrb[12].mxu1 %vm462_vm0, %v4925_v32 }
 0x38c   : > { %12344 = vmatprep.mubr.msk.f32.mxu1 %vm462_vm0, %v4926_v16 }
 0x38f   : > { %12345 = vmatmul.mubr.msk.f32.gmra.mrb[14].mxu1 %vm462_vm0, %v4927_v3 }
 0x390   : > { %12347 = vmatprep.mubr.msk.f32.mxu1 %vm462_vm0, %v4928_v51 }
 0x393   : > { %12348 = vmatmul.mubr.msk.f32.gmra.mrb[16].mxu1 %vm462_vm0, %v4929_v43 }
 0x394   : > { %12350 = vmatprep.mubr.msk.f32.mxu1 %vm462_vm0, %v4930_v29  ;;  %v17082_v29 = vld [vmem:[#allocation46_spill] sm:$0xff] }
 0x397   : > { %12351 = vmatmul.mubr.msk.f32.gmra.mrb[18].mxu1 %vm462_vm0, %v4931_v63 }
 0x398   : > { %12353 = vmatprep.mubr.msk.f32.mxu1 %vm462_vm0, %v4932_v24 }
 0x39b   : > { %12354 = vmatmul.mubr.msk.f32.gmra.mrb[20].mxu1 %vm462_vm0, %v4933_v28 }
 0x39c   : > { %12356 = vmatprep.mubr.msk.f32.mxu1 %vm462_vm0, %v4934_v49 }
 0x39f   : > { %12357 = vmatmul.mubr.msk.f32.gmra.mrb[22].mxu1 %vm462_vm0, %v4935_v41 }
 0x3a0   : > { %12359 = vmatprep.mubr.msk.f32.mxu1 %vm462_vm0, %v4936_v50  ;;  %v17083_v50 = vld [vmem:[#allocation47_spill] sm:$0xff] }
 0x3a3   : > { %12360 = vmatmul.mubr.msk.f32.gmra.mrb[24].mxu1 %vm462_vm0, %v4937_v62 }
 0x3a4   : > { %12362 = vmatprep.mubr.msk.f32.mxu1 %vm462_vm0, %v4938_v44 }
 0x3a7   : > { %12363 = vmatmul.mubr.msk.f32.gmra.mrb[26].mxu1 %vm462_vm0, %v4939_v31 }
 0x3a8   : > { %12365 = vmatprep.mubr.msk.f32.mxu1 %vm462_vm0, %v4940_v38 }
 0x3ab   : > { %12366 = vmatmul.mubr.msk.f32.gmra.mrb[28].mxu1 %vm462_vm0, %v4941_v13 }
 0x3ac   : > { %12368 = vmatprep.mubr.msk.f32.mxu1 %vm462_vm0, %v4942_v26 }
 0x3af   : > { %12369 = vmatmul.mubr.msk.f32.gmra.mrb[30].mxu1 %vm462_vm0, %v4943_v57 }
 0x3b0   : > { %12371 = vmatprep.mubr.msk.f32.mxu1 %vm462_vm0, %v4944_v20 }
 0x3b3   : > { %12372 = vmatmul.mubr.msk.f32.gmra.mrb[0].mxu1 %vm462_vm0, %v4945_v1 }
 0x3b4   : > { %12374 = vmatprep.mubr.msk.f32.mxu1 %vm462_vm0, %v4946_v46 }
 0x3b7   : > { %12375 = vmatmul.mubr.msk.f32.gmra.mrb[2].mxu1 %vm462_vm0, %v4947_v2 }
 0x3b8   : > { %12377 = vmatprep.mubr.msk.f32.mxu1 %vm462_vm0, %v15520_v5  ;;  %v17075_v5 = vld [vmem:[#allocation43_spill] sm:$0xff] }
 0x3bb   : > { %12378 = vmatmul.mubr.msk.f32.gmra.mrb[4].mxu1 %vm462_vm0, %v15524_v18  ;;  %v17076_v18 = vld [vmem:[#allocation9_spill] sm:$0xff] }
 0x3bc   : > { %12380 = vmatprep.mubr.msk.f32.mxu1 %vm462_vm0, %v4950_v58 }
 0x3bf   : > { %12381 = vmatmul.mubr.msk.f32.gmra.mrb[6].mxu1 %vm462_vm0, %v4951_v21 }
 0x3c0   : > { %12391 = vmatprep.mubr.msk.f32.mxu1 %vm462_vm0, %v17043_v37  ;;  %v5339_v37 = vld [vmem:[#allocation2 + $0x19a] sm:$0xff] }
 0x3c3   : > { %12392 = vmatmul.mubr.msk.f32.vlgmr.msra.gmra.mrb[8].mxu1 %vm462_vm0, %v17044_v12  ;;  %v17077_v12 = vld [vmem:[#allocation8_spill] sm:$0xff] }
 0x3c4   : > { %12394 = vmatprep.mubr.msk.f32.mxu1 %vm462_vm0, %v17045_v8  ;;  %v5340_v8 = vld [vmem:[#allocation2 + $0x1a2] sm:$0xff] }
 0x3c7   : > { %12395 = vmatmul.mubr.msk.f32.gmra.mrb[10].mxu1 %vm462_vm0, %v17046_v54  ;;  %v7524_v54 = vld [vmem:[%s16817_s3 + $0x20] sm:$0xff] }
 0x3c8   : > { %12397 = vmatprep.mubr.msk.f32.mxu1 %vm462_vm0, %v17047_v25  ;;  %v7525_v25 = vld [vmem:[%s16817_s3 + $0x28] sm:$0xff] }
 0x3cb   : > { %12398 = vmatmul.mubr.msk.f32.gmra.mrb[12].mxu1 %vm462_vm0, %v17048_v0  ;;  %v12809_v0 = vpack.c.bf16 %v7525_v25, %v7524_v54 }
 0x3cc   : > { %12400 = vmatprep.mubr.msk.f32.mxu1 %vm462_vm0, %v17049_v6  ;;  %v7526_v6 = vld [vmem:[%s16817_s3 + $0x30] sm:$0xff] }
 0x3cd   : > { %12810 = vmatprep.subr.bf16.mxu0 %v12809_v0 }
 0x3ce   : > { %12812 = vmatpush3.bf16.msra.mxu0 %v12809_v0 }
 0x3cf   : > { %12401 = vmatmul.mubr.msk.f32.gmra.mrb[14].mxu1 %vm462_vm0, %v17050_v15  ;;  %v7527_v15 = vld [vmem:[%s16817_s3 + $0x38] sm:$0xff] }
 0x3d0   : > { %12403 = vmatprep.mubr.msk.f32.mxu1 %vm462_vm0, %v17051_v23  ;;  %v12813_v23 = vpack.c.bf16 %v7527_v15, %v7526_v6 }
 0x3d2   : > { %12814 = vmatprep.subr.bf16.mxu0 %v12813_v23 }
 0x3d3   : > { %12404 = vmatmul.mubr.msk.f32.gmra.mrb[16].mxu1 %vm462_vm0, %v17052_v7  ;;  %12816 = vmatpush3.bf16.msra.mxu0 %v12813_v23  ;;  %v7516_v7 = vld [vmem:[#allocation3 + $0x1] sm:$0xff] }
 0x3d4   : > { %12406 = vmatprep.mubr.msk.f32.mxu1 %vm462_vm0, %v17053_v27  ;;  %12447 = vmatprep.mubr.msk.f32.mxu0 %vm462_vm0, %v7516_v7  ;;  %v13432_v27 = vmov 1983009808  }
 0x3d7   : > { %12407 = vmatmul.mubr.msk.f32.gmra.mrb[18].mxu1 %vm462_vm0, %v17054_v11  ;;  %v5836_v11 = vunpack.c.l.s4 %v13432_v27 }
 0x3d8   : > { %12409 = vmatprep.mubr.msk.f32.mxu1 %vm462_vm0, %v17055_v30  ;;  %v5838_v30 = vlaneseq }
 0x3db   : > { %12410 = vmatmul.mubr.msk.f32.gmra.mrb[20].mxu1 %vm462_vm0, %v17056_v47  ;;  %v15800_v47 = vld [vmem:[%s16819_s5 + $0x1] ss:$0 sm:$0xff] }
 0x3dc   : > { %12412 = vmatprep.mubr.msk.f32.mxu1 %vm462_vm0, %v17057_v60 }
 0x3df   : > { %12413 = vmatmul.mubr.msk.f32.gmra.mrb[22].mxu1 %vm462_vm0, %v17058_v39  ;;  %v17078_v39 = vld [vmem:[#allocation14_spill] sm:$0xff] }
 0x3e0   : > { %12415 = vmatprep.mubr.msk.f32.mxu1 %vm462_vm0, %v17059_v4 }
 0x3e3   : > { %12416 = vmatmul.mubr.msk.f32.gmra.mrb[24].mxu1 %vm462_vm0, %v17060_v53  ;;  %v5837_v53 = vunpack.c.0.s8 %v5836_v11 }
 0x3e4   : > { %12418 = vmatprep.mubr.msk.f32.mxu1 %vm462_vm0, %v17061_v36  ;;  %v5839_v36 = vshrl.u32 %v5838_v30, 7 }
 0x3e6   : > { %v15812_v34 = vsub.s32 %v5837_v53, %v5839_v36 }
 0x3e7   : > { %12419 = vmatmul.mubr.msk.f32.gmra.mrb[26].mxu1 %vm462_vm0, %v17062_v59 }
 0x3e8   : > { %12421 = vmatprep.mubr.msk.f32.mxu1 %vm462_vm0, %v17063_v10  ;;  %v15806_v10 = vld [vmem:[%s16820_s6 + $0x1] ss:$0 sm:$0xff] }
 0x3eb   : > { %12422 = vmatmul.mubr.msk.f32.gmra.mrb[28].mxu1 %vm462_vm0, %v17064_v48  ;;  %v17079_v48 = vld [vmem:[#allocation11_spill] sm:$0xff] }
 0x3ec   : > { %12424 = vmatprep.mubr.msk.f32.mxu1 %vm462_vm0, %v17065_v40 }
 0x3ef   : > { %12425 = vmatmul.mubr.msk.f32.gmra.mrb[30].mxu1 %vm462_vm0, %v17066_v55 }
 0x3f0   : > { %12427 = vmatprep.mubr.msk.f32.mxu1 %vm462_vm0, %v17067_v61 }
 0x3f3   : > { %12428 = vmatmul.mubr.msk.f32.gmra.mrb[0].mxu1 %vm462_vm0, %v17068_v9 }
 0x3f4   : > { %12430 = vmatprep.mubr.msk.f32.mxu1 %vm462_vm0, %v17069_v35 }
 0x3f7   : > { %12431 = vmatmul.mubr.msk.f32.gmra.mrb[2].mxu1 %vm462_vm0, %v17075_v5 }
 0x3f8   : > { %12433 = vmatprep.mubr.msk.f32.mxu1 %vm462_vm0, %v17076_v18 }
 0x3fb   : > { %12434 = vmatmul.mubr.msk.f32.gmra.mrb[4].mxu1 %vm462_vm0, %v17077_v12 }
 0x3fc   : > { %12436 = vmatprep.mubr.msk.f32.mxu1 %vm462_vm0, %v5339_v37 }
 0x3ff   : > { %12437 = vmatmul.mubr.msk.f32.gmra.mrb[6].mxu1 %vm462_vm0, %v5340_v8  ;;  %v15833_v8 = vsub.s32 0, %v5839_v36 }
 0x496   : > { %v12393_v60 = vpop.f32.mrb[8].mxu1 }
 0x497   : > { %v12963_v4 = vadd.f32 %v12393_v60, %v17078_v39  ;;  %v5507_v59 = vpop.f32.mrb[9].mxu1 }
 0x498   : > { %v12964_v40 = vadd.f32 %v5507_v59, %v17079_v48 }
 0x499   : > { %v5703_v55 = vmul.f32 %v12963_v4, %v15800_v47 }
 0x49a   : > { %v5702_v61 = vmul.f32 %v12964_v40, %v15800_v47  ;;  %v12396_v9 = vpop.f32.mrb[10].mxu1 }
 0x49b   : > { %v5739_v35 = vadd.f32 %v15806_v10, %v5703_v55  ;;  %v12965_v14 = vadd.f32 %v12396_v9, %v17080_v33  ;;  %v5517_v56 = vpop.f32.mrb[11].mxu1 }
 0x49c   : > { %v5738_v45 = vadd.f32 %v15806_v10, %v5702_v61  ;;  %v12966_v42 = vadd.f32 %v5517_v56, %v17081_v19 }
 0x49d   : > { %v5771_v52 = vmax.f32 %v5739_v35, 0.0  ;;  %v5705_v17 = vmul.f32 %v12965_v14, %v15800_v47 }
 0x49e   : > { %v5770_v22 = vmax.f32 %v5738_v45, 0.0  ;;  %v5704_v32 = vmul.f32 %v12966_v42, %v15800_v47  ;;  %v12399_v16 = vpop.f32.mrb[12].mxu1 }
 0x49f   : > { %v5851_v3 = vcombine.high %v5771_v52, %v5771_v52  ;;  %v5858_v51 = vrot.slane %v5771_v52, %v15812_v34  ;;  %v5741_v43 = vadd.f32 %v15806_v10, %v5705_v17  ;;  %v12967_v63 = vadd.f32 %v12399_v16, %v17082_v29  ;;  %v5527_v24 = vpop.f32.mrb[13].mxu1 }
 0x4a0   : > { %v5834_v28 = vcombine.high %v5770_v22, %v5770_v22  ;;  %v5841_v49 = vrot.slane %v5770_v22, %v15812_v34  ;;  %v5740_v41 = vadd.f32 %v15806_v10, %v5704_v32  ;;  %v15825_v62 = vadd.f32 %v5527_v24, %v17083_v50 }
 0x4a1   : > { %v5865_v44 = vrot.slane %v5851_v3, %v15812_v34  ;;  %v5866_v31 = vcombine.high %v5858_v51, %v5858_v51  ;;  %v10849_v38 = vrot.slane %v5858_v51, 9  ;;  %v5773_v13 = vmax.f32 %v5741_v43, 0.0 }
 0x4a2   : > { %v5848_v26 = vrot.slane %v5834_v28, %v15812_v34  ;;  %v5849_v57 = vcombine.high %v5841_v49, %v5841_v49  ;;  %v10845_v20 = vrot.slane %v5841_v49, 9  ;;  %v15829_v1 = vpop.f32.mrb[14].mxu1  ;;  %v5772_v21 = vmax.f32 %v5740_v41, 0.0 }
 0x4a3   : > { %v5867_v46 = vcombine.high %v5865_v44, %v5865_v44  ;;  %v10850_v2 = vrot.slane %v5866_v31, 9  ;;  %v10851_v58 = vrot.slane %v5865_v44, 9  ;;  %v15831_v5 = vpop.f32.mrb[15].mxu1  ;;  %v6894_v18 = vmax.f32 %v5858_v51, %v10849_v38 }
 0x4a4   : > { %v5850_v37 = vcombine.high %v5848_v26, %v5848_v26  ;;  %v10846_v12 = vrot.slane %v5849_v57, 9  ;;  %v10847_v25 = vrot.slane %v5848_v26, 9  ;;  %v6890_v0 = vmax.f32 %v5841_v49, %v10845_v20 }
 0x4a5   : > { %v10852_v54 = vrot.slane %v5867_v46, 9  ;;  %v5885_v6 = vcombine.high %v5773_v13, %v5773_v13  ;;  %v15835_v15 = vmax.f32 %v5866_v31, %v10850_v2  ;;  %v6896_v23 = vmax.f32 %v5865_v44, %v10851_v58 }
 0x4a6   : > { %v10848_v7 = vrot.slane %v5850_v37, 9  ;;  %v5892_v27 = vrot.slane %v5773_v13, %v15812_v34  ;;  %v15838_v11 = vpop.f32.mrb[16].mxu1  ;;  %v6891_v30 = vmax.f32 %v5849_v57, %v10846_v12  ;;  %v5868_v39 = vcombine.high %v5772_v21, %v5772_v21 }
 0x4a7   : > { %v5899_v60 = vrot.slane %v5885_v6, %v15812_v34  ;;  %v5875_v4 = vrot.slane %v5772_v21, %v15812_v34  ;;  %v15842_v53 = vpop.f32.mrb[17].mxu1  ;;  %v15844_v36 = vmax.f32 %v5867_v46, %v10852_v54  ;;  %v5707_v40 = vmul.f32 %v12967_v63, %v15800_v47 }
 0x4a8   : > { %v5900_v59 = vcombine.high %v5892_v27, %v5892_v27  ;;  %v10857_v48 = vrot.slane %v5892_v27, 9  ;;  %v5882_v9 = vrot.slane %v5868_v39, %v15812_v34  ;;  %v6892_v49 = vmax.f32 %v5848_v26, %v10847_v25  ;;  %v17085_v39 = vld [vmem:[#allocation49_spill] sm:$0xff] }
 0x4a9   : > { %v5901_v55 = vcombine.high %v5899_v60, %v5899_v60  ;;  %v10859_v61 = vrot.slane %v5899_v60, 9  ;;  %v5883_v35 = vcombine.high %v5875_v4, %v5875_v4  ;;  %v10853_v56 = vrot.slane %v5875_v4, 9 }
 0x4aa   : > { %v10858_v33 = vrot.slane %v5900_v59, 9  ;;  %v6902_v14 = vmax.f32 %v5892_v27, %v10857_v48  ;;  %v5743_v45 = vadd.f32 %v15806_v10, %v5707_v40  ;;  %v15849_v19 = vpop.f32.mrb[18].mxu1  ;;  %v5884_v17 = vcombine.high %v5882_v9, %v5882_v9 }
 0x4ab   : > { %v10860_v42 = vrot.slane %v5901_v55, 9  ;;  %v6904_v52 = vmax.f32 %v5899_v60, %v10859_v61  ;;  %v10854_v22 = vrot.slane %v5883_v35, 9  ;;  %v15851_v32 = vpop.f32.mrb[19].mxu1  ;;  %v10855_v51 = vrot.slane %v5882_v9, 9 }
 0x4ac   : > { %v6903_v16 = vmax.f32 %v5900_v59, %v10858_v33  ;;  %v7022_v3 = vmax.f32 %v6894_v18, %v6902_v14  ;;  %v6898_v43 = vmax.f32 %v5875_v4, %v10853_v56  ;;  %v10856_v24 = vrot.slane %v5884_v17, 9 }
 0x4ad   : > { %v6905_v29 = vmax.f32 %v5901_v55, %v10860_v42  ;;  %v7024_v63 = vmax.f32 %v6896_v23, %v6904_v52  ;;  %v6899_v28 = vmax.f32 %v5883_v35, %v10854_v22  ;;  %v6900_v50 = vmax.f32 %v5882_v9, %v10855_v51 }
 0x4ae   : > { %v7023_v41 = vmax.f32 %v15835_v15, %v6903_v16  ;;  %v7018_v44 = vmax.f32 %v6890_v0, %v6898_v43  ;;  %v15854_v31 = vpop.f32.mrb[20].mxu1  ;;  %v6893_v38 = vmax.f32 %v5850_v37, %v10848_v7  ;;  %v6901_v57 = vmax.f32 %v5884_v17, %v10856_v24  ;;  %v17084_v15 = vld [vmem:[#allocation48_spill] sm:$0xff] }
 0x4af   : > { %v7025_v13 = vmax.f32 %v15844_v36, %v6905_v29  ;;  %v7019_v20 = vmax.f32 %v6891_v30, %v6899_v28  ;;  %v15857_v46 = vpop.f32.mrb[21].mxu1  ;;  %v7187_v2 = vrot.slane %v7022_v3, %v15833_v8  ;;  %v7195_v58 = vrot.slane %v7024_v63, %v15833_v8 }
 0x4b0   : > { %v7020_v21 = vmax.f32 %v6892_v49, %v6900_v50  ;;  %v5775_v26 = vmax.f32 %v5743_v45, 0.0  ;;  %v7021_v18 = vmax.f32 %v6893_v38, %v6901_v57  ;;  %v7171_v12 = vrot.slane %v7018_v44, %v15833_v8  ;;  %v17086_v50 = vld [vmem:[#allocation50_spill] sm:$0xff] }
 0x4b1   : > { %v7175_v54 = vrot.slane %v7019_v20, %v15833_v8  ;;  %v5706_v37 = vmul.f32 %v15825_v62, %v15800_v47  ;;  %v12969_v23 = vadd.f32 %v15829_v1, %v17084_v15  ;;  %v12970_v4 = vadd.f32 %v15831_v5, %v17085_v39 }
 0x4b2   : > { %v7179_v25 = vrot.slane %v7020_v21, %v15833_v8  ;;  %v5919_v0 = vcombine.high %v5775_v26, %v5775_v26  ;;  %v5926_v6 = vrot.slane %v5775_v26, %v15812_v34  ;;  %v15869_v7 = vpop.f32.mrb[22].mxu1  ;;  %v7183_v27 = vrot.slane %v7021_v18, %v15833_v8 }
 0x4b3   : > { %v7425_v30 = vsel %vm7424_vm2, %v7175_v54, %v7171_v12  ;;  %v5742_v60 = vadd.f32 %v15806_v10, %v5706_v37  ;;  %v15876_v62 = vpop.f32.mrb[23].mxu1  ;;  %v7191_v36 = vrot.slane %v7023_v41, %v15833_v8  ;;  %v7199_v40 = vrot.slane %v7025_v13, %v15833_v8  ;;  %v17087_v12 = vld [vmem:[#allocation51_spill] sm:$0xff] }
 0x4b4   : > { %v7427_v59 = vsel %vm7426_vm3, %v7179_v25, %v7425_v30  ;;  %v5933_v48 = vrot.slane %v5919_v0, %v15812_v34  ;;  %v5934_v1 = vcombine.high %v5926_v6, %v5926_v6  ;;  %v10865_v61 = vrot.slane %v5926_v6, 9  ;;  %v17088_v0 = vld [vmem:[#allocation52_spill] sm:$0xff] }
 0x4b5   : > { %v7429_v55 = vsel %vm7428_vm4, %v7183_v27, %v7427_v59  ;;  %v5774_v9 = vmax.f32 %v5742_v60, 0.0  ;;  %v5709_v5 = vmul.f32 %v12969_v23, %v15800_v47  ;;  %v5708_v14 = vmul.f32 %v12970_v4, %v15800_v47 }
 0x4b6   : > { %v7431_v35 = vsel %vm7430_vm5, %v7187_v2, %v7429_v55  ;;  %v5935_v33 = vcombine.high %v5933_v48, %v5933_v48  ;;  %v15886_v56 = vpop.f32.mrb[24].mxu1  ;;  %v10866_v42 = vrot.slane %v5934_v1, 9  ;;  %v10867_v3 = vrot.slane %v5933_v48, 9 }
 0x4b7   : > { %v7433_v45 = vsel %vm7432_vm6, %v7191_v36, %v7431_v35  ;;  %v5902_v52 = vcombine.high %v5774_v9, %v5774_v9  ;;  %v5909_v17 = vrot.slane %v5774_v9, %v15812_v34  ;;  %v15890_v22 = vpop.f32.mrb[25].mxu1  ;;  %v15896_v28 = vmax.f32 %v5926_v6, %v10865_v61 }
 0x4b8   : > { %v7435_v16 = vsel %vm7434_vm7, %v7195_v58, %v7433_v45  ;;  %v10868_v51 = vrot.slane %v5935_v33, 9  ;;  %v5745_v49 = vadd.f32 %v15806_v10, %v5709_v5  ;;  %v5744_v41 = vadd.f32 %v15806_v10, %v5708_v14 }
 0x4b9   : > { %v7437_v43 = vsel %vm7436_vm8, %v7199_v40, %v7435_v16  ;;  %v5916_v29 = vrot.slane %v5902_v52, %v15812_v34  ;;  %v5917_v63 = vcombine.high %v5909_v17, %v5909_v17  ;;  %v10861_v24 = vrot.slane %v5909_v17, 9 }
 0x4ba   : > { %7496 = vst.msk [vmem:[#allocation3 + $0x11] sm:$0xff] %vm462_vm0, %v7437_v43  ;;  %v12971_v44 = vadd.f32 %v15838_v11, %v17086_v50  ;;  %v15902_v38 = vpop.f32.mrb[26].mxu1  ;;  %v15904_v13 = vmax.f32 %v5934_v1, %v10866_v42  ;;  %v5777_v21 = vmax.f32 %v5745_v49, 0.0  ;;  %v5776_v26 = vmax.f32 %v5744_v41, 0.0 }
 0x4bb   : > { %v5918_v57 = vcombine.high %v5916_v29, %v5916_v29  ;;  %v10862_v20 = vrot.slane %v5917_v63, 9  ;;  %v10863_v2 = vrot.slane %v5916_v29, 9  ;;  %v15906_v58 = vpop.f32.mrb[27].mxu1  ;;  %v12972_v54 = vadd.f32 %v15842_v53, %v17087_v12 }
 0x4bc   : > { %v5711_v18 = vmul.f32 %v12971_v44, %v15800_v47  ;;  %v15911_v37 = vmax.f32 %v5933_v48, %v10867_v3  ;;  %v15913_v25 = vmax.f32 %v5935_v33, %v10868_v51  ;;  %v6906_v11 = vmax.f32 %v5909_v17, %v10861_v24 }
 0x4bd   : > { %v12973_v6 = vadd.f32 %v15849_v19, %v17088_v0  ;;  %v5953_v15 = vcombine.high %v5777_v21, %v5777_v21  ;;  %v5960_v23 = vrot.slane %v5777_v21, %v15812_v34  ;;  %v5936_v27 = vcombine.high %v5776_v26, %v5776_v26 }
 0x4be   : > { %v5943_v30 = vrot.slane %v5776_v26, %v15812_v34  ;;  %v15919_v60 = vpop.f32.mrb[28].mxu1  ;;  %v10864_v39 = vrot.slane %v5918_v57, 9  ;;  %v6907_v4 = vmax.f32 %v5917_v63, %v10862_v20  ;;  %v6908_v36 = vmax.f32 %v5916_v29, %v10863_v2 }
 0x4bf   : > { %v5747_v53 = vadd.f32 %v15806_v10, %v5711_v18  ;;  %v15922_v59 = vpop.f32.mrb[29].mxu1  ;;  %v5967_v48 = vrot.slane %v5953_v15, %v15812_v34  ;;  %v5968_v1 = vcombine.high %v5960_v23, %v5960_v23  ;;  %v10873_v40 = vrot.slane %v5960_v23, 9 }
 0x4c0   : > { %v5950_v19 = vrot.slane %v5936_v27, %v15812_v34  ;;  %v5951_v55 = vcombine.high %v5943_v30, %v5943_v30  ;;  %v10869_v61 = vrot.slane %v5943_v30, 9  ;;  %v5710_v35 = vmul.f32 %v12972_v54, %v15800_v47 }
 0x4c1   : > { %v5779_v9 = vmax.f32 %v5747_v53, 0.0  ;;  %v7517_v33 = vld [vmem:[#allocation3 + $0x11] sm:$0xff]  ;;  %v5969_v5 = vcombine.high %v5967_v48, %v5967_v48  ;;  %v10874_v14 = vrot.slane %v5968_v1, 9  ;;  %v10875_v45 = vrot.slane %v5967_v48, 9 }
 0x4c2   : > { %v6918_v42 = vmax.f32 %v5960_v23, %v10873_v40  ;;  %12448 = vmatmul.mubr.msk.f32.vlgmr.msra.gmra.mrb[152].mxu0 %vm462_vm0, %v7517_v33  ;;  %v15928_v52 = vpop.f32.mrb[30].mxu1  ;;  %v5952_v17 = vcombine.high %v5950_v19, %v5950_v19  ;;  %v10870_v16 = vrot.slane %v5951_v55, 9  ;;  %v10871_v3 = vrot.slane %v5950_v19, 9 }
 0x4c3   : > { %v6914_v51 = vmax.f32 %v5943_v30, %v10869_v61  ;;  %v15930_v43 = vpop.f32.mrb[31].mxu1  ;;  %v10876_v29 = vrot.slane %v5969_v5, 9  ;;  %v6919_v63 = vmax.f32 %v5968_v1, %v10874_v14  ;;  %v6920_v24 = vmax.f32 %v5967_v48, %v10875_v45 }
 0x4c4   : > { %v7030_v49 = vmax.f32 %v15896_v28, %v6918_v42  ;;  %v10872_v41 = vrot.slane %v5952_v17, 9  ;;  %v6915_v50 = vmax.f32 %v5951_v55, %v10870_v16  ;;  %v6916_v44 = vmax.f32 %v5950_v19, %v10871_v3 }
 0x4c5   : > { %v7026_v20 = vmax.f32 %v6906_v11, %v6914_v51  ;;  %v6921_v2 = vmax.f32 %v5969_v5, %v10876_v29  ;;  %v7031_v21 = vmax.f32 %v15904_v13, %v6919_v63  ;;  %v7032_v26 = vmax.f32 %v15911_v37, %v6920_v24 }
 0x4c6   : > { %v5746_v18 = vadd.f32 %v15806_v10, %v5710_v35  ;;  %v15936_v12 = vpop.f32.mrb[0].mxu1  ;;  %v6909_v54 = vmax.f32 %v5918_v57, %v10864_v39  ;;  %v6917_v0 = vmax.f32 %v5952_v17, %v10872_v41  ;;  %v7027_v15 = vmax.f32 %v6907_v4, %v6915_v50 }
 0x4c7   : > { %v7028_v23 = vmax.f32 %v6908_v36, %v6916_v44  ;;  %v15938_v27 = vpop.f32.mrb[1].mxu1  ;;  %v7033_v28 = vmax.f32 %v15913_v25, %v6921_v2  ;;  %v7203_v30 = vrot.slane %v7026_v20, %v15833_v8  ;;  %v5987_v11 = vcombine.high %v5779_v9, %v5779_v9 }
 0x4c8   : > { %v5713_v53 = vmul.f32 %v12973_v6, %v15800_v47  ;;  %v7029_v13 = vmax.f32 %v6909_v54, %v6917_v0  ;;  %v7207_v37 = vrot.slane %v7027_v15, %v15833_v8  ;;  %v5994_v1 = vrot.slane %v5779_v9, %v15812_v34 }
 0x4c9   : > { %v7211_v48 = vrot.slane %v7028_v23, %v15833_v8  ;;  %v7219_v57 = vrot.slane %v7030_v49, %v15833_v8  ;;  %v7223_v39 = vrot.slane %v7031_v21, %v15833_v8  ;;  %v6001_v4 = vrot.slane %v5987_v11, %v15812_v34  ;;  %v17090_v11 = vld [vmem:[#allocation54_spill] sm:$0xff] }
 0x4ca   : > { %v5778_v36 = vmax.f32 %v5746_v18, 0.0  ;;  %v15949_v25 = vpop.f32.mrb[2].mxu1  ;;  %v7215_v40 = vrot.slane %v7029_v13, %v15833_v8  ;;  %v7438_v6 = vsel %vm7424_vm2, %v7207_v37, %v7203_v30  ;;  %v6002_v19 = vcombine.high %v5994_v1, %v5994_v1 }
 0x4cb   : > { %v10881_v55 = vrot.slane %v5994_v1, 9  ;;  %v15953_v61 = vpop.f32.mrb[3].mxu1  ;;  %v7439_v35 = vsel %vm7426_vm3, %v7211_v48, %v7438_v6  ;;  %v6003_v9 = vcombine.high %v6001_v4, %v6001_v4  ;;  %v10883_v33 = vrot.slane %v6001_v4, 9  ;;  %v17092_v6 = vld [vmem:[#allocation56_spill] sm:$0xff] }
 0x4cc   : > { %v5970_v5 = vcombine.high %v5778_v36, %v5778_v36  ;;  %v7440_v14 = vsel %vm7428_vm4, %v7215_v40, %v7439_v35  ;;  %v10882_v45 = vrot.slane %v6002_v19, 9  ;;  %v5977_v42 = vrot.slane %v5778_v36, %v15812_v34 }
 0x4cd   : > { %v5749_v17 = vadd.f32 %v15806_v10, %v5713_v53  ;;  %v7227_v16 = vrot.slane %v7032_v26, %v15833_v8  ;;  %v7441_v3 = vsel %vm7430_vm5, %v7219_v57, %v7440_v14  ;;  %v10884_v51 = vrot.slane %v6003_v9, 9  ;;  %v17091_v57 = vld [vmem:[#allocation55_spill] sm:$0xff]  ;;  %v17093_v14 = vld [vmem:[#allocation57_spill] sm:$0xff] }
 0x4ce   : > { %v5984_v29 = vrot.slane %v5970_v5, %v15812_v34  ;;  %v15962_v63 = vpop.f32.mrb[4].mxu1  ;;  %v7231_v24 = vrot.slane %v7033_v28, %v15833_v8  ;;  %v7442_v49 = vsel %vm7432_vm6, %v7223_v39, %v7441_v3  ;;  %v5985_v41 = vcombine.high %v5977_v42, %v5977_v42  ;;  %v17089_v28 = vld [vmem:[#allocation53_spill] sm:$0xff] }
 0x4cf   : > { %v15966_v50 = vpop.f32.mrb[5].mxu1  ;;  %v7443_v44 = vsel %vm7434_vm7, %v7227_v16, %v7442_v49  ;;  %v15969_v20 = vmax.f32 %v5994_v1, %v10881_v55  ;;  %v15971_v2 = vmax.f32 %v6001_v4, %v10883_v33  ;;  %v10877_v21 = vrot.slane %v5977_v42, 9 }
 0x4d0   : > { %v7444_v26 = vsel %vm7436_vm8, %v7231_v24, %v7443_v44  ;;  %v6927_v18 = vmax.f32 %v6002_v19, %v10882_v45  ;;  %v5986_v54 = vcombine.high %v5984_v29, %v5984_v29  ;;  %v5781_v0 = vmax.f32 %v5749_v17, 0.0 }
 0x4d1   : > { %7497 = vst.msk [vmem:[#allocation3 + $0x21] sm:$0xff] %vm462_vm0, %v7444_v26  ;;  %v15975_v15 = vmax.f32 %v6003_v9, %v10884_v51  ;;  %v10879_v23 = vrot.slane %v5984_v29, 9  ;;  %v12974_v30 = vadd.f32 %v15851_v32, %v17089_v28  ;;  %v12975_v53 = vadd.f32 %v15854_v31, %v17090_v11 }
 0x4d2   : > { %v15981_v13 = vpop.f32.mrb[6].mxu1  ;;  %v10878_v37 = vrot.slane %v5985_v41, 9  ;;  %v6021_v48 = vcombine.high %v5781_v0, %v5781_v0  ;;  %v6028_v1 = vrot.slane %v5781_v0, %v15812_v34  ;;  %v12976_v39 = vadd.f32 %v15857_v46, %v17091_v57 }
 0x4d3   : > { %v15986_v4 = vpop.f32.mrb[7].mxu1  ;;  %v15988_v36 = vmax.f32 %v5977_v42, %v10877_v21  ;;  %v5712_v40 = vmul.f32 %v12974_v30, %v15800_v47  ;;  %v5715_v32 = vmul.f32 %v12975_v53, %v15800_v47  ;;  %v12977_v31 = vadd.f32 %v15869_v7, %v17092_v6 }
 0x4d4   : > { %v10880_v19 = vrot.slane %v5986_v54, 9  ;;  %v6035_v55 = vrot.slane %v6021_v48, %v15812_v34  ;;  %v6036_v35 = vcombine.high %v6028_v1, %v6028_v1  ;;  %v10889_v9 = vrot.slane %v6028_v1, 9 }
 0x4d5   : > { %v6924_v33 = vmax.f32 %v5984_v29, %v10879_v23  ;;  %v5748_v5 = vadd.f32 %v15806_v10, %v5712_v40  ;;  %v5751_v46 = vadd.f32 %v15806_v10, %v5715_v32  ;;  %v12978_v45 = vadd.f32 %v15876_v62, %v17093_v14 }
 0x4d6   : > { %v6037_v42 = vcombine.high %v6035_v55, %v6035_v55  ;;  %v10890_v17 = vrot.slane %v6036_v35, 9  ;;  %v10891_v16 = vrot.slane %v6035_v55, 9  ;;  %v6934_v3 = vmax.f32 %v6028_v1, %v10889_v9 }
 0x4d7   : > { %v6923_v51 = vmax.f32 %v5985_v41, %v10878_v37  ;;  %v5780_v24 = vmax.f32 %v5748_v5, 0.0  ;;  %v5783_v7 = vmax.f32 %v5751_v46, 0.0  ;;  %v5714_v49 = vmul.f32 %v12976_v39, %v15800_v47 }
 0x4d8   : > { %v10892_v44 = vrot.slane %v6037_v42, 9  ;;  %v6935_v21 = vmax.f32 %v6036_v35, %v10890_v17  ;;  %v6936_v26 = vmax.f32 %v6035_v55, %v10891_v16  ;;  %v7038_v29 = vmax.f32 %v15969_v20, %v6934_v3  ;;  %v7518_v0 = vld [vmem:[#allocation3 + $0x21] sm:$0xff] }
 0x4d9   : > { %v6004_v23 = vcombine.high %v5780_v24, %v5780_v24  ;;  %v6011_v28 = vrot.slane %v5780_v24, %v15812_v34  ;;  %v6055_v30 = vcombine.high %v5783_v7, %v5783_v7  ;;  %v6062_v62 = vrot.slane %v5783_v7, %v15812_v34  ;;  %12450 = vmatprep.mubr.msk.f32.mxu0 %vm462_vm0, %v7518_v0 }
 0x4da   : > { %v6937_v11 = vmax.f32 %v6037_v42, %v10892_v44  ;;  %v7039_v41 = vmax.f32 %v6927_v18, %v6935_v21  ;;  %v7040_v53 = vmax.f32 %v15971_v2, %v6936_v26  ;;  %v5717_v37 = vmul.f32 %v12977_v31, %v15800_v47 }
 0x4db   : > { %v6018_v48 = vrot.slane %v6004_v23, %v15812_v34  ;;  %v6019_v1 = vcombine.high %v6011_v28, %v6011_v28  ;;  %v10885_v57 = vrot.slane %v6011_v28, 9  ;;  %v6069_v20 = vrot.slane %v6055_v30, %v15812_v34 }
 0x4dc   : > { %v6925_v39 = vmax.f32 %v5986_v54, %v10880_v19  ;;  %v7041_v40 = vmax.f32 %v15975_v15, %v6937_v11  ;;  %v6070_v32 = vcombine.high %v6062_v62, %v6062_v62  ;;  %v5750_v6 = vadd.f32 %v15806_v10, %v5714_v49 }
 0x4dd   : > { %v6020_v55 = vcombine.high %v6018_v48, %v6018_v48  ;;  %v10886_v35 = vrot.slane %v6019_v1, 9  ;;  %v10887_v9 = vrot.slane %v6018_v48, 9  ;;  %v6930_v18 = vmax.f32 %v6011_v28, %v10885_v57 }
 0x4de   : > { %v7251_v2 = vrot.slane %v7038_v29, %v15833_v8  ;;  %v7255_v31 = vrot.slane %v7039_v41, %v15833_v8  ;;  %v6071_v5 = vcombine.high %v6069_v20, %v6069_v20  ;;  %v5753_v46 = vadd.f32 %v15806_v10, %v5717_v37 }
 0x4df   : > { %v10888_v14 = vrot.slane %v6020_v55, 9  ;;  %v6931_v42 = vmax.f32 %v6019_v1, %v10886_v35  ;;  %v6932_v17 = vmax.f32 %v6018_v48, %v10887_v9  ;;  %v7034_v54 = vmax.f32 %v15988_v36, %v6930_v18  ;;  %v17094_v1 = vld [vmem:[#allocation58_spill] sm:$0xff] }
 0x4e0   : > { %v7259_v15 = vrot.slane %v7040_v53, %v15833_v8  ;;  %v7263_v19 = vrot.slane %v7041_v40, %v15833_v8  ;;  %v10897_v16 = vrot.slane %v6062_v62, 9  ;;  %v10898_v3 = vrot.slane %v6070_v32, 9 }
 0x4e1   : > { %v6933_v24 = vmax.f32 %v6020_v55, %v10888_v14  ;;  %v7035_v7 = vmax.f32 %v6923_v51, %v6931_v42  ;;  %v7036_v49 = vmax.f32 %v6924_v33, %v6932_v17  ;;  %v10899_v44 = vrot.slane %v6069_v20, 9 }
 0x4e2   : > { %v7235_v21 = vrot.slane %v7034_v54, %v15833_v8  ;;  %v10900_v26 = vrot.slane %v6071_v5, 9  ;;  %v5782_v29 = vmax.f32 %v5750_v6, 0.0  ;;  %v5785_v0 = vmax.f32 %v5753_v46, 0.0 }
 0x4e3   : > { %v7037_v23 = vmax.f32 %v6925_v39, %v6933_v24  ;;  %v7239_v28 = vrot.slane %v7035_v7, %v15833_v8  ;;  %v7243_v36 = vrot.slane %v7036_v49, %v15833_v8  ;;  %v5716_v30 = vmul.f32 %v12978_v45, %v15800_v47 }
 0x4e4   : > { %v6038_v11 = vcombine.high %v5782_v29, %v5782_v29  ;;  %v6045_v41 = vrot.slane %v5782_v29, %v15812_v34  ;;  %v6089_v53 = vcombine.high %v5785_v0, %v5785_v0  ;;  %v6096_v51 = vrot.slane %v5785_v0, %v15812_v34 }
 0x4e5   : > { %v7247_v33 = vrot.slane %v7037_v23, %v15833_v8  ;;  %v7445_v37 = vsel %vm7424_vm2, %v7239_v28, %v7235_v21  ;;  %v16024_v48 = vmax.f32 %v6062_v62, %v10897_v16  ;;  %v12979_v57 = vadd.f32 %v15886_v56, %v17094_v1 }
 0x4e6   : > { %v7446_v39 = vsel %vm7426_vm3, %v7243_v36, %v7445_v37  ;;  %v16029_v40 = vmax.f32 %v6070_v32, %v10898_v3  ;;  %v6052_v45 = vrot.slane %v6038_v11, %v15812_v34  ;;  %v6053_v6 = vcombine.high %v6045_v41, %v6045_v41 }
 0x4e7   : > { %v7447_v55 = vsel %vm7428_vm4, %v7247_v33, %v7446_v39  ;;  %v6103_v35 = vrot.slane %v6089_v53, %v15812_v34  ;;  %v6104_v9 = vcombine.high %v6096_v51, %v6096_v51  ;;  %v10905_v18 = vrot.slane %v6096_v51, 9 }
 0x4e8   : > { %v7448_v46 = vsel %vm7430_vm5, %v7251_v2, %v7447_v55  ;;  %v16035_v62 = vmax.f32 %v6069_v20, %v10899_v44  ;;  %v6054_v14 = vcombine.high %v6052_v45, %v6052_v45  ;;  %v5752_v56 = vadd.f32 %v15806_v10, %v5716_v30 }
 0x4e9   : > { %v7449_v42 = vsel %vm7432_vm6, %v7255_v31, %v7448_v46  ;;  %v16039_v32 = vmax.f32 %v6071_v5, %v10900_v26  ;;  %v6105_v17 = vcombine.high %v6103_v35, %v6103_v35  ;;  %v10906_v54 = vrot.slane %v6104_v9, 9 }
 0x4ea   : > { %v7450_v16 = vsel %vm7434_vm7, %v7259_v15, %v7449_v42  ;;  %v10893_v3 = vrot.slane %v6045_v41, 9  ;;  %v10894_v24 = vrot.slane %v6053_v6, 9  ;;  %v10895_v7 = vrot.slane %v6052_v45, 9  ;;  %v17095_v15 = vld [vmem:[#allocation59_spill] sm:$0xff] }
 0x4eb   : > { %v7451_v49 = vsel %vm7436_vm8, %v7263_v19, %v7450_v16  ;;  %v10907_v21 = vrot.slane %v6103_v35, 9  ;;  %v10908_v2 = vrot.slane %v6105_v17, 9  ;;  %v6950_v20 = vmax.f32 %v6096_v51, %v10905_v18 }
 0x4ec   : > { %7498 = vst.msk [vmem:[#allocation3 + $0x31] sm:$0xff] %vm462_vm0, %v7451_v49  ;;  %v10896_v44 = vrot.slane %v6054_v14, 9  ;;  %v6951_v29 = vmax.f32 %v6104_v9, %v10906_v54  ;;  %v5784_v0 = vmax.f32 %v5752_v56, 0.0  ;;  %v5719_v31 = vmul.f32 %v12979_v57, %v15800_v47 }
 0x4ed   : > { %v6952_v5 = vmax.f32 %v6103_v35, %v10907_v21  ;;  %v6953_v26 = vmax.f32 %v6105_v17, %v10908_v2  ;;  %v7046_v23 = vmax.f32 %v16024_v48, %v6950_v20  ;;  %v12980_v28 = vadd.f32 %v15890_v22, %v17095_v15 }
 0x4ee   : > { %v7047_v36 = vmax.f32 %v16029_v40, %v6951_v29  ;;  %v6072_v19 = vcombine.high %v5784_v0, %v5784_v0  ;;  %v6079_v30 = vrot.slane %v5784_v0, %v15812_v34  ;;  %v5755_v11 = vadd.f32 %v15806_v10, %v5719_v31 }
 0x4ef   : > { %v6938_v53 = vmax.f32 %v6045_v41, %v10893_v3  ;;  %v7048_v51 = vmax.f32 %v16035_v62, %v6952_v5  ;;  %v7049_v33 = vmax.f32 %v16039_v32, %v6953_v26  ;;  %v5718_v37 = vmul.f32 %v12980_v28, %v15800_v47  ;;  %v17096_v32 = vld [vmem:[#allocation60_spill] sm:$0xff] }
 0x4f0   : > { %v6939_v1 = vmax.f32 %v6053_v6, %v10894_v24  ;;  %v6086_v48 = vrot.slane %v6072_v19, %v15812_v34  ;;  %v6087_v57 = vcombine.high %v6079_v30, %v6079_v30  ;;  %v10901_v39 = vrot.slane %v6079_v30, 9 }
 0x4f1   : > { %v6940_v22 = vmax.f32 %v6052_v45, %v10895_v7  ;;  %v6941_v55 = vmax.f32 %v6054_v14, %v10896_v44  ;;  %v5787_v40 = vmax.f32 %v5755_v11, 0.0  ;;  %v5754_v35 = vadd.f32 %v15806_v10, %v5718_v37 }
 0x4f2   : > { %v6088_v9 = vcombine.high %v6086_v48, %v6086_v48  ;;  %v10902_v18 = vrot.slane %v6087_v57, 9  ;;  %v10903_v46 = vrot.slane %v6086_v48, 9  ;;  %v6946_v41 = vmax.f32 %v6079_v30, %v10901_v39 }
 0x4f3   : > { %v6123_v56 = vcombine.high %v5787_v40, %v5787_v40  ;;  %v6130_v62 = vrot.slane %v5787_v40, %v15812_v34  ;;  %v5786_v42 = vmax.f32 %v5754_v35, 0.0  ;;  %v12981_v6 = vadd.f32 %v15902_v38, %v17096_v32  ;;  %v16059_v17 = vld [vmem:[#allocation3 + $0x31] sm:$0xff] }
 0x4f4   : > { %v10904_v54 = vrot.slane %v6088_v9, 9  ;;  %v6947_v16 = vmax.f32 %v6087_v57, %v10902_v18  ;;  %v6948_v45 = vmax.f32 %v6086_v48, %v10903_v46  ;;  %v7042_v14 = vmax.f32 %v6938_v53, %v6946_v41  ;;  %12451 = vmatmul.mubr.msk.f32.gmra.mrb[154].mxu0 %vm462_vm0, %v16059_v17  ;;  %v17097_v46 = vld [vmem:[#allocation61_spill] sm:$0xff]  ;;  %v17098_v32 = vld [vmem:[#allocation63_spill] sm:$0xff] }
 0x4f5   : > { %v7283_v3 = vrot.slane %v7046_v23, %v15833_v8  ;;  %v6137_v24 = vrot.slane %v6123_v56, %v15812_v34  ;;  %v6138_v7 = vcombine.high %v6130_v62, %v6130_v62  ;;  %v6106_v49 = vcombine.high %v5786_v42, %v5786_v42 }
 0x4f6   : > { %v6949_v21 = vmax.f32 %v6088_v9, %v10904_v54  ;;  %v7043_v2 = vmax.f32 %v6939_v1, %v6947_v16  ;;  %v7044_v20 = vmax.f32 %v6940_v22, %v6948_v45  ;;  %v10913_v44 = vrot.slane %v6130_v62, 9 }
 0x4f7   : > { %v7267_v38 = vrot.slane %v7042_v14, %v15833_v8  ;;  %v6139_v29 = vcombine.high %v6137_v24, %v6137_v24  ;;  %v10914_v0 = vrot.slane %v6138_v7, 9  ;;  %v10915_v31 = vrot.slane %v6137_v24, 9  ;;  %v17099_v14 = vld [vmem:[#allocation64_spill] sm:$0xff] }
 0x4f8   : > { %v7045_v5 = vmax.f32 %v6941_v55, %v6949_v21  ;;  %v7271_v26 = vrot.slane %v7043_v2, %v15833_v8  ;;  %v7275_v15 = vrot.slane %v7044_v20, %v15833_v8  ;;  %v6113_v23 = vrot.slane %v5786_v42, %v15812_v34 }
 0x4f9   : > { %v7287_v28 = vrot.slane %v7047_v36, %v15833_v8  ;;  %v7291_v19 = vrot.slane %v7048_v51, %v15833_v8  ;;  %v10916_v30 = vrot.slane %v6139_v29, 9  ;;  %v6120_v11 = vrot.slane %v6106_v49, %v15812_v34  ;;  %v17100_v49 = vld [vmem:[#allocation65_spill] sm:$0xff] }
 0x4fa   : > { %v7295_v53 = vrot.slane %v7049_v33, %v15833_v8  ;;  %v7279_v37 = vrot.slane %v7045_v5, %v15833_v8  ;;  %v7452_v1 = vsel %vm7424_vm2, %v7271_v26, %v7267_v38  ;;  %v6121_v48 = vcombine.high %v6113_v23, %v6113_v23 }
 0x4fb   : > { %v7453_v57 = vsel %vm7426_vm3, %v7275_v15, %v7452_v1  ;;  %v16076_v39 = vmax.f32 %v6130_v62, %v10913_v44  ;;  %v16078_v22 = vmax.f32 %v6138_v7, %v10914_v0  ;;  %v6122_v55 = vcombine.high %v6120_v11, %v6120_v11  ;;  %v17101_v44 = vld [vmem:[#allocation66_spill] sm:$0xff] }
 0x4fc   : > { %v7454_v36 = vsel %vm7428_vm4, %v7279_v37, %v7453_v57  ;;  %v16081_v51 = vmax.f32 %v6137_v24, %v10915_v31  ;;  %v10909_v40 = vrot.slane %v6113_v23, 9  ;;  %v5721_v35 = vmul.f32 %v12981_v6, %v15800_v47 }
 0x4fd   : > { %v7455_v33 = vsel %vm7430_vm5, %v7283_v3, %v7454_v36  ;;  %v16085_v9 = vmax.f32 %v6139_v29, %v10916_v30  ;;  %v10911_v18 = vrot.slane %v6120_v11, 9  ;;  %v12982_v41 = vadd.f32 %v15906_v58, %v17097_v46 }
 0x4fe   : > { %v7456_v56 = vsel %vm7432_vm6, %v7287_v28, %v7455_v33  ;;  %v10910_v62 = vrot.slane %v6121_v48, 9  ;;  %v5757_v42 = vadd.f32 %v15806_v10, %v5721_v35  ;;  %v12983_v54 = vadd.f32 %v15919_v60, %v17098_v32 }
 0x4ff   : > { %v7457_v16 = vsel %vm7434_vm7, %v7291_v19, %v7456_v56  ;;  %v10912_v45 = vrot.slane %v6122_v55, 9  ;;  %v5720_v6 = vmul.f32 %v12982_v41, %v15800_v47  ;;  %v12984_v3 = vadd.f32 %v15922_v59, %v17099_v14 }
 0x500   : > { %v7458_v24 = vsel %vm7436_vm8, %v7295_v53, %v7457_v16  ;;  %v5789_v7 = vmax.f32 %v5757_v42, 0.0  ;;  %v5723_v58 = vmul.f32 %v12983_v54, %v15800_v47  ;;  %v12985_v21 = vadd.f32 %v15928_v52, %v17100_v49 }
 0x501   : > { %7499 = vst.msk [vmem:[#allocation3 + $0x41] sm:$0xff] %vm462_vm0, %v7458_v24  ;;  %v6954_v2 = vmax.f32 %v6113_v23, %v10909_v40  ;;  %v5756_v60 = vadd.f32 %v15806_v10, %v5720_v6  ;;  %v5722_v20 = vmul.f32 %v12984_v3, %v15800_v47  ;;  %v12986_v38 = vadd.f32 %v15930_v43, %v17101_v44 }
 0x502   : > { %v6956_v29 = vmax.f32 %v6120_v11, %v10911_v18  ;;  %v6157_v59 = vcombine.high %v5789_v7, %v5789_v7  ;;  %v6164_v0 = vrot.slane %v5789_v7, %v15812_v34  ;;  %v5759_v31 = vadd.f32 %v15806_v10, %v5723_v58 }
 0x503   : > { %v6955_v5 = vmax.f32 %v6121_v48, %v10910_v62  ;;  %v6957_v26 = vmax.f32 %v6122_v55, %v10912_v45  ;;  %v5788_v15 = vmax.f32 %v5756_v60, 0.0  ;;  %v5758_v52 = vadd.f32 %v15806_v10, %v5722_v20 }
 0x504   : > { %v6171_v23 = vrot.slane %v6157_v59, %v15812_v34  ;;  %v6172_v28 = vcombine.high %v6164_v0, %v6164_v0  ;;  %v10921_v19 = vrot.slane %v6164_v0, 9  ;;  %v5727_v30 = vmul.f32 %v15936_v12, %v15800_v47 }
 0x505   : > { %v6140_v53 = vcombine.high %v5788_v15, %v5788_v15  ;;  %v6147_v43 = vrot.slane %v5788_v15, %v15812_v34  ;;  %v5791_v11 = vmax.f32 %v5759_v31, 0.0  ;;  %v5725_v37 = vmul.f32 %v12985_v21, %v15800_v47 }
 0x506   : > { %v6173_v1 = vcombine.high %v6171_v23, %v6171_v23  ;;  %v10922_v57 = vrot.slane %v6172_v28, 9  ;;  %v10923_v48 = vrot.slane %v6171_v23, 9  ;;  %v6966_v55 = vmax.f32 %v6164_v0, %v10921_v19 }
 0x507   : > { %v6154_v36 = vrot.slane %v6140_v53, %v15812_v34  ;;  %v6155_v40 = vcombine.high %v6147_v43, %v6147_v43  ;;  %v10917_v35 = vrot.slane %v6147_v43, 9  ;;  %v5790_v33 = vmax.f32 %v5758_v52, 0.0 }
 0x508   : > { %v10924_v18 = vrot.slane %v6173_v1, 9  ;;  %v6967_v46 = vmax.f32 %v6172_v28, %v10922_v57  ;;  %v6968_v41 = vmax.f32 %v6171_v23, %v10923_v48  ;;  %v7054_v12 = vmax.f32 %v16076_v39, %v6966_v55  ;;  %v16116_v56 = vld [vmem:[#allocation3 + $0x41] sm:$0xff] }
 0x509   : > { %v6156_v62 = vcombine.high %v6154_v36, %v6154_v36  ;;  %v10918_v42 = vrot.slane %v6155_v40, 9  ;;  %v10919_v32 = vrot.slane %v6154_v36, 9  ;;  %v6962_v54 = vmax.f32 %v6147_v43, %v10917_v35  ;;  %12453 = vmatprep.mubr.msk.f32.mxu0 %vm462_vm0, %v16116_v56 }
 0x50a   : > { %v6969_v16 = vmax.f32 %v6173_v1, %v10924_v18  ;;  %v7055_v45 = vmax.f32 %v16078_v22, %v6967_v46  ;;  %v7056_v6 = vmax.f32 %v16081_v51, %v6968_v41  ;;  %v6191_v14 = vcombine.high %v5791_v11, %v5791_v11 }
 0x50b   : > { %v10920_v3 = vrot.slane %v6156_v62, 9  ;;  %v6963_v24 = vmax.f32 %v6155_v40, %v10918_v42  ;;  %v6964_v7 = vmax.f32 %v6154_v36, %v10919_v32  ;;  %v7050_v58 = vmax.f32 %v6954_v2, %v6962_v54 }
 0x50c   : > { %v7057_v39 = vmax.f32 %v16085_v9, %v6969_v16  ;;  %v6198_v49 = vrot.slane %v5791_v11, %v15812_v34  ;;  %v5724_v21 = vmul.f32 %v12986_v38, %v15800_v47  ;;  %v5763_v60 = vadd.f32 %v15806_v10, %v5727_v30 }
 0x50d   : > { %v6965_v20 = vmax.f32 %v6156_v62, %v10920_v3  ;;  %v7051_v44 = vmax.f32 %v6955_v5, %v6963_v24  ;;  %v7052_v59 = vmax.f32 %v6956_v29, %v6964_v7  ;;  %v5761_v22 = vadd.f32 %v15806_v10, %v5725_v37 }
 0x50e   : > { %v7315_v51 = vrot.slane %v7054_v12, %v15833_v8  ;;  %v7299_v0 = vrot.slane %v7050_v58, %v15833_v8  ;;  %v6205_v31 = vrot.slane %v6191_v14, %v15812_v34  ;;  %v6206_v2 = vcombine.high %v6198_v49, %v6198_v49 }
 0x50f   : > { %v7053_v15 = vmax.f32 %v6957_v26, %v6965_v20  ;;  %v7303_v9 = vrot.slane %v7051_v44, %v15833_v8  ;;  %v7307_v52 = vrot.slane %v7052_v59, %v15833_v8  ;;  %v6174_v47 = vcombine.high %v5790_v33, %v5790_v33 }
 0x510   : > { %v7319_v38 = vrot.slane %v7055_v45, %v15833_v8  ;;  %v6207_v23 = vcombine.high %v6205_v31, %v6205_v31  ;;  %v10929_v5 = vrot.slane %v6198_v49, 9  ;;  %v10930_v29 = vrot.slane %v6206_v2, 9 }
 0x511   : > { %v7311_v10 = vrot.slane %v7053_v15, %v15833_v8  ;;  %v7459_v28 = vsel %vm7424_vm2, %v7303_v9, %v7299_v0  ;;  %v6181_v19 = vrot.slane %v5790_v33, %v15812_v34  ;;  %v6188_v30 = vrot.slane %v6174_v47, %v15812_v34 }
 0x512   : > { %v7323_v26 = vrot.slane %v7056_v6, %v15833_v8  ;;  %v7327_v53 = vrot.slane %v7057_v39, %v15833_v8  ;;  %v7460_v43 = vsel %vm7426_vm3, %v7307_v52, %v7459_v28  ;;  %v10931_v11 = vrot.slane %v6205_v31, 9  ;;  %v16149_v6 = vld [vmem:[%s16820_s6 + $0x1] ss:$0 sm:$0xff] }
 0x513   : > { %v7461_v37 = vsel %vm7428_vm4, %v7311_v10, %v7460_v43  ;;  %v10932_v1 = vrot.slane %v6207_v23, 9  ;;  %v6189_v57 = vcombine.high %v6181_v19, %v6181_v19  ;;  %v6190_v48 = vcombine.high %v6188_v30, %v6188_v30 }
 0x514   : > { %v7462_v55 = vsel %vm7430_vm5, %v7315_v51, %v7461_v37  ;;  %v6974_v36 = vmax.f32 %v6198_v49, %v10929_v5  ;;  %v6975_v40 = vmax.f32 %v6206_v2, %v10930_v29  ;;  %v5793_v35 = vmax.f32 %v5761_v22, 0.0 }
 0x515   : > { %v7463_v33 = vsel %vm7432_vm6, %v7319_v38, %v7462_v55  ;;  %v10925_v18 = vrot.slane %v6181_v19, 9  ;;  %v10926_v46 = vrot.slane %v6189_v57, 9  ;;  %v10927_v41 = vrot.slane %v6188_v30, 9 }
 0x516   : > { %v7464_v12 = vsel %vm7434_vm7, %v7323_v26, %v7463_v33  ;;  %v6976_v62 = vmax.f32 %v6205_v31, %v10931_v11  ;;  %v6225_v42 = vcombine.high %v5793_v35, %v5793_v35  ;;  %v6232_v32 = vrot.slane %v5793_v35, %v15812_v34 }
 0x517   : > { %v7465_v54 = vsel %vm7436_vm8, %v7327_v53, %v7464_v12  ;;  %v6977_v16 = vmax.f32 %v6207_v23, %v10932_v1  ;;  %v10928_v45 = vrot.slane %v6190_v48, 9  ;;  %v5760_v14 = vadd.f32 %v16149_v6, %v5724_v21 }
 0x518   : > { %7500 = vst.msk [vmem:[#allocation3 + $0x51] sm:$0xff] %vm462_vm0, %v7465_v54  ;;  %v6239_v3 = vrot.slane %v6225_v42, %v15812_v34  ;;  %v6240_v24 = vcombine.high %v6232_v32, %v6232_v32  ;;  %v10937_v7 = vrot.slane %v6232_v32, 9  ;;  %v5795_v58 = vmax.f32 %v5763_v60, 0.0 }
 0x519   : > { %v6970_v39 = vmax.f32 %v6181_v19, %v10925_v18  ;;  %v6971_v49 = vmax.f32 %v6189_v57, %v10926_v46  ;;  %v6972_v20 = vmax.f32 %v6188_v30, %v10927_v41  ;;  %v5792_v44 = vmax.f32 %v5760_v14, 0.0 }
 0x51a   : > { %v6241_v59 = vcombine.high %v6239_v3, %v6239_v3  ;;  %v10938_v22 = vrot.slane %v6240_v24, 9  ;;  %v10939_v51 = vrot.slane %v6239_v3, 9  ;;  %v6982_v0 = vmax.f32 %v6232_v32, %v10937_v7 }
 0x51b   : > { %v6208_v31 = vcombine.high %v5792_v44, %v5792_v44  ;;  %v6215_v2 = vrot.slane %v5792_v44, %v15812_v34  ;;  %v6259_v15 = vcombine.high %v5795_v58, %v5795_v58  ;;  %v6266_v21 = vrot.slane %v5795_v58, %v15812_v34 }
 0x51c   : > { %v10940_v9 = vrot.slane %v6241_v59, 9  ;;  %v6983_v52 = vmax.f32 %v6240_v24, %v10938_v22  ;;  %v6984_v47 = vmax.f32 %v6239_v3, %v10939_v51  ;;  %v7062_v38 = vmax.f32 %v6974_v36, %v6982_v0 }
 0x51d   : > { %v6973_v23 = vmax.f32 %v6190_v48, %v10928_v45  ;;  %v6222_v60 = vrot.slane %v6208_v31, %v15812_v34  ;;  %v6223_v5 = vcombine.high %v6215_v2, %v6215_v2  ;;  %v10933_v29 = vrot.slane %v6215_v2, 9  ;;  %v16163_v48 = vld [vmem:[%s16819_s5 + $0x1] ss:$0 sm:$0xff] }
 0x51e   : > { %v6985_v10 = vmax.f32 %v6241_v59, %v10940_v9  ;;  %v7063_v28 = vmax.f32 %v6975_v40, %v6983_v52  ;;  %v7064_v19 = vmax.f32 %v6976_v62, %v6984_v47  ;;  %v6273_v30 = vrot.slane %v6259_v15, %v15812_v34 }
 0x51f   : > { %v6224_v26 = vcombine.high %v6222_v60, %v6222_v60  ;;  %v10934_v53 = vrot.slane %v6223_v5, 9  ;;  %v10935_v43 = vrot.slane %v6222_v60, 9  ;;  %v6978_v11 = vmax.f32 %v6215_v2, %v10933_v29  ;;  %v16158_v37 = vld [vmem:[#allocation3 + $0x51] sm:$0xff] }
 0x520   : > { %v7065_v1 = vmax.f32 %v6977_v16, %v6985_v10  ;;  %v6274_v57 = vcombine.high %v6266_v21, %v6266_v21  ;;  %v5726_v55 = vmul.f32 %v16163_v48, %v15938_v27  ;;  %v5729_v36 = vmul.f32 %v16163_v48, %v15949_v25  ;;  %12454 = vmatmul.mubr.msk.f32.gmra.mrb[156].mxu0 %vm462_vm0, %v16158_v37 }
 0x521   : > { %v10936_v40 = vrot.slane %v6224_v26, 9  ;;  %v6979_v35 = vmax.f32 %v6223_v5, %v10934_v53  ;;  %v6980_v33 = vmax.f32 %v6222_v60, %v10935_v43  ;;  %v7058_v18 = vmax.f32 %v6970_v39, %v6978_v11 }
 0x522   : > { %v7347_v46 = vrot.slane %v7062_v38, %v15833_v8  ;;  %v7351_v41 = vrot.slane %v7063_v28, %v15833_v8  ;;  %v6275_v12 = vcombine.high %v6273_v30, %v6273_v30  ;;  %v5728_v62 = vmul.f32 %v16163_v48, %v15953_v61 }
 0x523   : > { %v6981_v42 = vmax.f32 %v6224_v26, %v10936_v40  ;;  %v7059_v27 = vmax.f32 %v6971_v49, %v6979_v35  ;;  %v7060_v32 = vmax.f32 %v6972_v20, %v6980_v33  ;;  %v10945_v54 = vrot.slane %v6266_v21, 9 }
 0x524   : > { %v7355_v25 = vrot.slane %v7064_v19, %v15833_v8  ;;  %v7359_v16 = vrot.slane %v7065_v1, %v15833_v8  ;;  %v7331_v45 = vrot.slane %v7058_v18, %v15833_v8  ;;  %v10946_v14 = vrot.slane %v6274_v57, 9 }
 0x525   : > { %v7061_v3 = vmax.f32 %v6973_v23, %v6981_v42  ;;  %v7335_v24 = vrot.slane %v7059_v27, %v15833_v8  ;;  %v7339_v7 = vrot.slane %v7060_v32, %v15833_v8  ;;  %v5762_v58 = vadd.f32 %v16149_v6, %v5726_v55 }
 0x526   : > { %v10947_v39 = vrot.slane %v6273_v30, 9  ;;  %v10948_v61 = vrot.slane %v6275_v12, 9  ;;  %v5765_v49 = vadd.f32 %v16149_v6, %v5729_v36  ;;  %v5764_v20 = vadd.f32 %v16149_v6, %v5728_v62 }
 0x527   : > { %v7343_v44 = vrot.slane %v7061_v3, %v15833_v8  ;;  %v7466_v59 = vsel %vm7424_vm2, %v7335_v24, %v7331_v45  ;;  %v16185_v22 = vmax.f32 %v6266_v21, %v10945_v54  ;;  %v5794_v51 = vmax.f32 %v5762_v58, 0.0 }
 0x528   : > { %v7467_v0 = vsel %vm7426_vm3, %v7339_v7, %v7466_v59  ;;  %v16188_v31 = vmax.f32 %v6274_v57, %v10946_v14  ;;  %v5797_v2 = vmax.f32 %v5765_v49, 0.0  ;;  %v5731_v15 = vmul.f32 %v16163_v48, %v15962_v63 }
 0x529   : > { %v7468_v9 = vsel %vm7428_vm4, %v7343_v44, %v7467_v0  ;;  %v6242_v52 = vcombine.high %v5794_v51, %v5794_v51  ;;  %v6249_v47 = vrot.slane %v5794_v51, %v15812_v34  ;;  %v5796_v38 = vmax.f32 %v5764_v20, 0.0 }
 0x52a   : > { %v7469_v23 = vsel %vm7430_vm5, %v7347_v46, %v7468_v9  ;;  %v16195_v60 = vmax.f32 %v6273_v30, %v10947_v39  ;;  %v6293_v21 = vcombine.high %v5797_v2, %v5797_v2  ;;  %v6300_v5 = vrot.slane %v5797_v2, %v15812_v34 }
 0x52b   : > { %v7470_v29 = vsel %vm7432_vm6, %v7351_v41, %v7469_v23  ;;  %v16199_v10 = vmax.f32 %v6275_v12, %v10948_v61  ;;  %v6256_v28 = vrot.slane %v6242_v52, %v15812_v34  ;;  %v6257_v63 = vcombine.high %v6249_v47, %v6249_v47 }
 0x52c   : > { %v7471_v19 = vsel %vm7434_vm7, %v7355_v25, %v7470_v29  ;;  %v6307_v26 = vrot.slane %v6293_v21, %v15812_v34  ;;  %v6308_v53 = vcombine.high %v6300_v5, %v6300_v5  ;;  %v10953_v43 = vrot.slane %v6300_v5, 9 }
 0x52d   : > { %v7472_v11 = vsel %vm7436_vm8, %v7359_v16, %v7471_v19  ;;  %v6258_v30 = vcombine.high %v6256_v28, %v6256_v28  ;;  %v6276_v1 = vcombine.high %v5796_v38, %v5796_v38  ;;  %v5767_v57 = vadd.f32 %v16149_v6, %v5731_v15 }
 0x52e   : > { %7501 = vst.msk [vmem:[#allocation3 + $0x61] sm:$0xff] %vm462_vm0, %v7472_v11  ;;  %v6309_v55 = vcombine.high %v6307_v26, %v6307_v26  ;;  %v10954_v36 = vrot.slane %v6308_v53, 9  ;;  %v10955_v40 = vrot.slane %v6307_v26, 9  ;;  %v5730_v35 = vmul.f32 %v16163_v48, %v15966_v50 }
 0x52f   : > { %v10941_v33 = vrot.slane %v6249_v47, 9  ;;  %v10942_v18 = vrot.slane %v6257_v63, 9  ;;  %v10943_v46 = vrot.slane %v6256_v28, 9  ;;  %v6998_v41 = vmax.f32 %v6300_v5, %v10953_v43 }
 0x530   : > { %v10956_v12 = vrot.slane %v6309_v55, 9  ;;  %v6999_v62 = vmax.f32 %v6308_v53, %v10954_v36  ;;  %v7000_v42 = vmax.f32 %v6307_v26, %v10955_v40  ;;  %v6283_v27 = vrot.slane %v5796_v38, %v15812_v34 }
 0x531   : > { %v10944_v32 = vrot.slane %v6258_v30, 9  ;;  %v7070_v54 = vmax.f32 %v16185_v22, %v6998_v41  ;;  %v6290_v25 = vrot.slane %v6276_v1, %v15812_v34  ;;  %v5799_v16 = vmax.f32 %v5767_v57, 0.0 }
 0x532   : > { %v7001_v45 = vmax.f32 %v6309_v55, %v10956_v12  ;;  %v7071_v14 = vmax.f32 %v16188_v31, %v6999_v62  ;;  %v7072_v50 = vmax.f32 %v16195_v60, %v7000_v42  ;;  %v6291_v3 = vcombine.high %v6283_v27, %v6283_v27 }
 0x533   : > { %v6986_v24 = vmax.f32 %v6249_v47, %v10941_v33  ;;  %v6292_v7 = vcombine.high %v6290_v25, %v6290_v25  ;;  %v10949_v58 = vrot.slane %v6283_v27, 9  ;;  %v10951_v39 = vrot.slane %v6290_v25, 9 }
 0x534   : > { %v6987_v61 = vmax.f32 %v6257_v63, %v10942_v18  ;;  %v6988_v49 = vmax.f32 %v6256_v28, %v10943_v46  ;;  %v7073_v20 = vmax.f32 %v16199_v10, %v7001_v45  ;;  %v10950_v44 = vrot.slane %v6291_v3, 9 }
 0x535   : > { %v10952_v59 = vrot.slane %v6292_v7, 9  ;;  %v6994_v22 = vmax.f32 %v6283_v27, %v10949_v58  ;;  %v6996_v51 = vmax.f32 %v6290_v25, %v10951_v39  ;;  %v6327_v0 = vcombine.high %v5799_v16, %v5799_v16  ;;  %v16215_v2 = vld [vmem:[#allocation3 + $0x61] sm:$0xff] }
 0x536   : > { %v6989_v15 = vmax.f32 %v6258_v30, %v10944_v32  ;;  %v6995_v31 = vmax.f32 %v6291_v3, %v10950_v44  ;;  %v6334_v9 = vrot.slane %v5799_v16, %v15812_v34  ;;  %v5766_v52 = vadd.f32 %v16149_v6, %v5730_v35  ;;  %12456 = vmatprep.mubr.msk.f32.mxu0 %vm462_vm0, %v16215_v2  ;;  %v7512_v16 = vld [vmem:[%s16817_s3] sm:$0xff] }
 0x537   : > { %v6997_v47 = vmax.f32 %v6292_v7, %v10952_v59  ;;  %v7066_v38 = vmax.f32 %v6986_v24, %v6994_v22  ;;  %v7068_v23 = vmax.f32 %v6988_v49, %v6996_v51  ;;  %v6341_v60 = vrot.slane %v6327_v0, %v15812_v34  ;;  %v7515_v24 = vld [vmem:[%s16817_s3 + $0x18] sm:$0xff] }
 0x538   : > { %v7067_v21 = vmax.f32 %v6987_v61, %v6995_v31  ;;  %v6342_v5 = vcombine.high %v6334_v9, %v6334_v9  ;;  %v5798_v29 = vmax.f32 %v5766_v52, 0.0  ;;  %v7379_v10 = vrot.slane %v7070_v54, %v15833_v8 }
 0x539   : > { %v7069_v28 = vmax.f32 %v6989_v15, %v6997_v47  ;;  %v7371_v63 = vrot.slane %v7068_v23, %v15833_v8  ;;  %v7363_v19 = vrot.slane %v7066_v38, %v15833_v8  ;;  %v6343_v53 = vcombine.high %v6341_v60, %v6341_v60  ;;  %v7794_v47 = vld [vmem:[%s16817_s3 + $0x40] sm:$0xff]  ;;  %v7795_v38 = vld [vmem:[%s16817_s3 + $0x48] sm:$0xff] }
 0x53a   : > { %v7367_v26 = vrot.slane %v7067_v21, %v15833_v8  ;;  %v10961_v43 = vrot.slane %v6334_v9, 9  ;;  %v10962_v30 = vrot.slane %v6342_v5, 9  ;;  %v6310_v1 = vcombine.high %v5798_v29, %v5798_v29 }
 0x53b   : > { %v7375_v11 = vrot.slane %v7069_v28, %v15833_v8  ;;  %v6317_v57 = vrot.slane %v5798_v29, %v15812_v34  ;;  %v7383_v55 = vrot.slane %v7071_v14, %v15833_v8  ;;  %v10963_v40 = vrot.slane %v6341_v60, 9 }
 0x53c   : > { %v7473_v36 = vsel %vm7424_vm2, %v7367_v26, %v7363_v19  ;;  %v5733_v35 = vmul.f32 %v16163_v48, %v15981_v13  ;;  %v7387_v33 = vrot.slane %v7072_v50, %v15833_v8  ;;  %v6324_v46 = vrot.slane %v6310_v1, %v15812_v34 }
 0x53d   : > { %v7474_v18 = vsel %vm7426_vm3, %v7371_v63, %v7473_v36  ;;  %v6325_v41 = vcombine.high %v6317_v57, %v6317_v57  ;;  %v7391_v12 = vrot.slane %v7073_v20, %v15833_v8  ;;  %v5732_v27 = vmul.f32 %v16163_v48, %v15986_v4  ;;  %v7513_v4 = vld [vmem:[%s16817_s3 + $0x8] sm:$0xff]  ;;  %v7514_v48 = vld [vmem:[%s16817_s3 + $0x10] sm:$0xff] }
 0x53e   : > { %v7475_v62 = vsel %vm7428_vm4, %v7375_v11, %v7474_v18  ;;  %v5769_v42 = vadd.f32 %v16149_v6, %v5733_v35  ;;  %v10964_v54 = vrot.slane %v6343_v53, 9  ;;  %v16241_v13 = vmax.f32 %v6334_v9, %v10961_v43 }
 0x53f   : > { %v7476_v32 = vsel %vm7430_vm5, %v7379_v10, %v7475_v62  ;;  %v16243_v25 = vmax.f32 %v6342_v5, %v10962_v30  ;;  %v16249_v14 = vmax.f32 %v6341_v60, %v10963_v40  ;;  %v5768_v3 = vadd.f32 %v16149_v6, %v5732_v27  ;;  %v7796_v27 = vld [vmem:[%s16817_s3 + $0x50] sm:$0xff] }
 0x540   : > { %v7477_v45 = vsel %vm7432_vm6, %v7383_v55, %v7476_v32  ;;  %v5801_v50 = vmax.f32 %v5769_v42, 0.0  ;;  %v6326_v58 = vcombine.high %v6324_v46, %v6324_v46  ;;  %v10957_v39 = vrot.slane %v6317_v57, 9  ;;  %v7797_v32 = vld [vmem:[%s16817_s3 + $0x58] sm:$0xff] }
 0x541   : > { %v7478_v7 = vsel %vm7434_vm7, %v7387_v33, %v7477_v45  ;;  %v10958_v61 = vrot.slane %v6325_v41, 9  ;;  %v5800_v44 = vmax.f32 %v5768_v3, 0.0  ;;  %v16265_v59 = vmax.f32 %v6343_v53, %v10964_v54  ;;  %v7504_v33 = vld [vmem:[#allocation3] sm:$0xff] }
 0x542   : > { %v7479_v49 = vsel %vm7436_vm8, %v7391_v12, %v7478_v7  ;;  %v6361_v6 = vcombine.high %v5801_v50, %v5801_v50  ;;  %v6368_v20 = vrot.slane %v5801_v50, %v15812_v34  ;;  %v10959_v22 = vrot.slane %v6324_v46, 9  ;;  %v7944_v7 = vld [vmem:[%s16817_s3 + $0x68] sm:$0xff] }
 0x543   : > { %7502 = vst.msk [vmem:[#allocation3 + $0x71] sm:$0xff] %vm462_vm0, %v7479_v49  ;;  %v12817_v51 = vpack.c.bf16 %v7513_v4, %v7512_v16  ;;  %v12821_v0 = vpack.c.bf16 %v7515_v24, %v7514_v48  ;;  %v6344_v52 = vcombine.high %v5800_v44, %v5800_v44  ;;  %v10960_v23 = vrot.slane %v6326_v58, 9  ;;  %v16291_v48 = vld [vmem:[#allocation3 + $0x10] sm:$0xff] }
 0x544   : > { %v6375_v15 = vrot.slane %v6361_v6, %v15812_v34  ;;  %v6376_v31 = vcombine.high %v6368_v20, %v6368_v20  ;;  %v10969_v9 = vrot.slane %v6368_v20, 9  ;;  %v7002_v60 = vmax.f32 %v6317_v57, %v10957_v39  ;;  %v7943_v24 = vld [vmem:[%s16817_s3 + $0x60] sm:$0xff]  ;;  %v16304_v6 = vld [vmem:[#allocation3 + $0x20] sm:$0xff] }
 0x545   : > { %v7003_v21 = vmax.f32 %v6325_v41, %v10958_v61  ;;  %v6351_v5 = vrot.slane %v5800_v44, %v15812_v34  ;;  %12818 = vmatprep.subr.bf16.mxu0 %v12817_v51  ;;  %v6358_v19 = vrot.slane %v6344_v52, %v15812_v34  ;;  %v12825_v43 = vpack.c.bf16 %v7795_v38, %v7794_v47 }
 0x546   : > { %v6377_v29 = vcombine.high %v6375_v15, %v6375_v15  ;;  %v10970_v10 = vrot.slane %v6376_v31, 9  ;;  %v10971_v28 = vrot.slane %v6375_v15, 9  ;;  %v7014_v63 = vmax.f32 %v6368_v20, %v10969_v9  ;;  %12820 = vmatpush3.bf16.msra.mxu0 %v12817_v51  ;;  %v16318_v9 = vld [vmem:[#allocation3 + $0x40] sm:$0xff] }
 0x547   : > { %v6359_v26 = vcombine.high %v6351_v5, %v6351_v5  ;;  %v10965_v53 = vrot.slane %v6351_v5, 9  ;;  %12822 = vmatprep.subr.bf16.mxu0 %v12821_v0  ;;  %v6360_v55 = vcombine.high %v6358_v19, %v6358_v19  ;;  %v10967_v40 = vrot.slane %v6358_v19, 9 }
 0x548   : > { %v10972_v11 = vrot.slane %v6377_v29, 9  ;;  %v7015_v30 = vmax.f32 %v6376_v31, %v10970_v10  ;;  %v7016_v1 = vmax.f32 %v6375_v15, %v10971_v28  ;;  %v7078_v57 = vmax.f32 %v16241_v13, %v7014_v63  ;;  %v7786_v10 = vld [vmem:[#allocation3 + $0x2] sm:$0xff] }
 0x549   : > { %v10966_v36 = vrot.slane %v6359_v26, 9  ;;  %v7010_v35 = vmax.f32 %v6351_v5, %v10965_v53  ;;  %v7004_v18 = vmax.f32 %v6324_v46, %v10959_v22  ;;  %v10968_v54 = vrot.slane %v6360_v55, 9  ;;  %v7945_v63 = vld [vmem:[%s16817_s3 + $0x70] sm:$0xff]  ;;  %v16348_v53 = vld [vmem:[#allocation3 + $0x12] sm:$0xff] }
 0x54a   : > { %v7017_v41 = vmax.f32 %v6377_v29, %v10972_v11  ;;  %v7079_v12 = vmax.f32 %v16243_v25, %v7015_v30  ;;  %v7080_v62 = vmax.f32 %v16249_v14, %v7016_v1  ;;  %12824 = vmatpush3.bf16.msra.mxu0 %v12821_v0  ;;  %v16279_v42 = vld [vmem:[#allocation3 + $0x71] sm:$0xff]  ;;  %v7012_v16 = vmax.f32 %v6358_v19, %v10967_v40  ;;  %v16332_v29 = vld [vmem:[#allocation3 + $0x60] sm:$0xff]  ;;  %v7946_v19 = vld [vmem:[%s16817_s3 + $0x78] sm:$0xff] }
 0x54b   : > { %v7011_v13 = vmax.f32 %v6359_v26, %v10966_v36  ;;  %v7074_v46 = vmax.f32 %v7002_v60, %v7010_v35  ;;  %12457 = vmatmul.mubr.msk.f32.gmra.mrb[158].mxu0 %vm462_vm0, %v16279_v42  ;;  %12826 = vmatprep.subr.bf16.mxu0 %v12825_v43  ;;  %v7005_v25 = vmax.f32 %v6326_v58, %v10960_v23  ;;  %v16312_v0 = vld [vmem:[#allocation3 + $0x30] sm:$0xff]  ;;  %v8093_v11 = vld [vmem:[%s16817_s3 + $0x88] sm:$0xff]  ;;  %v16358_v30 = vld [vmem:[#allocation3 + $0x22] sm:$0xff] }
 0x54c   : > { %v7081_v45 = vmax.f32 %v16265_v59, %v7017_v41  ;;  %12467 = vmatprep.mubr.msk.f32.mxu0 %vm462_vm0, %v7504_v33  ;;  %v7013_v14 = vmax.f32 %v6360_v55, %v10968_v54  ;;  %v7076_v3 = vmax.f32 %v7004_v18, %v7012_v16  ;;  %v12829_v4 = vpack.c.bf16 %v7797_v32, %v7796_v27  ;;  %v16337_v28 = vld [vmem:[#allocation3 + $0x70] sm:$0xff]  ;;  %v16366_v55 = vld [vmem:[#allocation3 + $0x42] sm:$0xff] }
 0x54d   : > { %v7075_v50 = vmax.f32 %v7003_v21, %v7011_v13  ;;  %v7395_v58 = vrot.slane %v7074_v46, %v15833_v8  ;;  %v12833_v59 = vpack.c.bf16 %v7944_v7, %v7943_v24  ;;  %v7411_v22 = vrot.slane %v7078_v57, %v15833_v8  ;;  %v16327_v21 = vld [vmem:[#allocation3 + $0x50] sm:$0xff]  ;;  %v16374_v40 = vld [vmem:[#allocation3 + $0x62] sm:$0xff]  ;;  %v8541_v7 = vld [vmem:[%s16817_s3 + $0xe8] sm:$0xff] }
 0x54e   : > { %v7077_v39 = vmax.f32 %v7005_v25, %v7013_v14  ;;  %v7403_v49 = vrot.slane %v7076_v3, %v15833_v8  ;;  %v7415_v15 = vrot.slane %v7079_v12, %v15833_v8  ;;  %v7419_v52 = vrot.slane %v7080_v62, %v15833_v8  ;;  %v16362_v57 = vld [vmem:[#allocation3 + $0x32] sm:$0xff]  ;;  %v8094_v33 = vld [vmem:[%s16817_s3 + $0x90] sm:$0xff]  ;;  %v8095_v18 = vld [vmem:[%s16817_s3 + $0x98] sm:$0xff] }
 0x54f   : > { %v7399_v61 = vrot.slane %v7075_v50, %v15833_v8  ;;  %12468 = vmatmul.mubr.msk.f32.vlgmr.msra.gmra.mrb[152].mxu0 %vm462_vm0, %v16291_v48  ;;  %v7423_v38 = vrot.slane %v7081_v45, %v15833_v8  ;;  %v12837_v26 = vpack.c.bf16 %v7946_v19, %v7945_v63  ;;  %v16370_v36 = vld [vmem:[#allocation3 + $0x52] sm:$0xff]  ;;  %v12845_v41 = vpack.c.bf16 %v8095_v18, %v8094_v33  ;;  %v8243_v54 = vld [vmem:[%s16817_s3 + $0xb0] sm:$0xff]  ;;  %v8244_v13 = vld [vmem:[%s16817_s3 + $0xb8] sm:$0xff] }
 0x550   : > { %12828 = vmatpush3.bf16.msra.mxu0 %v12825_v43  ;;  %12470 = vmatprep.mubr.msk.f32.mxu0 %vm462_vm0, %v16304_v6  ;;  %v7407_v20 = vrot.slane %v7077_v39, %v15833_v8  ;;  %v8092_v43 = vld [vmem:[%s16817_s3 + $0x80] sm:$0xff]  ;;  %v8242_v62 = vld [vmem:[%s16817_s3 + $0xa8] sm:$0xff]  ;;  %v12853_v46 = vpack.c.bf16 %v8244_v13, %v8243_v54  ;;  %v13365_v14 = vld [vmem:[#allocation3 + $0x21] sm:$0xff] }
 0x551   : > { %v7480_v44 = vsel %vm7424_vm2, %v7399_v61, %v7395_v58  ;;  %12830 = vmatprep.subr.bf16.mxu0 %v12829_v4  ;;  %v12841_v1 = vpack.c.bf16 %v8093_v11, %v8092_v43  ;;  %v16378_v35 = vld [vmem:[#allocation3 + $0x72] sm:$0xff]  ;;  %v8542_v61 = vld [vmem:[%s16817_s3 + $0xf0] sm:$0xff] }
 0x552   : > { %v7481_v51 = vsel %vm7426_vm3, %v7403_v49, %v7480_v44  ;;  %v8241_v12 = vld [vmem:[%s16817_s3 + $0xa0] sm:$0xff]  ;;  %v8392_v45 = vld [vmem:[%s16817_s3 + $0xc8] sm:$0xff]  ;;  %v8543_v49 = vld [vmem:[%s16817_s3 + $0xf8] sm:$0xff] }
 0x553   : > { %v7482_v31 = vsel %vm7428_vm4, %v7407_v20, %v7481_v51  ;;  %12471 = vmatmul.mubr.msk.f32.gmra.mrb[154].mxu0 %vm462_vm0, %v16312_v0  ;;  %v12849_v27 = vpack.c.bf16 %v8242_v62, %v8241_v12  ;;  %v13364_v16 = vld [vmem:[#allocation3 + $0x11] sm:$0xff]  ;;  %v12869_v20 = vpack.c.bf16 %v8543_v49, %v8542_v61  ;;  %v8691_v51 = vld [vmem:[%s16817_s3 + $0x110] sm:$0xff] }
 0x554   : > { %v7483_v47 = vsel %vm7430_vm5, %v7411_v22, %v7482_v31  ;;  %12473 = vmatprep.mubr.msk.f32.mxu0 %vm462_vm0, %v16318_v9  ;;  %12832 = vmatpush3.bf16.msra.mxu0 %v12829_v4  ;;  %v8391_v25 = vld [vmem:[%s16817_s3 + $0xc0] sm:$0xff]  ;;  %v8394_v4 = vld [vmem:[%s16817_s3 + $0xd8] sm:$0xff] }
 0x555   : > { %v7484_v23 = vsel %vm7432_vm6, %v7415_v15, %v7483_v47  ;;  %12834 = vmatprep.subr.bf16.mxu0 %v12833_v59  ;;  %v12857_v50 = vpack.c.bf16 %v8392_v45, %v8391_v25  ;;  %v8540_v24 = vld [vmem:[%s16817_s3 + $0xe0] sm:$0xff]  ;;  %v9307_v47 = vld [vmem:[%s16818_s4 + $0x30] sm:$0xff] }
 0x556   : > { %v7485_v60 = vsel %vm7434_vm7, %v7419_v52, %v7484_v23  ;;  %v12865_v39 = vpack.c.bf16 %v8541_v7, %v8540_v24  ;;  %v8689_v44 = vld [vmem:[%s16817_s3 + $0x100] sm:$0xff] }
 0x557   : > { %v7486_v5 = vsel %vm7436_vm8, %v7423_v38, %v7485_v60  ;;  %12474 = vmatmul.mubr.msk.f32.gmra.mrb[156].mxu0 %vm462_vm0, %v16327_v21  ;;  %v13366_v31 = vld [vmem:[#allocation3 + $0x31] sm:$0xff]  ;;  %v9308_v38 = vld [vmem:[%s16818_s4 + $0x38] sm:$0xff] }
 0x558   : > { %7503 = vst.msk [vmem:[#allocation3 + $0x81] sm:$0xff] %vm462_vm0, %v7486_v5  ;;  %12476 = vmatprep.mubr.msk.f32.mxu0 %vm462_vm0, %v16332_v29  ;;  %v12885_v23 = vpack.c.bf16 %v9308_v38, %v9307_v47  ;;  %v9297_v60 = vld [vmem:[%s16818_s4] sm:$0xff] }
 0x55b   : > { %12477 = vmatmul.mubr.msk.f32.gmra.mrb[158].mxu0 %vm462_vm0, %v16337_v28 }
 0x55c   : > { %12487 = vmatprep.mubr.msk.f32.mxu0 %vm462_vm0, %v7786_v10  ;;  %v16554_v10 = vld [vmem:[%s16820_s6 + $0x2] ss:$0 sm:$0xff] }
 0x55f   : > { %12488 = vmatmul.mubr.msk.f32.vlgmr.msra.gmra.mrb[152].mxu0 %vm462_vm0, %v16348_v53  ;;  %v7942_v32 = vld [vmem:[#allocation3 + $0x80] sm:$0xff] }
 0x560   : > { %12836 = vmatpush3.bf16.msra.mxu0 %v12833_v59  ;;  %12490 = vmatprep.mubr.msk.f32.mxu0 %vm462_vm0, %v16358_v30  ;;  %v8091_v3 = vld [vmem:[#allocation3 + $0x81] sm:$0xff]  ;;  %v8690_v59 = vld [vmem:[%s16817_s3 + $0x108] sm:$0xff] }
 0x561   : > { %12838 = vmatprep.subr.bf16.mxu0 %v12837_v26  ;;  %v8240_v58 = vld [vmem:[#allocation3 + $0x82] sm:$0xff]  ;;  %v12873_v22 = vpack.c.bf16 %v8690_v59, %v8689_v44 }
 0x563   : > { %12491 = vmatmul.mubr.msk.f32.gmra.mrb[154].mxu0 %vm462_vm0, %v16362_v57 }
 0x564   : > { %12493 = vmatprep.mubr.msk.f32.mxu0 %vm462_vm0, %v16366_v55  ;;  %12840 = vmatpush3.bf16.msra.mxu0 %v12837_v26 }
 0x565   : > { %12842 = vmatprep.subr.bf16.mxu0 %v12841_v1 }
 0x567   : > { %12494 = vmatmul.mubr.msk.f32.gmra.mrb[156].mxu0 %vm462_vm0, %v16370_v36 }
 0x568   : > { %12496 = vmatprep.mubr.msk.f32.mxu0 %vm462_vm0, %v16374_v40 }
 0x56b   : > { %12497 = vmatmul.mubr.msk.f32.gmra.mrb[158].mxu0 %vm462_vm0, %v16378_v35 }
 0x56c   : > { %12507 = vmatprep.mubr.msk.f32.mxu0 %vm462_vm0, %v16291_v48 }
 0x56f   : > { %12508 = vmatmul.mubr.msk.f32.vlgmr.msra.gmra.mrb[152].mxu0 %vm462_vm0, %v16304_v6 }
 0x570   : > { %12844 = vmatpush3.bf16.msra.mxu0 %v12841_v1  ;;  %12510 = vmatprep.mubr.msk.f32.mxu0 %vm462_vm0, %v16312_v0 }
 0x571   : > { %12846 = vmatprep.subr.bf16.mxu0 %v12845_v41 }
 0x573   : > { %12511 = vmatmul.mubr.msk.f32.gmra.mrb[154].mxu0 %vm462_vm0, %v16318_v9 }
 0x574   : > { %12513 = vmatprep.mubr.msk.f32.mxu0 %vm462_vm0, %v16327_v21  ;;  %12848 = vmatpush3.bf16.msra.mxu0 %v12845_v41 }
 0x575   : > { %12850 = vmatprep.subr.bf16.mxu0 %v12849_v27 }
 0x577   : > { %12514 = vmatmul.mubr.msk.f32.gmra.mrb[156].mxu0 %vm462_vm0, %v16332_v29 }
 0x578   : > { %12516 = vmatprep.mubr.msk.f32.mxu0 %vm462_vm0, %v16337_v28 }
 0x57b   : > { %12517 = vmatmul.mubr.msk.f32.gmra.mrb[158].mxu0 %vm462_vm0, %v7942_v32 }
 0x57c   : > { %12527 = vmatprep.mubr.msk.f32.mxu0 %vm462_vm0, %v13364_v16 }
 0x57f   : > { %12528 = vmatmul.mubr.msk.f32.vlgmr.msra.gmra.mrb[152].mxu0 %vm462_vm0, %v13365_v14 }
 0x580   : > { %12852 = vmatpush3.bf16.msra.mxu0 %v12849_v27  ;;  %12530 = vmatprep.mubr.msk.f32.mxu0 %vm462_vm0, %v16059_v17  ;;  %v8393_v17 = vld [vmem:[%s16817_s3 + $0xd0] sm:$0xff] }
 0x581   : > { %12854 = vmatprep.subr.bf16.mxu0 %v12853_v46  ;;  %v12861_v48 = vpack.c.bf16 %v8394_v4, %v8393_v17 }
 0x583   : > { %12531 = vmatmul.mubr.msk.f32.gmra.mrb[154].mxu0 %vm462_vm0, %v16116_v56 }
 0x584   : > { %12533 = vmatprep.mubr.msk.f32.mxu0 %vm462_vm0, %v16158_v37  ;;  %12856 = vmatpush3.bf16.msra.mxu0 %v12853_v46 }
 0x585   : > { %12858 = vmatprep.subr.bf16.mxu0 %v12857_v50 }
 0x587   : > { %12534 = vmatmul.mubr.msk.f32.gmra.mrb[156].mxu0 %vm462_vm0, %v16215_v2 }
 0x588   : > { %12536 = vmatprep.mubr.msk.f32.mxu0 %vm462_vm0, %v16279_v42 }
 0x58b   : > { %12537 = vmatmul.mubr.msk.f32.gmra.mrb[158].mxu0 %vm462_vm0, %v8091_v3 }
 0x58c   : > { %12547 = vmatprep.mubr.msk.f32.mxu0 %vm462_vm0, %v16348_v53 }
 0x58f   : > { %12548 = vmatmul.mubr.msk.f32.vlgmr.msra.gmra.mrb[152].mxu0 %vm462_vm0, %v16358_v30 }
 0x590   : > { %12860 = vmatpush3.bf16.msra.mxu0 %v12857_v50  ;;  %12550 = vmatprep.mubr.msk.f32.mxu0 %vm462_vm0, %v16362_v57 }
 0x591   : > { %12862 = vmatprep.subr.bf16.mxu0 %v12861_v48 }
 0x593   : > { %12551 = vmatmul.mubr.msk.f32.gmra.mrb[154].mxu0 %vm462_vm0, %v16366_v55 }
 0x594   : > { %12553 = vmatprep.mubr.msk.f32.mxu0 %vm462_vm0, %v16370_v36  ;;  %12864 = vmatpush3.bf16.msra.mxu0 %v12861_v48 }
 0x595   : > { %12866 = vmatprep.subr.bf16.mxu0 %v12865_v39 }
 0x597   : > { %12554 = vmatmul.mubr.msk.f32.gmra.mrb[156].mxu0 %vm462_vm0, %v16374_v40 }
 0x598   : > { %12556 = vmatprep.mubr.msk.f32.mxu0 %vm462_vm0, %v16378_v35 }
 0x59b   : > { %12557 = vmatmul.mubr.msk.f32.gmra.mrb[158].mxu0 %vm462_vm0, %v8240_v58 }
 0x59c   : > { %12567 = vmatprep.mubr.msk.f32.mxu0 %vm462_vm0, %v16304_v6  ;;  %v8390_v6 = vld [vmem:[#allocation3 + $0x90] sm:$0xff] }
 0x59f   : > { %12568 = vmatmul.mubr.msk.f32.vlgmr.msra.gmra.mrb[152].mxu0 %vm462_vm0, %v16312_v0  ;;  %v8692_v0 = vld [vmem:[%s16817_s3 + $0x118] sm:$0xff] }
 0x5a0   : > { %12868 = vmatpush3.bf16.msra.mxu0 %v12865_v39  ;;  %12570 = vmatprep.mubr.msk.f32.mxu0 %vm462_vm0, %v16318_v9  ;;  %v12877_v15 = vpack.c.bf16 %v8692_v0, %v8691_v51  ;;  %v8539_v9 = vld [vmem:[#allocation3 + $0x91] sm:$0xff] }
 0x5a1   : > { %12870 = vmatprep.subr.bf16.mxu0 %v12869_v20 }
 0x5a3   : > { %12571 = vmatmul.mubr.msk.f32.gmra.mrb[154].mxu0 %vm462_vm0, %v16327_v21  ;;  %v9298_v21 = vld [vmem:[%s16818_s4 + $0x8] sm:$0xff] }
 0x5a4   : > { %12573 = vmatprep.mubr.msk.f32.mxu0 %vm462_vm0, %v16332_v29  ;;  %12872 = vmatpush3.bf16.msra.mxu0 %v12869_v20  ;;  %v16543_v5 = vpack.c.bf16 %v9298_v21, %v9297_v60  ;;  %v16549_v29 = vld [vmem:[%s16819_s5 + $0x2] ss:$0 sm:$0xff] }
 0x5a5   : > { %12874 = vmatprep.subr.bf16.mxu0 %v12873_v22 }
 0x5a7   : > { %12574 = vmatmul.mubr.msk.f32.gmra.mrb[156].mxu0 %vm462_vm0, %v16337_v28 }
 0x5a8   : > { %12576 = vmatprep.mubr.msk.f32.mxu0 %vm462_vm0, %v7942_v32 }
 0x5ab   : > { %12577 = vmatmul.mubr.msk.f32.gmra.mrb[158].mxu0 %vm462_vm0, %v8390_v6 }
 0x5ac   : > { %12587 = vmatprep.mubr.msk.f32.mxu0 %vm462_vm0, %v13365_v14 }
 0x5af   : > { %12588 = vmatmul.mubr.msk.f32.vlgmr.msra.gmra.mrb[152].mxu0 %vm462_vm0, %v13366_v31 }
 0x5b0   : > { %12876 = vmatpush3.bf16.msra.mxu0 %v12873_v22  ;;  %12590 = vmatprep.mubr.msk.f32.mxu0 %vm462_vm0, %v16116_v56  ;;  %v8688_v56 = vld [vmem:[#allocation3 + $0x92] sm:$0xff] }
 0x5b1   : > { %12878 = vmatprep.subr.bf16.mxu0 %v12877_v15 }
 0x5b3   : > { %12591 = vmatmul.mubr.msk.f32.gmra.mrb[154].mxu0 %vm462_vm0, %v16158_v37  ;;  %v17102_v37 = vmov 0.0  }
 0x5b4   : > { %12593 = vmatprep.mubr.msk.f32.mxu0 %vm462_vm0, %v16215_v2  ;;  %12880 = vmatpush3.bf16.msra.mxu0 %v12877_v15  ;;  %9186 = vst.msk [vmem:[#allocation4 + $0x8] sm:$0x3f] %vm9184_vm9, %v17102_v37  ;;  %9185 = vst.msk [vmem:[#allocation4] sm:$0x3f] %vm9184_vm9, %v17102_v37  ;;  %v9305_v2 = vld [vmem:[%s16818_s4 + $0x20] sm:$0xff] }
 0x5b5   : > { %9187 = vst.msk [vmem:[#allocation4 + $0x10] sm:$0x3f] %vm9184_vm9, %v17102_v37  ;;  %9188 = vst.msk [vmem:[#allocation4 + $0x18] sm:$0x3f] %vm9184_vm9, %v17102_v37 }
 0x5b6   : > { %9189 = vst.msk [vmem:[#allocation4 + $0x20] sm:$0x3f] %vm9184_vm9, %v17102_v37  ;;  %9190 = vst.msk [vmem:[#allocation4 + $0x28] sm:$0x3f] %vm9184_vm9, %v17102_v37 }
 0x5b7   : > { %12594 = vmatmul.mubr.msk.f32.gmra.mrb[156].mxu0 %vm462_vm0, %v16279_v42  ;;  %v9306_v42 = vld [vmem:[%s16818_s4 + $0x28] sm:$0xff] }
 0x5b8   : > { %12596 = vmatprep.mubr.msk.f32.mxu0 %vm462_vm0, %v8091_v3  ;;  %v12881_v52 = vpack.c.bf16 %v9306_v42, %v9305_v2 }
 0x5ba   : > { %12882 = vmatprep.subr.bf16.mxu0 %v12881_v52 }
 0x5bb   : > { %12597 = vmatmul.mubr.msk.f32.gmra.mrb[158].mxu0 %vm462_vm0, %v8539_v9 }
 0x5bc   : > { %12607 = vmatprep.mubr.msk.f32.mxu0 %vm462_vm0, %v16358_v30 }
 0x5bf   : > { %12608 = vmatmul.mubr.msk.f32.vlgmr.msra.gmra.mrb[152].mxu0 %vm462_vm0, %v16362_v57 }
 0x5c0   : > { %12610 = vmatprep.mubr.msk.f32.mxu0 %vm462_vm0, %v16366_v55  ;;  %12884 = vmatpush3.bf16.msra.mxu0 %v12881_v52 }
 0x5c1   : > { %12886 = vmatprep.subr.bf16.mxu0 %v12885_v23 }
 0x5c3   : > { %12611 = vmatmul.mubr.msk.f32.gmra.mrb[154].mxu0 %vm462_vm0, %v16370_v36 }
 0x5c4   : > { %12613 = vmatprep.mubr.msk.f32.mxu0 %vm462_vm0, %v16374_v40  ;;  %12888 = vmatpush3.bf16.msra.mxu0 %v12885_v23 }
 0x5c5   : > { %12890 = vmatprep.subr.bf16.mxu0 %v16543_v5 }
 0x5c7   : > { %12614 = vmatmul.mubr.msk.f32.gmra.mrb[156].mxu0 %vm462_vm0, %v16378_v35 }
 0x5c8   : > { %12616 = vmatprep.mubr.msk.f32.mxu0 %vm462_vm0, %v8240_v58 }
 0x5cb   : > { %12617 = vmatmul.mubr.msk.f32.gmra.mrb[158].mxu0 %vm462_vm0, %v8688_v56 }
 0x692   : > { %v12609_v28 = vpop.f32.mrb[152].mxu0 }
 0x693   : > { %v8835_v63 = vmul.f32 %v12609_v28, %v16549_v29  ;;  %v8783_v19 = vpop.f32.mrb[153].mxu0 }
 0x694   : > { %v8834_v26 = vmul.f32 %v16549_v29, %v8783_v19 }
 0x695   : > { %v8847_v53 = vadd.f32 %v16554_v10, %v8835_v63 }
 0x696   : > { %v8846_v43 = vadd.f32 %v16554_v10, %v8834_v26  ;;  %v12612_v11 = vpop.f32.mrb[154].mxu0 }
 0x697   : > { %v8855_v30 = vmax.f32 %v8847_v53, 0.0  ;;  %v8837_v1 = vmul.f32 %v12612_v11, %v16549_v29  ;;  %v8793_v57 = vpop.f32.mrb[155].mxu0 }
 0x698   : > { %v8854_v55 = vmax.f32 %v8846_v43, 0.0  ;;  %v8836_v36 = vmul.f32 %v16549_v29, %v8793_v57 }
 0x699   : > { %v8887_v40 = vcombine.high %v8855_v30, %v8855_v30  ;;  %v8894_v35 = vrot.slane %v8855_v30, %v15812_v34  ;;  %v8849_v33 = vadd.f32 %v16554_v10, %v8837_v1 }
 0x69a   : > { %v8870_v18 = vcombine.high %v8854_v55, %v8854_v55  ;;  %v8877_v41 = vrot.slane %v8854_v55, %v15812_v34  ;;  %v8848_v12 = vadd.f32 %v16554_v10, %v8836_v36  ;;  %v16566_v62 = vpop.f32.mrb[156].mxu0 }
 0x69b   : > { %v8901_v27 = vrot.slane %v8887_v40, %v15812_v34  ;;  %v8902_v32 = vcombine.high %v8894_v35, %v8894_v35  ;;  %v11051_v54 = vrot.slane %v8894_v35, 9  ;;  %v8857_v13 = vmax.f32 %v8849_v33, 0.0  ;;  %v8803_v16 = vpop.f32.mrb[157].mxu0 }
 0x69c   : > { %v8884_v46 = vrot.slane %v8870_v18, %v15812_v34  ;;  %v8885_v25 = vcombine.high %v8877_v41, %v8877_v41  ;;  %v11047_v45 = vrot.slane %v8877_v41, 9  ;;  %v8856_v14 = vmax.f32 %v8848_v12, 0.0 }
 0x69d   : > { %v8903_v50 = vcombine.high %v8901_v27, %v8901_v27  ;;  %v11052_v3 = vrot.slane %v8902_v32, 9  ;;  %v11053_v17 = vrot.slane %v8901_v27, 9  ;;  %v9138_v4 = vmax.f32 %v8894_v35, %v11051_v54 }
 0x69e   : > { %v8886_v48 = vcombine.high %v8884_v46, %v8884_v46  ;;  %v11048_v24 = vrot.slane %v8885_v25, 9  ;;  %v11049_v7 = vrot.slane %v8884_v46, 9  ;;  %v9134_v39 = vmax.f32 %v8877_v41, %v11047_v45  ;;  %v12618_v58 = vpop.f32.mrb[158].mxu0 }
 0x69f   : > { %v11054_v61 = vrot.slane %v8903_v50, 9  ;;  %v9139_v49 = vmax.f32 %v8902_v32, %v11052_v3  ;;  %v9140_v20 = vmax.f32 %v8901_v27, %v11053_v17  ;;  %v8921_v44 = vcombine.high %v8857_v13, %v8857_v13  ;;  %v8813_v59 = vpop.f32.mrb[159].mxu0 }
 0x6a0   : > { %v11050_v22 = vrot.slane %v8886_v48, 9  ;;  %v9135_v6 = vmax.f32 %v8885_v25, %v11048_v24  ;;  %v9136_v51 = vmax.f32 %v8884_v46, %v11049_v7  ;;  %v9166_v0 = vmax.f32 %v9134_v39, %v9138_v4 }
 0x6a1   : > { %v9141_v15 = vmax.f32 %v8903_v50, %v11054_v61  ;;  %v8928_v31 = vrot.slane %v8857_v13, %v15812_v34  ;;  %v8935_v9 = vrot.slane %v8921_v44, %v15812_v34  ;;  %v8904_v56 = vcombine.high %v8856_v14, %v8856_v14 }
 0x6a2   : > { %v9137_v2 = vmax.f32 %v8886_v48, %v11050_v22  ;;  %v9167_v42 = vmax.f32 %v9135_v6, %v9139_v49  ;;  %v9168_v52 = vmax.f32 %v9136_v51, %v9140_v20  ;;  %v9210_v47 = vrot.slane %v9166_v0, %v15833_v8 }
 0x6a3   : > { %v8936_v38 = vcombine.high %v8928_v31, %v8928_v31  ;;  %v8937_v23 = vcombine.high %v8935_v9, %v8935_v9  ;;  %v11059_v60 = vrot.slane %v8928_v31, 9  ;;  %v11061_v21 = vrot.slane %v8935_v9, 9 }
 0x6a4   : > { %v9169_v28 = vmax.f32 %v9137_v2, %v9141_v15  ;;  %v9214_v63 = vrot.slane %v9167_v42, %v15833_v8  ;;  %v9218_v19 = vrot.slane %v9168_v52, %v15833_v8  ;;  %v8911_v26 = vrot.slane %v8856_v14, %v15812_v34 }
 0x6a5   : > { %v11060_v53 = vrot.slane %v8936_v38, 9  ;;  %v11062_v43 = vrot.slane %v8937_v23, 9  ;;  %v9146_v11 = vmax.f32 %v8928_v31, %v11059_v60  ;;  %v9148_v30 = vmax.f32 %v8935_v9, %v11061_v21 }
 0x6a6   : > { %v9222_v1 = vrot.slane %v9169_v28, %v15833_v8  ;;  %v9271_v57 = vsel %vm7424_vm2, %v9214_v63, %v9210_v47  ;;  %v8918_v55 = vrot.slane %v8904_v56, %v15812_v34  ;;  %v8919_v36 = vcombine.high %v8911_v26, %v8911_v26 }
 0x6a7   : > { %v9272_v40 = vsel %vm7426_vm3, %v9218_v19, %v9271_v57  ;;  %v9147_v35 = vmax.f32 %v8936_v38, %v11060_v53  ;;  %v9149_v33 = vmax.f32 %v8937_v23, %v11062_v43  ;;  %v11055_v18 = vrot.slane %v8911_v26, 9 }
 0x6a8   : > { %v9273_v41 = vsel %vm7428_vm4, %v9222_v1, %v9272_v40  ;;  %v8920_v12 = vcombine.high %v8918_v55, %v8918_v55  ;;  %v11056_v27 = vrot.slane %v8919_v36, 9  ;;  %v11057_v32 = vrot.slane %v8918_v55, 9 }
 0x6a9   : > { %9289 = vst.msk [vmem:[#allocation4 + $0x9] sm:$0xf] %vm9288_vm10, %v9273_v41  ;;  %v9142_v54 = vmax.f32 %v8911_v26, %v11055_v18  ;;  %v8839_v13 = vmul.f32 %v16566_v62, %v16549_v29  ;;  %v8838_v46 = vmul.f32 %v16549_v29, %v8803_v16  ;;  %v8841_v25 = vmul.f32 %v12618_v58, %v16549_v29 }
 0x6aa   : > { %v11058_v45 = vrot.slane %v8920_v12, 9  ;;  %v9143_v14 = vmax.f32 %v8919_v36, %v11056_v27  ;;  %v9144_v50 = vmax.f32 %v8918_v55, %v11057_v32  ;;  %v8840_v3 = vmul.f32 %v16549_v29, %v8813_v59 }
 0x6ab   : > { %v9170_v17 = vmax.f32 %v9142_v54, %v9146_v11  ;;  %v8851_v4 = vadd.f32 %v16554_v10, %v8839_v13  ;;  %v8850_v48 = vadd.f32 %v16554_v10, %v8838_v46  ;;  %v8853_v24 = vadd.f32 %v16554_v10, %v8841_v25 }
 0x6ac   : > { %v9145_v7 = vmax.f32 %v8920_v12, %v11058_v45  ;;  %v9171_v39 = vmax.f32 %v9143_v14, %v9147_v35  ;;  %v9172_v61 = vmax.f32 %v9144_v50, %v9148_v30  ;;  %v8852_v62 = vadd.f32 %v16554_v10, %v8840_v3 }
 0x6ad   : > { %v9226_v16 = vrot.slane %v9170_v17, %v15833_v8  ;;  %v8859_v58 = vmax.f32 %v8851_v4, 0.0  ;;  %v8858_v49 = vmax.f32 %v8850_v48, 0.0  ;;  %v8861_v20 = vmax.f32 %v8853_v24, 0.0 }
 0x6ae   : > { %v9173_v44 = vmax.f32 %v9145_v7, %v9149_v33  ;;  %v9230_v29 = vrot.slane %v9171_v39, %v15833_v8  ;;  %v9234_v59 = vrot.slane %v9172_v61, %v15833_v8  ;;  %v8860_v22 = vmax.f32 %v8852_v62, 0.0 }
 0x6af   : > { %v8955_v6 = vcombine.high %v8859_v58, %v8859_v58  ;;  %v8962_v51 = vrot.slane %v8859_v58, %v15812_v34  ;;  %v8938_v0 = vcombine.high %v8858_v49, %v8858_v49  ;;  %v8945_v15 = vrot.slane %v8858_v49, %v15812_v34 }
 0x6b0   : > { %v9238_v31 = vrot.slane %v9173_v44, %v15833_v8  ;;  %v9274_v10 = vsel %vm7424_vm2, %v9230_v29, %v9226_v16  ;;  %v8989_v9 = vcombine.high %v8861_v20, %v8861_v20  ;;  %v8996_v56 = vrot.slane %v8861_v20, %v15812_v34  ;;  %v13342_v2 = vld [vmem:[#allocation4 + $0x1] ss:$8 sps:$4 sm:$0xff]  }
 0x6b1   : > { %v9275_v42 = vsel %vm7426_vm3, %v9234_v59, %v9274_v10  ;;  %v8969_v52 = vrot.slane %v8955_v6, %v15812_v34  ;;  %v8970_v47 = vcombine.high %v8962_v51, %v8962_v51  ;;  %v11067_v38 = vrot.slane %v8962_v51, 9  ;;  %12627 = vmatprep.mubr.msk.f32.mxu0 %vm462_vm0, %v13342_v2 }
 0x6b2   : > { %v9276_v23 = vsel %vm7428_vm4, %v9238_v31, %v9275_v42  ;;  %v8952_v60 = vrot.slane %v8938_v0, %v15812_v34  ;;  %v8953_v21 = vcombine.high %v8945_v15, %v8945_v15  ;;  %v11063_v28 = vrot.slane %v8945_v15, 9 }
 0x6b3   : > { %9290 = vst.msk [vmem:[#allocation4 + $0x11] sm:$0xf] %vm9288_vm10, %v9276_v23  ;;  %v8971_v63 = vcombine.high %v8969_v52, %v8969_v52  ;;  %v11068_v19 = vrot.slane %v8970_v47, 9  ;;  %v11069_v26 = vrot.slane %v8969_v52, 9  ;;  %v9154_v53 = vmax.f32 %v8962_v51, %v11067_v38  ;;  %v9300_v38 = vld [vmem:[%s16818_s4 + $0x18] sm:$0xff] }
 0x6b4   : > { %v8954_v43 = vcombine.high %v8952_v60, %v8952_v60  ;;  %v11064_v11 = vrot.slane %v8953_v21, 9  ;;  %v11065_v30 = vrot.slane %v8952_v60, 9  ;;  %v9150_v1 = vmax.f32 %v8945_v15, %v11063_v28 }
 0x6b5   : > { %v11070_v57 = vrot.slane %v8971_v63, 9  ;;  %v9155_v55 = vmax.f32 %v8970_v47, %v11068_v19  ;;  %v9156_v36 = vmax.f32 %v8969_v52, %v11069_v26  ;;  %v9003_v40 = vrot.slane %v8989_v9, %v15812_v34  ;;  %v9299_v47 = vld [vmem:[%s16818_s4 + $0x10] sm:$0xff] }
 0x6b6   : > { %v11066_v35 = vrot.slane %v8954_v43, 9  ;;  %v9151_v33 = vmax.f32 %v8953_v21, %v11064_v11  ;;  %v9152_v18 = vmax.f32 %v8952_v60, %v11065_v30  ;;  %v9174_v41 = vmax.f32 %v9150_v1, %v9154_v53  ;;  %v13344_v11 = vld [vmem:[#allocation4] ss:$8 sps:$4 sm:$0xff]   ;;  %v9484_v30 = vld [vmem:[%s16818_s4 + $0x48] sm:$0xff] }
 0x6b7   : > { %v9157_v12 = vmax.f32 %v8971_v63, %v11070_v57  ;;  %v9004_v27 = vcombine.high %v8996_v56, %v8996_v56  ;;  %v9005_v46 = vcombine.high %v9003_v40, %v9003_v40  ;;  %v11075_v45 = vrot.slane %v8996_v56, 9  ;;  %v9483_v63 = vld [vmem:[%s16818_s4 + $0x40] sm:$0xff] }
 0x6b8   : > { %v9153_v32 = vmax.f32 %v8954_v43, %v11066_v35  ;;  %v9175_v54 = vmax.f32 %v9151_v33, %v9155_v55  ;;  %v9176_v13 = vmax.f32 %v9152_v18, %v9156_v36  ;;  %v9242_v25 = vrot.slane %v9174_v41, %v15833_v8  ;;  %v9485_v36 = vld [vmem:[%s16818_s4 + $0x50] sm:$0xff]  ;;  %v9579_v41 = vld [vmem:[%s16818_s4 + $0x68] sm:$0xff] }
 0x6b9   : > { %v11077_v14 = vrot.slane %v9003_v40, 9  ;;  %v8972_v4 = vcombine.high %v8860_v22, %v8860_v22  ;;  %v11076_v48 = vrot.slane %v9004_v27, 9  ;;  %v8979_v24 = vrot.slane %v8860_v22, %v15812_v34  ;;  %v13346_v18 = vld [vmem:[#allocation4 + $0x2] ss:$8 sps:$4 sm:$0xff]  }
 0x6ba   : > { %v9177_v50 = vmax.f32 %v9153_v32, %v9157_v12  ;;  %v9246_v3 = vrot.slane %v9175_v54, %v15833_v8  ;;  %v9250_v17 = vrot.slane %v9176_v13, %v15833_v8  ;;  %v11078_v61 = vrot.slane %v9005_v46, 9  ;;  %v9581_v32 = vld [vmem:[%s16818_s4 + $0x78] sm:$0xff] }
 0x6bb   : > { %v8986_v62 = vrot.slane %v8972_v4, %v15812_v34  ;;  %v9162_v58 = vmax.f32 %v8996_v56, %v11075_v45  ;;  %v8987_v49 = vcombine.high %v8979_v24, %v8979_v24  ;;  %v11071_v20 = vrot.slane %v8979_v24, 9  ;;  %v9674_v45 = vld [vmem:[%s16818_s4 + $0x88] sm:$0xff] }
 0x6bc   : > { %v9254_v7 = vrot.slane %v9177_v50, %v15833_v8  ;;  %v9277_v39 = vsel %vm7424_vm2, %v9246_v3, %v9242_v25  ;;  %v9164_v29 = vmax.f32 %v9003_v40, %v11077_v14  ;;  %v9163_v22 = vmax.f32 %v9004_v27, %v11076_v48  ;;  %v9486_v40 = vld [vmem:[%s16818_s4 + $0x58] sm:$0xff]  ;;  %v9580_v27 = vld [vmem:[%s16818_s4 + $0x70] sm:$0xff]  ;;  %v9673_v25 = vld [vmem:[%s16818_s4 + $0x80] sm:$0xff] }
 0x6bd   : > { %v9278_v16 = vsel %vm7426_vm3, %v9250_v17, %v9277_v39  ;;  %v8988_v59 = vcombine.high %v8986_v62, %v8986_v62  ;;  %v11073_v6 = vrot.slane %v8986_v62, 9  ;;  %v11072_v51 = vrot.slane %v8987_v49, 9  ;;  %v9675_v50 = vld [vmem:[%s16818_s4 + $0x90] sm:$0xff]  ;;  %v9676_v3 = vld [vmem:[%s16818_s4 + $0x98] sm:$0xff] }
 0x6be   : > { %v9279_v44 = vsel %vm7428_vm4, %v9254_v7, %v9278_v16  ;;  %v9158_v0 = vmax.f32 %v8979_v24, %v11071_v20  ;;  %v9165_v15 = vmax.f32 %v9005_v46, %v11078_v61  ;;  %v12893_v53 = vpack.c.bf16 %v9300_v38, %v9299_v47  ;;  %v13348_v46 = vld [vmem:[#allocation4 + $0x8] ss:$8 sps:$4 sm:$0xff]   ;;  %v9769_v7 = vld [vmem:[%s16818_s4 + $0xa8] sm:$0xff]  ;;  %v9770_v61 = vld [vmem:[%s16818_s4 + $0xb0] sm:$0xff] }
 0x6bf   : > { %9291 = vst.msk [vmem:[#allocation4 + $0x19] sm:$0xf] %vm9288_vm10, %v9279_v44  ;;  %v11074_v31 = vrot.slane %v8988_v59, 9  ;;  %v9160_v10 = vmax.f32 %v8986_v62, %v11073_v6  ;;  %v9159_v9 = vmax.f32 %v8987_v49, %v11072_v51  ;;  %v12897_v55 = vpack.c.bf16 %v9484_v30, %v9483_v63  ;;  %v13350_v48 = vld [vmem:[#allocation4 + $0x9] ss:$8 sps:$4 sm:$0xff]   ;;  %v9865_v44 = vld [vmem:[%s16818_s4 + $0xc8] sm:$0xff] }
 0x6c0   : > { %v9178_v2 = vmax.f32 %v9158_v0, %v9162_v58  ;;  %v12901_v33 = vpack.c.bf16 %v9486_v40, %v9485_v36  ;;  %v12909_v13 = vpack.c.bf16 %v9581_v32, %v9580_v27  ;;  %v12913_v14 = vpack.c.bf16 %v9674_v45, %v9673_v25  ;;  %v9768_v24 = vld [vmem:[%s16818_s4 + $0xa0] sm:$0xff]  ;;  %v9771_v62 = vld [vmem:[%s16818_s4 + $0xb8] sm:$0xff]  ;;  %v10055_v38 = vld [vmem:[%s16818_s4 + $0x108] sm:$0xff] }
 0x6c1   : > { %v9161_v42 = vmax.f32 %v8988_v59, %v11074_v31  ;;  %v9180_v52 = vmax.f32 %v9160_v10, %v9164_v29  ;;  %v9179_v56 = vmax.f32 %v9159_v9, %v9163_v22  ;;  %v12917_v4 = vpack.c.bf16 %v9676_v3, %v9675_v50  ;;  %v13352_v49 = vld [vmem:[#allocation4 + $0xa] ss:$8 sps:$4 sm:$0xff]   ;;  %v9866_v59 = vld [vmem:[%s16818_s4 + $0xd0] sm:$0xff]  ;;  %v9960_v31 = vld [vmem:[%s16818_s4 + $0xe8] sm:$0xff] }
 0x6c2   : > { %v9258_v21 = vrot.slane %v9178_v2, %v15833_v8  ;;  %v12921_v39 = vpack.c.bf16 %v9769_v7, %v9768_v24  ;;  %v12925_v58 = vpack.c.bf16 %v9771_v62, %v9770_v61  ;;  %v9864_v20 = vld [vmem:[%s16818_s4 + $0xc0] sm:$0xff]  ;;  %v9867_v6 = vld [vmem:[%s16818_s4 + $0xd8] sm:$0xff]  ;;  %v9961_v9 = vld [vmem:[%s16818_s4 + $0xf0] sm:$0xff]  ;;  %v13433_v30 = vmov 0.0|0.0  }
 0x6c3   : > { %v9181_v23 = vmax.f32 %v9161_v42, %v9165_v15  ;;  %v9266_v60 = vrot.slane %v9180_v52, %v15833_v8  ;;  %v9262_v28 = vrot.slane %v9179_v56, %v15833_v8  ;;  %v12929_v29 = vpack.c.bf16 %v9865_v44, %v9864_v20  ;;  %v9959_v15 = vld [vmem:[%s16818_s4 + $0xe0] sm:$0xff]  ;;  %v9962_v2 = vld [vmem:[%s16818_s4 + $0xf8] sm:$0xff] }
 0x6c4   : > { %v12933_v51 = vpack.c.bf16 %v9867_v6, %v9866_v59  ;;  %v12937_v10 = vpack.c.bf16 %v9960_v31, %v9959_v15  ;;  %v12941_v52 = vpack.c.bf16 %v9962_v2, %v9961_v9  ;;  %v10054_v47 = vld [vmem:[%s16818_s4 + $0x100] sm:$0xff] }
 0x6c5   : > { %v9270_v19 = vrot.slane %v9181_v23, %v15833_v8  ;;  %v9280_v43 = vsel %vm7424_vm2, %v9262_v28, %v9258_v21  ;;  %v12945_v23 = vpack.c.bf16 %v10055_v38, %v10054_v47  ;;  %v10057_v21 = vld [vmem:[%s16818_s4 + $0x118] sm:$0xff]  ;;  %v11097_v36 = vld [vmem:[%s16819_s5 + $0x3] ss:$0 sm:$0xff] }
 0x6c6   : > { %v13343_v26 = vld [vmem:[#allocation4 + $0x11] ss:$8 sps:$4 sm:$0xff]   ;;  %v9281_v1 = vsel %vm7426_vm3, %v9266_v60, %v9280_v43  ;;  %v10056_v60 = vld [vmem:[%s16818_s4 + $0x110] sm:$0xff] }
 0x6c7   : > { %12628 = vmatmul.mubr.msk.f32.vlgmr.msra.gmra.mrb[160].mxu0 %vm462_vm0, %v13343_v26  ;;  %v9282_v57 = vsel %vm7428_vm4, %v9270_v19, %v9281_v1  ;;  %v13345_v35 = vld [vmem:[#allocation4 + $0x10] ss:$8 sps:$4 sm:$0xff]   ;;  %v12949_v63 = vpack.c.bf16 %v10057_v21, %v10056_v60 }
 0x6c8   : > { %12892 = vmatpush3.bf16.msra.mxu0 %v16543_v5  ;;  %12638 = vmatprep.mubr.msk.f32.mxu0 %vm462_vm0, %v13344_v11  ;;  %9292 = vst.msk [vmem:[#allocation4 + $0x21] sm:$0xf] %vm9288_vm10, %v9282_v57  ;;  %v9578_v5 = vld [vmem:[%s16818_s4 + $0x60] sm:$0xff]  ;;  %v10273_v43 = vld [vmem:[%s16821_s7 + $0x8] sm:$0xff]  ;;  %v10274_v11 = vld [vmem:[%s16821_s7 + $0x10] sm:$0xff] }
 0x6c9   : > { %12894 = vmatprep.subr.bf16.mxu0 %v12893_v53  ;;  %v12905_v12 = vpack.c.bf16 %v9579_v41, %v9578_v5  ;;  %v13347_v54 = vld [vmem:[#allocation4 + $0x12] ss:$8 sps:$4 sm:$0xff]   ;;  %v10275_v57 = vld [vmem:[%s16821_s7 + $0x18] sm:$0xff] }
 0x6ca   : > { %v13354_v0 = vld [vmem:[#allocation4 + $0x10] ss:$8 sps:$4 sm:$0xff]  }
 0x6cb   : > { %v13356_v56 = vld [vmem:[#allocation4 + $0x11] ss:$8 sps:$4 sm:$0xff]  }
 0x6cc   : > { %12896 = vmatpush3.bf16.msra.mxu0 %v12893_v53  ;;  %v13358_v19 = vld [vmem:[#allocation4 + $0x12] ss:$8 sps:$4 sm:$0xff]  }
 0x6cd   : > { %12898 = vmatprep.subr.bf16.mxu0 %v12897_v55  ;;  %v10272_v53 = vld [vmem:[%s16821_s7] sm:$0xff] }
 0x6ce   : > { %v12954_v1 = vpack.c.bf16 %v10273_v43, %v10272_v53  ;;  %v11098_v40 = vld [vmem:[%s16820_s6 + $0x3] ss:$0 sm:$0xff] }
 0x6cf   : > { %12639 = vmatmul.mubr.msk.f32.vlgmr.msra.gmra.mrb[160].mxu0 %vm462_vm0, %v13345_v35  ;;  %v13349_v17 = vld [vmem:[#allocation4 + $0x18] ss:$8 sps:$4 sm:$0xff]  }
 0x6d0   : > { %12900 = vmatpush3.bf16.msra.mxu0 %v12897_v55  ;;  %12649 = vmatprep.mubr.msk.f32.mxu0 %vm462_vm0, %v13346_v18  ;;  %v13351_v16 = vld [vmem:[#allocation4 + $0x19] ss:$8 sps:$4 sm:$0xff]   ;;  %v12957_v55 = vpack.c.bf16 %v10275_v57, %v10274_v11 }
 0x6d1   : > { %12902 = vmatprep.subr.bf16.mxu0 %v12901_v33  ;;  %v13353_v22 = vld [vmem:[#allocation4 + $0x1a] ss:$8 sps:$4 sm:$0xff]  }
 0x6d2   : > { %v13355_v42 = vld [vmem:[#allocation4 + $0x20] ss:$8 sps:$4 sm:$0xff]  }
 0x6d3   : > { %v13357_v28 = vld [vmem:[#allocation4 + $0x21] ss:$8 sps:$4 sm:$0xff]  }
 0x6d4   : > { %12904 = vmatpush3.bf16.msra.mxu0 %v12901_v33  ;;  %v13359_v26 = vld [vmem:[#allocation4 + $0x22] ss:$8 sps:$4 sm:$0xff]  }
 0x6d5   : > { %12906 = vmatprep.subr.bf16.mxu0 %v12905_v12 }
 0x6d7   : > { %12650 = vmatmul.mubr.msk.f32.vlgmr.msra.gmra.mrb[160].mxu0 %vm462_vm0, %v13347_v54 }
 0x6d8   : > { %12908 = vmatpush3.bf16.msra.mxu0 %v12905_v12  ;;  %12660 = vmatprep.mubr.msk.f32.mxu0 %vm462_vm0, %v13348_v46 }
 0x6d9   : > { %12910 = vmatprep.subr.bf16.mxu0 %v12909_v13 }
 0x6dc   : > { %12912 = vmatpush3.bf16.msra.mxu0 %v12909_v13 }
 0x6dd   : > { %12914 = vmatprep.subr.bf16.mxu0 %v12913_v14 }
 0x6df   : > { %12661 = vmatmul.mubr.msk.f32.vlgmr.msra.gmra.mrb[160].mxu0 %vm462_vm0, %v13349_v17 }
 0x6e0   : > { %12916 = vmatpush3.bf16.msra.mxu0 %v12913_v14  ;;  %12671 = vmatprep.mubr.msk.f32.mxu0 %vm462_vm0, %v13350_v48 }
 0x6e1   : > { %12918 = vmatprep.subr.bf16.mxu0 %v12917_v4 }
 0x6e4   : > { %12920 = vmatpush3.bf16.msra.mxu0 %v12917_v4 }
 0x6e5   : > { %12922 = vmatprep.subr.bf16.mxu0 %v12921_v39 }
 0x6e7   : > { %12672 = vmatmul.mubr.msk.f32.vlgmr.msra.gmra.mrb[160].mxu0 %vm462_vm0, %v13351_v16 }
 0x6e8   : > { %12924 = vmatpush3.bf16.msra.mxu0 %v12921_v39  ;;  %12682 = vmatprep.mubr.msk.f32.mxu0 %vm462_vm0, %v13352_v49 }
 0x6e9   : > { %12926 = vmatprep.subr.bf16.mxu0 %v12925_v58 }
 0x6ec   : > { %12928 = vmatpush3.bf16.msra.mxu0 %v12925_v58 }
 0x6ed   : > { %12930 = vmatprep.subr.bf16.mxu0 %v12929_v29 }
 0x6ef   : > { %12683 = vmatmul.mubr.msk.f32.vlgmr.msra.gmra.mrb[160].mxu0 %vm462_vm0, %v13353_v22 }
 0x6f0   : > { %12932 = vmatpush3.bf16.msra.mxu0 %v12929_v29  ;;  %12693 = vmatprep.mubr.msk.f32.mxu0 %vm462_vm0, %v13354_v0 }
 0x6f1   : > { %12934 = vmatprep.subr.bf16.mxu0 %v12933_v51 }
 0x6f4   : > { %12936 = vmatpush3.bf16.msra.mxu0 %v12933_v51 }
 0x6f5   : > { %12938 = vmatprep.subr.bf16.mxu0 %v12937_v10 }
 0x6f7   : > { %12694 = vmatmul.mubr.msk.f32.vlgmr.msra.gmra.mrb[160].mxu0 %vm462_vm0, %v13355_v42 }
 0x6f8   : > { %12940 = vmatpush3.bf16.msra.mxu0 %v12937_v10  ;;  %12704 = vmatprep.mubr.msk.f32.mxu0 %vm462_vm0, %v13356_v56 }
 0x6f9   : > { %12942 = vmatprep.subr.bf16.mxu0 %v12941_v52 }
 0x6fc   : > { %12944 = vmatpush3.bf16.msra.mxu0 %v12941_v52 }
 0x6fd   : > { %12946 = vmatprep.subr.bf16.mxu0 %v12945_v23 }
 0x6ff   : > { %12705 = vmatmul.mubr.msk.f32.vlgmr.msra.gmra.mrb[160].mxu0 %vm462_vm0, %v13357_v28 }
 0x700   : > { %12948 = vmatpush3.bf16.msra.mxu0 %v12945_v23  ;;  %12715 = vmatprep.mubr.msk.f32.mxu0 %vm462_vm0, %v13358_v19 }
 0x701   : > { %12950 = vmatprep.subr.bf16.mxu0 %v12949_v63 }
 0x704   : > { %12952 = vmatpush3.bf16.msra.mxu0 %v12949_v63 }
 0x705   : > { %12953 = vmatprep.subr.bf16.mxu0 %v13433_v30 }
 0x707   : > { %12716 = vmatmul.mubr.msk.f32.vlgmr.msra.gmra.mrb[160].mxu0 %vm462_vm0, %v13359_v26 }
 0x708   : > { %12726 = vmatprep.mubr.msk.f32.mxu0 %vm13434_vm11, %v17102_v37  ;;  %12955 = vmatpush3.bf16.msra.mxu0 %v12954_v1 }
 0x709   : > { %12956 = vmatprep.subr.bf16.mxu0 %v13433_v30 }
 0x70c   : > { %12958 = vmatpush3.bf16.msra.mxu0 %v12957_v55 }
 0x7da   : > { %v12717_v35 = vpop.f32.mrb[160].mxu0 }
 0x7db   : > { %v10150_v33 = vmul.f32 %v12717_v35, %v11097_v36  ;;  %v10134_v18 = vpop.f32.mrb[161].mxu0 }
 0x7dc   : > { %v10149_v5 = vmul.f32 %v11097_v36, %v10134_v18 }
 0x7dd   : > { %v10156_v41 = vadd.f32 %v11098_v40, %v10150_v33 }
 0x7de   : > { %v10155_v12 = vadd.f32 %v11098_v40, %v10149_v5 }
 0x7df   : > { %v10158_v27 = vmax.f32 %v10156_v41, 0.0 }
 0x7e0   : > { %v10157_v37 = vmax.f32 %v10155_v12, 0.0 }
 0x7e1   : > { %v10178_v32 = vcombine.high %v10158_v27, %v10158_v27  ;;  %v10185_v54 = vrot.slane %v10158_v27, %v15812_v34 }
 0x7e2   : > { %v10161_v13 = vcombine.high %v10157_v37, %v10157_v37  ;;  %v10168_v46 = vrot.slane %v10157_v37, %v15812_v34 }
 0x7e3   : > { %v10192_v25 = vrot.slane %v10178_v32, %v15812_v34  ;;  %v10193_v45 = vcombine.high %v10185_v54, %v10185_v54  ;;  %v11103_v4 = vrot.slane %v10185_v54, 9 }
 0x7e4   : > { %v10175_v14 = vrot.slane %v10161_v13, %v15812_v34  ;;  %v10176_v50 = vcombine.high %v10168_v46, %v10168_v46  ;;  %v11099_v3 = vrot.slane %v10168_v46, 9 }
 0x7e5   : > { %v10194_v17 = vcombine.high %v10192_v25, %v10192_v25  ;;  %v11105_v48 = vrot.slane %v10192_v25, 9  ;;  %v11104_v24 = vrot.slane %v10193_v45, 9  ;;  %v10231_v44 = vmax.f32 %v10185_v54, %v11103_v4 }
 0x7e6   : > { %v10177_v7 = vcombine.high %v10175_v14, %v10175_v14  ;;  %v11100_v39 = vrot.slane %v10176_v50, 9  ;;  %v11101_v61 = vrot.slane %v10175_v14, 9  ;;  %v10227_v49 = vmax.f32 %v10168_v46, %v11099_v3 }
 0x7e7   : > { %v11106_v62 = vrot.slane %v10194_v17, 9  ;;  %v10233_v16 = vmax.f32 %v10192_v25, %v11105_v48  ;;  %v10232_v59 = vmax.f32 %v10193_v45, %v11104_v24 }
 0x7e8   : > { %v11102_v58 = vrot.slane %v10177_v7, 9  ;;  %v10229_v20 = vmax.f32 %v10175_v14, %v11101_v61  ;;  %v10228_v6 = vmax.f32 %v10176_v50, %v11100_v39 }
 0x7e9   : > { %v10234_v29 = vmax.f32 %v10194_v17, %v11106_v62  ;;  %v10237_v51 = vmax.f32 %v10231_v44, %v10233_v16 }
 0x7ea   : > { %v10230_v22 = vmax.f32 %v10177_v7, %v11102_v58  ;;  %v10235_v34 = vmax.f32 %v10227_v49, %v10229_v20 }
 0x7eb   : > { %v10238_v0 = vmax.f32 %v10232_v59, %v10234_v29  ;;  %v10254_v9 = vrot.slane %v10237_v51, %v15833_v8 }
 0x7ec   : > { %v10236_v15 = vmax.f32 %v10228_v6, %v10230_v22  ;;  %v10246_v31 = vrot.slane %v10235_v34, %v15833_v8 }
 0x7ed   : > { %v10258_v2 = vrot.slane %v10238_v0, %v15833_v8 }
 0x7ee   : > { %v10250_v10 = vrot.slane %v10236_v15, %v15833_v8  ;;  %v10276_v8 = vld [vmem:[%s16822_s8] sm:$0x1] }
 0x7f0   : > { %v10259_v42 = vsel %vm7424_vm2, %v10250_v10, %v10246_v31 }
 0x7f1   : > { %v10260_v52 = vsel %vm7426_vm3, %v10254_v9, %v10259_v42 }
 0x7f2   : > { %v10261_v56 = vsel %vm7428_vm4, %v10258_v2, %v10260_v52 }
 0x7f3   : > { %v10263_v47 = vsel %vm9288_vm10, %v10261_v56, 0.0 }
 0x7f4   : > { %v10264_v38 = vrot.slane %v10263_v47, 4 }
 0x7f6   : > { %v10265_v23 = vadd.f32 %v10264_v38, %v10263_v47 }
 0x7f8   : > { %v10266_v60 = vrot.slane %v10265_v23, 2 }
 0x7fa   : > { %v10267_v21 = vadd.f32 %v10266_v60, %v10265_v23 }
 0x7fc   : > { %v10268_v28 = vrot.slane %v10267_v21, 1 }
 0x7fe   : > { %v10269_v63 = vadd.f32 %v10268_v28, %v10267_v21 }
 0x800   : > { %v10271_v19 = vmul.f32 0.25, %v10269_v63 }
 0x802   : > { %12727 = vmatmul.mubr.msk.f32.vlgmr.msra.gmra.mrb[162].mxu0 %vm462_vm0, %v10271_v19 }
 0x8d5   : > { %v10346_v26 = vpop.f32.mrb[162].mxu0 }
 0x8d6   : > { %v10347_v53 = vadd.f32 %v10346_v26, %v10276_v8  ;;  %v12728_v43 = vpop.f32.mrb[163].mxu0 }
 0x8d8   : > { %10350 = vst [vmem:[%s324_s22] sm:$0x1] %v10347_v53 }
 0x8d9   : > { %13380 = shalt.err (!%p13377_p3)
}
 0x8da   : > { %s13381_s14 = scalar_lea.hbm %s16772_s26, 16  ;;  %s13385_s22 = scalar_lea.hbm %s16823_s9, 32 }
 0x8db   : > { %p13382_p4 = scmp.ne.s32.totalorder %s16772_s26, %s13381_s14  ;;  %p13386_p9 = scmp.lt.u32.totalorder %s16772_s26, %s16823_s9 }
 0x8dc   : > { %p13387_p10 = scmp.lt.u32.totalorder %s13385_s22, %s13381_s14  ;;  %p13389_p12 = scmp.lt.u32.totalorder %s13381_s14, %s16772_s26 }
 0x8dd   : > { %p13383_p7 = pnand %p13382_p4, %p13524_p5 }
 0x8de   : > { %p13388_p11 = por %p13387_p10, %p13386_p9 }
 0x8df   : > { %p13384_p8 = pneg %p13383_p7 }
 0x8e0   : > { %p13390_p13 = por %p13389_p12, %p13388_p11 }
 0x8e2   : > { %p13391_p0 = pnand %p13390_p13, %p13384_p8 }
 0x8e4   : > { %13394 = shalt.err (!%p13391_p0)
}
 0x8e5   : > { %13299 = dma.vmem_to_hbm [thread:$0]  (%p13524_p5), %s16774_s23, 16, %s16772_s26, %s10352_s27  }
 0x8e6 PF: > { %p13305_p1 = scmp.ge.s32.totalorder %s13429_s12, 2  ;;  %s10376_s28 = sand.u32 1, %s13417_s30  }
 0x8e7   : > { %s10377_s13 = scalar_lea.sflag [#allocation6], %s10376_s28 }
 0x8e8   : > { %p13302_p2 = pnand %p13305_p1, %p13528_p6 }
 0x8ea   : > { %13412 = dma.done.wait (!%p13302_p2), %s10377_s13, 16  }
 0x8eb   : > { %13414 = vsyncadd (!%p13302_p2), %s10377_s13, 4294967280  ;;  %p19_p3 = scmp.ge.s32.totalorder %s13511_s15, 4   ;;  %s17103_s30 = smov %s13421_s10 }
 0x8ec   : > { %s17104_s10 = smov %s13425_s11  ;;  %s17105_s11 = smov %s13522_s18 }
 0x8ed   : > { %s17106_s12 = smov %s13511_s15  ;;  %21 = sbr.rel (!%p19_p3) target bundleno = 3 (0x3), region = 97 }
 0x8f4   :  { %10381 = vsyncpa [#allocation6], 1 }
 0x8f5   :  { %10383 = vsyncpa [#allocation6 + $0x1], 1 }

</bundles_post_ra>
